<compile_context>
chip_gen: v5e
topology: v5e:2x2
jax: 0.10.0
libtpu: 0.0.40
codegen_flags: <defaults>
</compile_context>

<pallas_src>
import numpy as np

import jax
import jax.numpy as jnp
from jax import lax
from jax.experimental import pallas as pl
from jax.experimental.pallas import tpu as pltpu


_VMEM_LIMIT = 48 * 1024 * 1024  # safe on v5e/v6e (128 MiB phys) and v7x (64 MiB phys)


def _padded_geom(Ho, Wo):
    Wp = ((Wo + 2 + 7) // 8) * 8   # padded width: halo + round up to sublane multiple
    Hp = Ho + 3                    # 1 top halo + Ho rows + 2 bottom (halo + flat-shift slack)
    return Hp, Wp


def _col_mask(Ho, Wp, Wo):
    # 1.0 on valid output columns of the flat (Ho*Wp) padded-width layout, 0.0 on pad columns.
    m = (np.arange(Ho * Wp) % Wp) < Wo
    return jnp.asarray(m.astype(np.float32)).reshape(Ho * Wp, 1)


# ------------------- kernel 1: maxpool2x2 + conv3x3 + BN stats -------------------

def fused_pool_conv_stats(x_nhwc, w_hwio):
    """Returns (y, s, Wp):
         y: (N, Ho*Wp, Cmid) f32 conv1 output in flat padded-width layout (pad cols zeroed)
         s: (N, 2, Cmid) f32 per-image [sum, sum-of-squares] over valid pixels
    """
    N, H, W, Cin = x_nhwc.shape
    Ho, Wo = H // 2, W // 2
    Cmid = w_hwio.shape[-1]
    Hp, Wp = _padded_geom(Ho, Wo)
    M = Ho * Wp

    xr = x_nhwc.reshape(N, Ho, 2, Wo, 2 * Cin)       # free (contiguous) reshape, no transpose
    wr = w_hwio.reshape(9, Cin, Cmid)
    mask = _col_mask(Ho, Wp, Wo)

    def kernel(x_ref, w_ref, m_ref, y_ref, s_ref, xp_ref):
        # ---- 2x2 max-pool: vertical pair in its own (squeezable) dim, horizontal in lanes ----
        x = x_ref[...]                                          # (Ho, 2, Wo, 2*Cin)
        xv = jnp.maximum(x[:, 0, :, :], x[:, 1, :, :])          # (Ho, Wo, 2*Cin)
        pooled = jnp.maximum(xv[:, :, :Cin], xv[:, :, Cin:])    # (Ho, Wo, Cin)

        # ---- width-pad rows in-register: [0 | valid | 0...] -> full stride Wp ----
        zcol = jnp.zeros((Ho, 1, Cin), jnp.float32)
        zpad = jnp.zeros((Ho, Wp - Wo - 1, Cin), jnp.float32)
        rows = jnp.concatenate([zcol, pooled, zpad], axis=1)    # (Ho, Wp, Cin)

        # ---- zero only the halo bands (top row + 2 bottom rows); interior fully rewritten ----
        xp_ref[pl.ds(0, Wp), :] = jnp.zeros((Wp, Cin), jnp.float32)
        xp_ref[pl.ds((Ho + 1) * Wp, 2 * Wp), :] = jnp.zeros((2 * Wp, Cin), jnp.float32)
        for r in range(Ho):                                     # aligned, unmasked full-row stores
            xp_ref[pl.ds((r + 1) * Wp, Wp), :] = rows[r]

        # ---- 9-tap conv as tile-level matmuls: M = Ho*Wp, K = Cin, N = Cmid ----
        acc = jnp.zeros((M, Cmid), jnp.float32)
        for dy in range(3):
            for dx in range(3):
                taps = xp_ref[pl.ds(dy * Wp + dx, M), :]        # (M, Cin)
                acc = acc + jnp.dot(taps, w_ref[dy * 3 + dx],
                                    preferred_element_type=jnp.float32)

        y = acc * m_ref[...]                                    # zero the width-pad columns
        y_ref[...] = y
        # ---- per-image BN batch-stat partials ----
        s_ref[0:1, :] = jnp.sum(y, axis=0, keepdims=True)
        s_ref[1:2, :] = jnp.sum(y * y, axis=0, keepdims=True)

    y, s = pl.pallas_call(
        kernel,
        out_shape=(jax.ShapeDtypeStruct((N, M, Cmid), jnp.float32),
                   jax.ShapeDtypeStruct((N, 2, Cmid), jnp.float32)),
        grid=(N,),
        in_specs=[
            pl.BlockSpec((None, Ho, 2, Wo, 2 * Cin), lambda n: (n, 0, 0, 0, 0)),
            pl.BlockSpec((9, Cin, Cmid), lambda n: (0, 0, 0)),
            pl.BlockSpec((M, 1), lambda n: (0, 0)),
        ],
        out_specs=[
            pl.BlockSpec((None, M, Cmid), lambda n: (n, 0, 0)),
            pl.BlockSpec((None, 2, Cmid), lambda n: (n, 0, 0)),
        ],
        scratch_shapes=[pltpu.VMEM((Hp * Wp, Cin), jnp.float32)],
        compiler_params=pltpu.CompilerParams(
            dimension_semantics=("parallel",),
            vmem_limit_bytes=_VMEM_LIMIT),
    )(xr, wr, mask)
    return y, s, Wp


# --------------- kernel 2: BN1 affine + ReLU + conv3x3 + BN stats ----------------

def fused_bnrelu_conv_stats(y_flat, w_hwio, scale, shift, Wp, Ho, Wo):
    N, M, Cmid = y_flat.shape
    assert M == Ho * Wp
    Cout = w_hwio.shape[-1]
    Hp = Ho + 3
    wr = w_hwio.reshape(9, Cmid, Cout)
    mask = _col_mask(Ho, Wp, Wo)
    sc2 = scale.reshape(1, Cmid).astype(jnp.float32)
    sh2 = shift.reshape(1, Cmid).astype(jnp.float32)

    def kernel(y_ref, w_ref, sc_ref, sh_ref, m_ref, z_ref, s_ref, xp_ref):
        mask_v = m_ref[...]                                              # (M, 1)
        # BN1 affine + ReLU on the conv1 output; re-zero the pad columns.
        a = jnp.maximum(y_ref[...] * sc_ref[...] + sh_ref[...], 0.0) * mask_v   # (M, Cmid)

        # Zero only the halo bands; the input layout shares the scratch row stride Wp, so
        # the whole padded interior (shifted by one row and one column) is one store that
        # also rewrites the (zeroed) pad columns.
        xp_ref[pl.ds(0, 2 * Wp), :] = jnp.zeros((2 * Wp, Cmid), jnp.float32)
        xp_ref[pl.ds((Ho + 1) * Wp, 2 * Wp), :] = jnp.zeros((2 * Wp, Cmid), jnp.float32)
        xp_ref[pl.ds(Wp + 1, M), :] = a

        acc = jnp.zeros((M, Cout), jnp.float32)
        for dy in range(3):
            for dx in range(3):
                taps = xp_ref[pl.ds(dy * Wp + dx, M), :]
                acc = acc + jnp.dot(taps, w_ref[dy * 3 + dx],
                                    preferred_element_type=jnp.float32)

        z = acc * mask_v
        z_ref[...] = z
        s_ref[0:1, :] = jnp.sum(z, axis=0, keepdims=True)
        s_ref[1:2, :] = jnp.sum(z * z, axis=0, keepdims=True)

    z, s = pl.pallas_call(
        kernel,
        out_shape=(jax.ShapeDtypeStruct((N, M, Cout), jnp.float32),
                   jax.ShapeDtypeStruct((N, 2, Cout), jnp.float32)),
        grid=(N,),
        in_specs=[
            pl.BlockSpec((None, M, Cmid), lambda n: (n, 0, 0)),
            pl.BlockSpec((9, Cmid, Cout), lambda n: (0, 0, 0)),
            pl.BlockSpec((1, Cmid), lambda n: (0, 0)),
            pl.BlockSpec((1, Cmid), lambda n: (0, 0)),
            pl.BlockSpec((M, 1), lambda n: (0, 0)),
        ],
        out_specs=[
            pl.BlockSpec((None, M, Cout), lambda n: (n, 0, 0)),
            pl.BlockSpec((None, 2, Cout), lambda n: (n, 0, 0)),
        ],
        scratch_shapes=[pltpu.VMEM((Hp * Wp, Cmid), jnp.float32)],
        compiler_params=pltpu.CompilerParams(
            dimension_semantics=("parallel",),
            vmem_limit_bytes=_VMEM_LIMIT),
    )(y_flat, wr, sc2, sh2, mask)
    return z, s


# -------------------------- kernel 3: BN2 affine + ReLU ---------------------------

def bn_relu_final(z_flat, scale, shift, Wp, Ho, Wo):
    N, M, Cout = z_flat.shape
    assert M == Ho * Wp
    zr = z_flat.reshape(N, Ho, Wp, Cout)             # free reshape
    sc = scale.reshape(1, 1, Cout).astype(jnp.float32)
    sh = shift.reshape(1, 1, Cout).astype(jnp.float32)

    def kernel(z_ref, sc_ref, sh_ref, o_ref):
        z = z_ref[...][:, :Wo, :]                    # drop width-pad columns (aligned slice)
        o_ref[...] = jnp.maximum(z * sc_ref[...] + sh_ref[...], 0.0)

    return pl.pallas_call(
        kernel,
        out_shape=jax.ShapeDtypeStruct((N, Ho, Wo, Cout), jnp.float32),
        grid=(N,),
        in_specs=[
            pl.BlockSpec((None, Ho, Wp, Cout), lambda n: (n, 0, 0, 0)),
            pl.BlockSpec((1, 1, Cout), lambda n: (0, 0, 0)),
            pl.BlockSpec((1, 1, Cout), lambda n: (0, 0, 0)),
        ],
        out_specs=pl.BlockSpec((None, Ho, Wo, Cout), lambda n: (n, 0, 0, 0)),
        compiler_params=pltpu.CompilerParams(
            dimension_semantics=("parallel",),
            vmem_limit_bytes=_VMEM_LIMIT),
    )(zr, sc, sh)


# -------------------------------- Down.forward ------------------------------------

def down_forward(x_nchw, params, eps=1e-5):
    x = jnp.transpose(x_nchw, (0, 2, 3, 1)).astype(jnp.float32)   # NCHW -> NHWC
    N, H, W, Cin = x.shape
    Ho, Wo = H // 2, W // 2
    cnt = float(N * Ho * Wo)

    # stage 1: maxpool + conv1 + BN1 partial stats (fused)
    y, s1, Wp = fused_pool_conv_stats(x, params["w1"])
    mean1 = jnp.sum(s1[:, 0, :], axis=0) / cnt
    var1 = jnp.maximum(jnp.sum(s1[:, 1, :], axis=0) / cnt - mean1 * mean1, 0.0)
    scale1 = params["gamma1"] / jnp.sqrt(var1 + eps)
    shift1 = params["beta1"] - mean1 * scale1

    # stage 2: BN1 + ReLU + conv2 + BN2 partial stats (fused)
    z, s2 = fused_bnrelu_conv_stats(y, params["w2"], scale1, shift1, Wp, Ho, Wo)
    mean2 = jnp.sum(s2[:, 0, :], axis=0) / cnt
    var2 = jnp.maximum(jnp.sum(s2[:, 1, :], axis=0) / cnt - mean2 * mean2, 0.0)
    scale2 = params["gamma2"] / jnp.sqrt(var2 + eps)
    shift2 = params["beta2"] - mean2 * scale2

    # stage 3: BN2 + ReLU
    out = bn_relu_final(z, scale2, shift2, Wp, Ho, Wo)
    return jnp.transpose(out, (0, 3, 1, 2))           # NHWC -> NCHW


# ------------------------------ pure-JAX reference ---------------------------------

def down_reference(x_nchw, params, eps=1e-5):
    x = jnp.transpose(x_nchw, (0, 2, 3, 1)).astype(jnp.float32)
    N, H, W, C = x.shape
    x = x.reshape(N, H // 2, 2, W // 2, 2, C).max(axis=(2, 4))

    def block(h, w, g, b):
        y = lax.conv_general_dilated(h, w, (1, 1), "SAME",
                                     dimension_numbers=("NHWC", "HWIO", "NHWC"))
        m = jnp.mean(y, axis=(0, 1, 2))
        v = jnp.var(y, axis=(0, 1, 2))
        y = (y - m) / jnp.sqrt(v + eps) * g + b
        return jnp.maximum(y, 0.0)

    y = block(x, params["w1"], params["gamma1"], params["beta1"])
    z = block(y, params["w2"], params["gamma2"], params["beta2"])
    return jnp.transpose(z, (0, 3, 1, 2))


if __name__ == "__main__":
    key = jax.random.PRNGKey(0)
    kx, k1, k2, k3, k4 = jax.random.split(key, 5)

    N, Cin, H, W = 2, 4, 16, 16          # Down(in_channels=4, out_channels=8)
    Cout = 8                             # mid_channels defaults to out_channels

    x = jax.random.normal(kx, (N, Cin, H, W), jnp.float32)
    params = {
        "w1": jax.random.normal(k1, (3, 3, Cin, Cout), jnp.float32)
              * (2.0 / (9 * Cin)) ** 0.5,
        "gamma1": 1.0 + 0.1 * jax.random.normal(k3, (Cout,), jnp.float32),
        "beta1": 0.1 * jax.random.normal(k4, (Cout,), jnp.float32),
        "w2": jax.random.normal(k2, (3, 3, Cout, Cout), jnp.float32)
              * (2.0 / (9 * Cout)) ** 0.5,
        "gamma2": jnp.linspace(0.9, 1.1, Cout, dtype=jnp.float32),
        "beta2": jnp.linspace(-0.05, 0.05, Cout, dtype=jnp.float32),
    }

    out = jax.jit(down_forward)(x, params)
    out = jax.block_until_ready(out)

    assert out.shape == (N, Cout, H // 2, W // 2), out.shape

    ref = down_reference(x, params)
    err = float(jnp.max(jnp.abs(out - ref)))
    if err > 2e-2:
        raise AssertionError(f"mismatch vs reference: max abs err = {err}")

    print("KERNEL_OK")
</pallas_src>

<mosaic_0001>
module attributes {stable_mosaic.version = 11 : i64} {
  func.func @kernel(%arg0: i32, %arg1: memref<1x8x2x8x8xf32, #tpu.memory_space<vmem>>, %arg2: memref<9x4x8xf32, #tpu.memory_space<vmem>>, %arg3: memref<128x1xf32, #tpu.memory_space<vmem>>, %arg4: memref<1x128x8xf32, #tpu.memory_space<vmem>>, %arg5: memref<1x2x8xf32, #tpu.memory_space<vmem>>, %arg6: memref<176x4xf32, #tpu.memory_space<vmem>>) attributes {dimension_semantics = [#tpu.dimension_semantics<parallel>], iteration_bounds = array<i64: 2>, scalar_prefetch = 0 : i64, scratch_operands = 1 : i64, tpu.core_type = #tpu.core_type<tc>, window_params = [{transform_indices = @transform_0, window_bounds = array<i64: 1, 8, 2, 8, 8>}, {pipeline_mode = #tpu.pipeline_mode<synchronous>, transform_indices = @transform_1, window_bounds = array<i64: 9, 4, 8>}, {pipeline_mode = #tpu.pipeline_mode<synchronous>, transform_indices = @transform_2, window_bounds = array<i64: 128, 1>}, {transform_indices = @transform_3, window_bounds = array<i64: 1, 128, 8>}, {transform_indices = @transform_4, window_bounds = array<i64: 1, 2, 8>}]} {
    %c0 = arith.constant 0 : index
    %c0_0 = arith.constant 0 : index
    %c0_1 = arith.constant 0 : index
    %c0_2 = arith.constant 0 : index
    %c0_3 = arith.constant 0 : index
    %0 = vector.load %arg1[%c0, %c0_0, %c0_1, %c0_2, %c0_3] : memref<1x8x2x8x8xf32, #tpu.memory_space<vmem>>, vector<1x8x2x8x8xf32>
    %1 = vector.shape_cast %0 : vector<1x8x2x8x8xf32> to vector<8x2x8x8xf32>
    %2 = vector.extract_strided_slice %1 {offsets = [0, 0, 0, 0], sizes = [8, 1, 8, 8], strides = [1, 1, 1, 1]} : vector<8x2x8x8xf32> to vector<8x1x8x8xf32>
    %3 = vector.shape_cast %2 : vector<8x1x8x8xf32> to vector<8x8x8xf32>
    %4 = vector.extract_strided_slice %1 {offsets = [0, 1, 0, 0], sizes = [8, 1, 8, 8], strides = [1, 1, 1, 1]} : vector<8x2x8x8xf32> to vector<8x1x8x8xf32>
    %5 = vector.shape_cast %4 : vector<8x1x8x8xf32> to vector<8x8x8xf32>
    %6 = arith.maximumf %3, %5 : vector<8x8x8xf32>
    %7 = vector.extract_strided_slice %6 {offsets = [0, 0, 0], sizes = [8, 8, 4], strides = [1, 1, 1]} : vector<8x8x8xf32> to vector<8x8x4xf32>
    %8 = vector.extract_strided_slice %6 {offsets = [0, 0, 4], sizes = [8, 8, 4], strides = [1, 1, 1]} : vector<8x8x8xf32> to vector<8x8x4xf32>
    %9 = arith.maximumf %7, %8 : vector<8x8x4xf32>
    %cst = arith.constant 0.000000e+00 : f32
    %10 = vector.broadcast %cst : f32 to vector<8x1x4xf32>
    %cst_4 = arith.constant 0.000000e+00 : f32
    %11 = vector.broadcast %cst_4 : f32 to vector<8x7x4xf32>
    %12 = tpu.concatenate %10, %9, %11 in 1 : vector<8x1x4xf32>, vector<8x8x4xf32>, vector<8x7x4xf32> -> vector<8x16x4xf32>
    %cst_5 = arith.constant 0.000000e+00 : f32
    %13 = vector.broadcast %cst_5 : f32 to vector<16x4xf32>
    %c0_6 = arith.constant 0 : index
    %c0_7 = arith.constant 0 : index
    %14 = vector.load %arg6[%c0_6, %c0_7] : memref<176x4xf32, #tpu.memory_space<vmem>>, vector<16x4xf32>
    tpu.vector_store %arg6[%c0_6, %c0_7], %13 {strides = array<i32>} : memref<176x4xf32, #tpu.memory_space<vmem>>, vector<16x4xf32>,
    %cst_8 = arith.constant 0.000000e+00 : f32
    %15 = vector.broadcast %cst_8 : f32 to vector<32x4xf32>
    %c144 = arith.constant 144 : index
    %c0_9 = arith.constant 0 : index
    %16 = vector.load %arg6[%c144, %c0_9] : memref<176x4xf32, #tpu.memory_space<vmem>>, vector<32x4xf32>
    tpu.vector_store %arg6[%c144, %c0_9], %15 {strides = array<i32>} : memref<176x4xf32, #tpu.memory_space<vmem>>, vector<32x4xf32>,
    %17 = vector.extract_strided_slice %12 {offsets = [0, 0, 0], sizes = [1, 16, 4], strides = [1, 1, 1]} : vector<8x16x4xf32> to vector<1x16x4xf32>
    %18 = vector.shape_cast %17 : vector<1x16x4xf32> to vector<16x4xf32>
    %c16 = arith.constant 16 : index
    %c0_10 = arith.constant 0 : index
    %19 = vector.load %arg6[%c16, %c0_10] : memref<176x4xf32, #tpu.memory_space<vmem>>, vector<16x4xf32>
    tpu.vector_store %arg6[%c16, %c0_10], %18 {strides = array<i32>} : memref<176x4xf32, #tpu.memory_space<vmem>>, vector<16x4xf32>,
    %20 = vector.extract_strided_slice %12 {offsets = [1, 0, 0], sizes = [1, 16, 4], strides = [1, 1, 1]} : vector<8x16x4xf32> to vector<1x16x4xf32>
    %21 = vector.shape_cast %20 : vector<1x16x4xf32> to vector<16x4xf32>
    %c32 = arith.constant 32 : index
    %c0_11 = arith.constant 0 : index
    %22 = vector.load %arg6[%c32, %c0_11] : memref<176x4xf32, #tpu.memory_space<vmem>>, vector<16x4xf32>
    tpu.vector_store %arg6[%c32, %c0_11], %21 {strides = array<i32>} : memref<176x4xf32, #tpu.memory_space<vmem>>, vector<16x4xf32>,
    %23 = vector.extract_strided_slice %12 {offsets = [2, 0, 0], sizes = [1, 16, 4], strides = [1, 1, 1]} : vector<8x16x4xf32> to vector<1x16x4xf32>
    %24 = vector.shape_cast %23 : vector<1x16x4xf32> to vector<16x4xf32>
    %c48 = arith.constant 48 : index
    %c0_12 = arith.constant 0 : index
    %25 = vector.load %arg6[%c48, %c0_12] : memref<176x4xf32, #tpu.memory_space<vmem>>, vector<16x4xf32>
    tpu.vector_store %arg6[%c48, %c0_12], %24 {strides = array<i32>} : memref<176x4xf32, #tpu.memory_space<vmem>>, vector<16x4xf32>,
    %26 = vector.extract_strided_slice %12 {offsets = [3, 0, 0], sizes = [1, 16, 4], strides = [1, 1, 1]} : vector<8x16x4xf32> to vector<1x16x4xf32>
    %27 = vector.shape_cast %26 : vector<1x16x4xf32> to vector<16x4xf32>
    %c64 = arith.constant 64 : index
    %c0_13 = arith.constant 0 : index
    %28 = vector.load %arg6[%c64, %c0_13] : memref<176x4xf32, #tpu.memory_space<vmem>>, vector<16x4xf32>
    tpu.vector_store %arg6[%c64, %c0_13], %27 {strides = array<i32>} : memref<176x4xf32, #tpu.memory_space<vmem>>, vector<16x4xf32>,
    %29 = vector.extract_strided_slice %12 {offsets = [4, 0, 0], sizes = [1, 16, 4], strides = [1, 1, 1]} : vector<8x16x4xf32> to vector<1x16x4xf32>
    %30 = vector.shape_cast %29 : vector<1x16x4xf32> to vector<16x4xf32>
    %c80 = arith.constant 80 : index
    %c0_14 = arith.constant 0 : index
    %31 = vector.load %arg6[%c80, %c0_14] : memref<176x4xf32, #tpu.memory_space<vmem>>, vector<16x4xf32>
    tpu.vector_store %arg6[%c80, %c0_14], %30 {strides = array<i32>} : memref<176x4xf32, #tpu.memory_space<vmem>>, vector<16x4xf32>,
    %32 = vector.extract_strided_slice %12 {offsets = [5, 0, 0], sizes = [1, 16, 4], strides = [1, 1, 1]} : vector<8x16x4xf32> to vector<1x16x4xf32>
    %33 = vector.shape_cast %32 : vector<1x16x4xf32> to vector<16x4xf32>
    %c96 = arith.constant 96 : index
    %c0_15 = arith.constant 0 : index
    %34 = vector.load %arg6[%c96, %c0_15] : memref<176x4xf32, #tpu.memory_space<vmem>>, vector<16x4xf32>
    tpu.vector_store %arg6[%c96, %c0_15], %33 {strides = array<i32>} : memref<176x4xf32, #tpu.memory_space<vmem>>, vector<16x4xf32>,
    %35 = vector.extract_strided_slice %12 {offsets = [6, 0, 0], sizes = [1, 16, 4], strides = [1, 1, 1]} : vector<8x16x4xf32> to vector<1x16x4xf32>
    %36 = vector.shape_cast %35 : vector<1x16x4xf32> to vector<16x4xf32>
    %c112 = arith.constant 112 : index
    %c0_16 = arith.constant 0 : index
    %37 = vector.load %arg6[%c112, %c0_16] : memref<176x4xf32, #tpu.memory_space<vmem>>, vector<16x4xf32>
    tpu.vector_store %arg6[%c112, %c0_16], %36 {strides = array<i32>} : memref<176x4xf32, #tpu.memory_space<vmem>>, vector<16x4xf32>,
    %38 = vector.extract_strided_slice %12 {offsets = [7, 0, 0], sizes = [1, 16, 4], strides = [1, 1, 1]} : vector<8x16x4xf32> to vector<1x16x4xf32>
    %39 = vector.shape_cast %38 : vector<1x16x4xf32> to vector<16x4xf32>
    %c128 = arith.constant 128 : index
    %c0_17 = arith.constant 0 : index
    %40 = vector.load %arg6[%c128, %c0_17] : memref<176x4xf32, #tpu.memory_space<vmem>>, vector<16x4xf32>
    tpu.vector_store %arg6[%c128, %c0_17], %39 {strides = array<i32>} : memref<176x4xf32, #tpu.memory_space<vmem>>, vector<16x4xf32>,
    %cst_18 = arith.constant 0.000000e+00 : f32
    %41 = vector.broadcast %cst_18 : f32 to vector<128x8xf32>
    %c0_19 = arith.constant 0 : index
    %c0_20 = arith.constant 0 : index
    %42 = vector.load %arg6[%c0_19, %c0_20] : memref<176x4xf32, #tpu.memory_space<vmem>>, vector<128x4xf32>
    %c0_21 = arith.constant 0 : index
    %c0_22 = arith.constant 0 : index
    %c0_23 = arith.constant 0 : index
    %43 = vector.load %arg2[%c0_21, %c0_22, %c0_23] : memref<9x4x8xf32, #tpu.memory_space<vmem>>, vector<1x4x8xf32>
    %44 = vector.shape_cast %43 : vector<1x4x8xf32> to vector<4x8xf32>
    %cst_24 = arith.constant dense<0.000000e+00> : vector<128x8xf32>
    %45 = tpu.matmul %42, %44, %cst_24 {dimension_numbers = #tpu.dot_dimension_numbers<[1], [0], [0], [1], [0, 0, 1, 1], [], []>} : vector<128x4xf32>, vector<4x8xf32>, vector<128x8xf32> -> vector<128x8xf32>
    %46 = arith.addf %41, %45 : vector<128x8xf32>
    %c1 = arith.constant 1 : index
    %c0_25 = arith.constant 0 : index
    %47 = vector.load %arg6[%c1, %c0_25] : memref<176x4xf32, #tpu.memory_space<vmem>>, vector<128x4xf32>
    %c1_26 = arith.constant 1 : index
    %c0_27 = arith.constant 0 : index
    %c0_28 = arith.constant 0 : index
    %48 = vector.load %arg2[%c1_26, %c0_27, %c0_28] : memref<9x4x8xf32, #tpu.memory_space<vmem>>, vector<1x4x8xf32>
    %49 = vector.shape_cast %48 : vector<1x4x8xf32> to vector<4x8xf32>
    %cst_29 = arith.constant dense<0.000000e+00> : vector<128x8xf32>
    %50 = tpu.matmul %47, %49, %cst_29 {dimension_numbers = #tpu.dot_dimension_numbers<[1], [0], [0], [1], [0, 0, 1, 1], [], []>} : vector<128x4xf32>, vector<4x8xf32>, vector<128x8xf32> -> vector<128x8xf32>
    %51 = arith.addf %46, %50 : vector<128x8xf32>
    %c2 = arith.constant 2 : index
    %c0_30 = arith.constant 0 : index
    %52 = vector.load %arg6[%c2, %c0_30] : memref<176x4xf32, #tpu.memory_space<vmem>>, vector<128x4xf32>
    %c2_31 = arith.constant 2 : index
    %c0_32 = arith.constant 0 : index
    %c0_33 = arith.constant 0 : index
    %53 = vector.load %arg2[%c2_31, %c0_32, %c0_33] : memref<9x4x8xf32, #tpu.memory_space<vmem>>, vector<1x4x8xf32>
    %54 = vector.shape_cast %53 : vector<1x4x8xf32> to vector<4x8xf32>
    %cst_34 = arith.constant dense<0.000000e+00> : vector<128x8xf32>
    %55 = tpu.matmul %52, %54, %cst_34 {dimension_numbers = #tpu.dot_dimension_numbers<[1], [0], [0], [1], [0, 0, 1, 1], [], []>} : vector<128x4xf32>, vector<4x8xf32>, vector<128x8xf32> -> vector<128x8xf32>
    %56 = arith.addf %51, %55 : vector<128x8xf32>
    %c16_35 = arith.constant 16 : index
    %c0_36 = arith.constant 0 : index
    %57 = vector.load %arg6[%c16_35, %c0_36] : memref<176x4xf32, #tpu.memory_space<vmem>>, vector<128x4xf32>
    %c3 = arith.constant 3 : index
    %c0_37 = arith.constant 0 : index
    %c0_38 = arith.constant 0 : index
    %58 = vector.load %arg2[%c3, %c0_37, %c0_38] : memref<9x4x8xf32, #tpu.memory_space<vmem>>, vector<1x4x8xf32>
    %59 = vector.shape_cast %58 : vector<1x4x8xf32> to vector<4x8xf32>
    %cst_39 = arith.constant dense<0.000000e+00> : vector<128x8xf32>
    %60 = tpu.matmul %57, %59, %cst_39 {dimension_numbers = #tpu.dot_dimension_numbers<[1], [0], [0], [1], [0, 0, 1, 1], [], []>} : vector<128x4xf32>, vector<4x8xf32>, vector<128x8xf32> -> vector<128x8xf32>
    %61 = arith.addf %56, %60 : vector<128x8xf32>
    %c17 = arith.constant 17 : index
    %c0_40 = arith.constant 0 : index
    %62 = vector.load %arg6[%c17, %c0_40] : memref<176x4xf32, #tpu.memory_space<vmem>>, vector<128x4xf32>
    %c4 = arith.constant 4 : index
    %c0_41 = arith.constant 0 : index
    %c0_42 = arith.constant 0 : index
    %63 = vector.load %arg2[%c4, %c0_41, %c0_42] : memref<9x4x8xf32, #tpu.memory_space<vmem>>, vector<1x4x8xf32>
    %64 = vector.shape_cast %63 : vector<1x4x8xf32> to vector<4x8xf32>
    %cst_43 = arith.constant dense<0.000000e+00> : vector<128x8xf32>
    %65 = tpu.matmul %62, %64, %cst_43 {dimension_numbers = #tpu.dot_dimension_numbers<[1], [0], [0], [1], [0, 0, 1, 1], [], []>} : vector<128x4xf32>, vector<4x8xf32>, vector<128x8xf32> -> vector<128x8xf32>
    %66 = arith.addf %61, %65 : vector<128x8xf32>
    %c18 = arith.constant 18 : index
    %c0_44 = arith.constant 0 : index
    %67 = vector.load %arg6[%c18, %c0_44] : memref<176x4xf32, #tpu.memory_space<vmem>>, vector<128x4xf32>
    %c5 = arith.constant 5 : index
    %c0_45 = arith.constant 0 : index
    %c0_46 = arith.constant 0 : index
    %68 = vector.load %arg2[%c5, %c0_45, %c0_46] : memref<9x4x8xf32, #tpu.memory_space<vmem>>, vector<1x4x8xf32>
    %69 = vector.shape_cast %68 : vector<1x4x8xf32> to vector<4x8xf32>
    %cst_47 = arith.constant dense<0.000000e+00> : vector<128x8xf32>
    %70 = tpu.matmul %67, %69, %cst_47 {dimension_numbers = #tpu.dot_dimension_numbers<[1], [0], [0], [1], [0, 0, 1, 1], [], []>} : vector<128x4xf32>, vector<4x8xf32>, vector<128x8xf32> -> vector<128x8xf32>
    %71 = arith.addf %66, %70 : vector<128x8xf32>
    %c32_48 = arith.constant 32 : index
    %c0_49 = arith.constant 0 : index
    %72 = vector.load %arg6[%c32_48, %c0_49] : memref<176x4xf32, #tpu.memory_space<vmem>>, vector<128x4xf32>
    %c6 = arith.constant 6 : index
    %c0_50 = arith.constant 0 : index
    %c0_51 = arith.constant 0 : index
    %73 = vector.load %arg2[%c6, %c0_50, %c0_51] : memref<9x4x8xf32, #tpu.memory_space<vmem>>, vector<1x4x8xf32>
    %74 = vector.shape_cast %73 : vector<1x4x8xf32> to vector<4x8xf32>
    %cst_52 = arith.constant dense<0.000000e+00> : vector<128x8xf32>
    %75 = tpu.matmul %72, %74, %cst_52 {dimension_numbers = #tpu.dot_dimension_numbers<[1], [0], [0], [1], [0, 0, 1, 1], [], []>} : vector<128x4xf32>, vector<4x8xf32>, vector<128x8xf32> -> vector<128x8xf32>
    %76 = arith.addf %71, %75 : vector<128x8xf32>
    %c33 = arith.constant 33 : index
    %c0_53 = arith.constant 0 : index
    %77 = vector.load %arg6[%c33, %c0_53] : memref<176x4xf32, #tpu.memory_space<vmem>>, vector<128x4xf32>
    %c7 = arith.constant 7 : index
    %c0_54 = arith.constant 0 : index
    %c0_55 = arith.constant 0 : index
    %78 = vector.load %arg2[%c7, %c0_54, %c0_55] : memref<9x4x8xf32, #tpu.memory_space<vmem>>, vector<1x4x8xf32>
    %79 = vector.shape_cast %78 : vector<1x4x8xf32> to vector<4x8xf32>
    %cst_56 = arith.constant dense<0.000000e+00> : vector<128x8xf32>
    %80 = tpu.matmul %77, %79, %cst_56 {dimension_numbers = #tpu.dot_dimension_numbers<[1], [0], [0], [1], [0, 0, 1, 1], [], []>} : vector<128x4xf32>, vector<4x8xf32>, vector<128x8xf32> -> vector<128x8xf32>
    %81 = arith.addf %76, %80 : vector<128x8xf32>
    %c34 = arith.constant 34 : index
    %c0_57 = arith.constant 0 : index
    %82 = vector.load %arg6[%c34, %c0_57] : memref<176x4xf32, #tpu.memory_space<vmem>>, vector<128x4xf32>
    %c8 = arith.constant 8 : index
    %c0_58 = arith.constant 0 : index
    %c0_59 = arith.constant 0 : index
    %83 = vector.load %arg2[%c8, %c0_58, %c0_59] : memref<9x4x8xf32, #tpu.memory_space<vmem>>, vector<1x4x8xf32>
    %84 = vector.shape_cast %83 : vector<1x4x8xf32> to vector<4x8xf32>
    %cst_60 = arith.constant dense<0.000000e+00> : vector<128x8xf32>
    %85 = tpu.matmul %82, %84, %cst_60 {dimension_numbers = #tpu.dot_dimension_numbers<[1], [0], [0], [1], [0, 0, 1, 1], [], []>} : vector<128x4xf32>, vector<4x8xf32>, vector<128x8xf32> -> vector<128x8xf32>
    %86 = arith.addf %81, %85 : vector<128x8xf32>
    %c0_61 = arith.constant 0 : index
    %c0_62 = arith.constant 0 : index
    %87 = vector.load %arg3[%c0_61, %c0_62] : memref<128x1xf32, #tpu.memory_space<vmem>>, vector<128x1xf32>
    %88 = vector.broadcast %87 : vector<128x1xf32> to vector<128x8xf32>
    %89 = arith.mulf %86, %88 : vector<128x8xf32>
    %c0_63 = arith.constant 0 : index
    %c0_64 = arith.constant 0 : index
    %c0_65 = arith.constant 0 : index
    %90 = vector.load %arg4[%c0_63, %c0_64, %c0_65] : memref<1x128x8xf32, #tpu.memory_space<vmem>>, vector<1x128x8xf32>
    %91 = vector.shape_cast %90 : vector<1x128x8xf32> to vector<128x8xf32>
    %92 = vector.shape_cast %89 : vector<128x8xf32> to vector<1x128x8xf32>
    tpu.vector_store %arg4[%c0_63, %c0_64, %c0_65], %92 {strides = array<i32>} : memref<1x128x8xf32, #tpu.memory_space<vmem>>, vector<1x128x8xf32>,
    %cst_66 = arith.constant dense<0.000000e+00> : vector<8xf32>
    %93 = vector.multi_reduction <add>, %89, %cst_66 [0] : vector<128x8xf32> to vector<8xf32>
    %94 = vector.shape_cast %93 : vector<8xf32> to vector<1x8xf32>
    %c0_67 = arith.constant 0 : index
    %c0_68 = arith.constant 0 : index
    %c0_69 = arith.constant 0 : index
    %95 = vector.load %arg5[%c0_67, %c0_68, %c0_69] : memref<1x2x8xf32, #tpu.memory_space<vmem>>, vector<1x1x8xf32>
    %96 = vector.shape_cast %95 : vector<1x1x8xf32> to vector<1x8xf32>
    %97 = vector.shape_cast %94 : vector<1x8xf32> to vector<1x1x8xf32>
    tpu.vector_store %arg5[%c0_67, %c0_68, %c0_69], %97 {strides = array<i32>} : memref<1x2x8xf32, #tpu.memory_space<vmem>>, vector<1x1x8xf32>,
    %98 = arith.mulf %89, %89 : vector<128x8xf32>
    %cst_70 = arith.constant dense<0.000000e+00> : vector<8xf32>
    %99 = vector.multi_reduction <add>, %98, %cst_70 [0] : vector<128x8xf32> to vector<8xf32>
    %100 = vector.shape_cast %99 : vector<8xf32> to vector<1x8xf32>
    %c0_71 = arith.constant 0 : index
    %c1_72 = arith.constant 1 : index
    %c0_73 = arith.constant 0 : index
    %101 = vector.load %arg5[%c0_71, %c1_72, %c0_73] : memref<1x2x8xf32, #tpu.memory_space<vmem>>, vector<1x1x8xf32>
    %102 = vector.shape_cast %101 : vector<1x1x8xf32> to vector<1x8xf32>
    %103 = vector.shape_cast %100 : vector<1x8xf32> to vector<1x1x8xf32>
    tpu.vector_store %arg5[%c0_71, %c1_72, %c0_73], %103 {strides = array<i32>} : memref<1x2x8xf32, #tpu.memory_space<vmem>>, vector<1x1x8xf32>,
    return
  }
  func.func @transform_0(%arg0: i32) -> (i32, i32, i32, i32, i32) {
    %c0_i32 = arith.constant 0 : i32
    %c0_i32_0 = arith.constant 0 : i32
    %c0_i32_1 = arith.constant 0 : i32
    %c0_i32_2 = arith.constant 0 : i32
    %c0_i32_3 = arith.constant 0 : i32
    return %arg0, %c0_i32, %c0_i32_0, %c0_i32_1, %c0_i32_2 : i32, i32, i32, i32, i32
  }
  func.func @transform_1(%arg0: i32) -> (i32, i32, i32) {
    %c0_i32 = arith.constant 0 : i32
    %c0_i32_0 = arith.constant 0 : i32
    %c0_i32_1 = arith.constant 0 : i32
    %c0_i32_2 = arith.constant 0 : i32
    return %c0_i32, %c0_i32_0, %c0_i32_1 : i32, i32, i32
  }
  func.func @transform_2(%arg0: i32) -> (i32, i32) {
    %c0_i32 = arith.constant 0 : i32
    %c0_i32_0 = arith.constant 0 : i32
    %c0_i32_1 = arith.constant 0 : i32
    return %c0_i32, %c0_i32_0 : i32, i32
  }
  func.func @transform_3(%arg0: i32) -> (i32, i32, i32) {
    %c0_i32 = arith.constant 0 : i32
    %c0_i32_0 = arith.constant 0 : i32
    %c0_i32_1 = arith.constant 0 : i32
    return %arg0, %c0_i32, %c0_i32_0 : i32, i32, i32
  }
  func.func @transform_4(%arg0: i32) -> (i32, i32, i32) {
    %c0_i32 = arith.constant 0 : i32
    %c0_i32_0 = arith.constant 0 : i32
    %c0_i32_1 = arith.constant 0 : i32
    return %arg0, %c0_i32, %c0_i32_0 : i32, i32, i32
  }
}

module attributes {stable_mosaic.version = 11 : i64} {
  func.func @kernel(%arg0: i32, %arg1: memref<1x8x16x8xf32, #tpu.memory_space<vmem>>, %arg2: memref<1x1x8xf32, #tpu.memory_space<vmem>>, %arg3: memref<1x1x8xf32, #tpu.memory_space<vmem>>, %arg4: memref<1x8x8x8xf32, #tpu.memory_space<vmem>>) attributes {dimension_semantics = [#tpu.dimension_semantics<parallel>], iteration_bounds = array<i64: 2>, scalar_prefetch = 0 : i64, scratch_operands = 0 : i64, tpu.core_type = #tpu.core_type<tc>, window_params = [{transform_indices = @transform_0, window_bounds = array<i64: 1, 8, 16, 8>}, {pipeline_mode = #tpu.pipeline_mode<synchronous>, transform_indices = @transform_1, window_bounds = array<i64: 1, 1, 8>}, {pipeline_mode = #tpu.pipeline_mode<synchronous>, transform_indices = @transform_2, window_bounds = array<i64: 1, 1, 8>}, {transform_indices = @transform_3, window_bounds = array<i64: 1, 8, 8, 8>}]} {
    %c0 = arith.constant 0 : index
    %c0_0 = arith.constant 0 : index
    %c0_1 = arith.constant 0 : index
    %c0_2 = arith.constant 0 : index
    %0 = vector.load %arg1[%c0, %c0_0, %c0_1, %c0_2] : memref<1x8x16x8xf32, #tpu.memory_space<vmem>>, vector<1x8x16x8xf32>
    %1 = vector.shape_cast %0 : vector<1x8x16x8xf32> to vector<8x16x8xf32>
    %2 = vector.extract_strided_slice %1 {offsets = [0, 0, 0], sizes = [8, 8, 8], strides = [1, 1, 1]} : vector<8x16x8xf32> to vector<8x8x8xf32>
    %c0_3 = arith.constant 0 : index
    %c0_4 = arith.constant 0 : index
    %c0_5 = arith.constant 0 : index
    %3 = vector.load %arg2[%c0_3, %c0_4, %c0_5] : memref<1x1x8xf32, #tpu.memory_space<vmem>>, vector<1x1x8xf32>
    %4 = vector.broadcast %3 : vector<1x1x8xf32> to vector<8x8x8xf32>
    %5 = arith.mulf %2, %4 : vector<8x8x8xf32>
    %c0_6 = arith.constant 0 : index
    %c0_7 = arith.constant 0 : index
    %c0_8 = arith.constant 0 : index
    %6 = vector.load %arg3[%c0_6, %c0_7, %c0_8] : memref<1x1x8xf32, #tpu.memory_space<vmem>>, vector<1x1x8xf32>
    %7 = vector.broadcast %6 : vector<1x1x8xf32> to vector<8x8x8xf32>
    %8 = arith.addf %5, %7 : vector<8x8x8xf32>
    %cst = arith.constant 0.000000e+00 : f32
    %9 = vector.broadcast %cst : f32 to vector<8x8x8xf32>
    %10 = arith.maximumf %8, %9 : vector<8x8x8xf32>
    %c0_9 = arith.constant 0 : index
    %c0_10 = arith.constant 0 : index
    %c0_11 = arith.constant 0 : index
    %c0_12 = arith.constant 0 : index
    %11 = vector.load %arg4[%c0_9, %c0_10, %c0_11, %c0_12] : memref<1x8x8x8xf32, #tpu.memory_space<vmem>>, vector<1x8x8x8xf32>
    %12 = vector.shape_cast %11 : vector<1x8x8x8xf32> to vector<8x8x8xf32>
    %13 = vector.shape_cast %10 : vector<8x8x8xf32> to vector<1x8x8x8xf32>
    tpu.vector_store %arg4[%c0_9, %c0_10, %c0_11, %c0_12], %13 {strides = array<i32>} : memref<1x8x8x8xf32, #tpu.memory_space<vmem>>, vector<1x8x8x8xf32>,
    return
  }
  func.func @transform_0(%arg0: i32) -> (i32, i32, i32, i32) {
    %c0_i32 = arith.constant 0 : i32
    %c0_i32_0 = arith.constant 0 : i32
    %c0_i32_1 = arith.constant 0 : i32
    %c0_i32_2 = arith.constant 0 : i32
    return %arg0, %c0_i32, %c0_i32_0, %c0_i32_1 : i32, i32, i32, i32
  }
  func.func @transform_1(%arg0: i32) -> (i32, i32, i32) {
    %c0_i32 = arith.constant 0 : i32
    %c0_i32_0 = arith.constant 0 : i32
    %c0_i32_1 = arith.constant 0 : i32
    %c0_i32_2 = arith.constant 0 : i32
    return %c0_i32, %c0_i32_0, %c0_i32_1 : i32, i32, i32
  }
  func.func @transform_2(%arg0: i32) -> (i32, i32, i32) {
    %c0_i32 = arith.constant 0 : i32
    %c0_i32_0 = arith.constant 0 : i32
    %c0_i32_1 = arith.constant 0 : i32
    %c0_i32_2 = arith.constant 0 : i32
    return %c0_i32, %c0_i32_0, %c0_i32_1 : i32, i32, i32
  }
  func.func @transform_3(%arg0: i32) -> (i32, i32, i32, i32) {
    %c0_i32 = arith.constant 0 : i32
    %c0_i32_0 = arith.constant 0 : i32
    %c0_i32_1 = arith.constant 0 : i32
    %c0_i32_2 = arith.constant 0 : i32
    return %arg0, %c0_i32, %c0_i32_0, %c0_i32_1 : i32, i32, i32, i32
  }
}

module attributes {stable_mosaic.version = 11 : i64} {
  func.func @kernel(%arg0: i32, %arg1: memref<1x128x8xf32, #tpu.memory_space<vmem>>, %arg2: memref<9x8x8xf32, #tpu.memory_space<vmem>>, %arg3: memref<1x8xf32, #tpu.memory_space<vmem>>, %arg4: memref<1x8xf32, #tpu.memory_space<vmem>>, %arg5: memref<128x1xf32, #tpu.memory_space<vmem>>, %arg6: memref<1x128x8xf32, #tpu.memory_space<vmem>>, %arg7: memref<1x2x8xf32, #tpu.memory_space<vmem>>, %arg8: memref<176x8xf32, #tpu.memory_space<vmem>>) attributes {dimension_semantics = [#tpu.dimension_semantics<parallel>], iteration_bounds = array<i64: 2>, scalar_prefetch = 0 : i64, scratch_operands = 1 : i64, tpu.core_type = #tpu.core_type<tc>, window_params = [{transform_indices = @transform_0, window_bounds = array<i64: 1, 128, 8>}, {pipeline_mode = #tpu.pipeline_mode<synchronous>, transform_indices = @transform_1, window_bounds = array<i64: 9, 8, 8>}, {pipeline_mode = #tpu.pipeline_mode<synchronous>, transform_indices = @transform_2, window_bounds = array<i64: 1, 8>}, {pipeline_mode = #tpu.pipeline_mode<synchronous>, transform_indices = @transform_3, window_bounds = array<i64: 1, 8>}, {pipeline_mode = #tpu.pipeline_mode<synchronous>, transform_indices = @transform_4, window_bounds = array<i64: 128, 1>}, {transform_indices = @transform_5, window_bounds = array<i64: 1, 128, 8>}, {transform_indices = @transform_6, window_bounds = array<i64: 1, 2, 8>}]} {
    %c0 = arith.constant 0 : index
    %c0_0 = arith.constant 0 : index
    %0 = vector.load %arg5[%c0, %c0_0] : memref<128x1xf32, #tpu.memory_space<vmem>>, vector<128x1xf32>
    %c0_1 = arith.constant 0 : index
    %c0_2 = arith.constant 0 : index
    %c0_3 = arith.constant 0 : index
    %1 = vector.load %arg1[%c0_1, %c0_2, %c0_3] : memref<1x128x8xf32, #tpu.memory_space<vmem>>, vector<1x128x8xf32>
    %2 = vector.shape_cast %1 : vector<1x128x8xf32> to vector<128x8xf32>
    %c0_4 = arith.constant 0 : index
    %c0_5 = arith.constant 0 : index
    %3 = vector.load %arg3[%c0_4, %c0_5] : memref<1x8xf32, #tpu.memory_space<vmem>>, vector<1x8xf32>
    %4 = vector.broadcast %3 : vector<1x8xf32> to vector<128x8xf32>
    %5 = arith.mulf %2, %4 : vector<128x8xf32>
    %c0_6 = arith.constant 0 : index
    %c0_7 = arith.constant 0 : index
    %6 = vector.load %arg4[%c0_6, %c0_7] : memref<1x8xf32, #tpu.memory_space<vmem>>, vector<1x8xf32>
    %7 = vector.broadcast %6 : vector<1x8xf32> to vector<128x8xf32>
    %8 = arith.addf %5, %7 : vector<128x8xf32>
    %cst = arith.constant 0.000000e+00 : f32
    %9 = vector.broadcast %cst : f32 to vector<128x8xf32>
    %10 = arith.maximumf %8, %9 : vector<128x8xf32>
    %11 = vector.broadcast %0 : vector<128x1xf32> to vector<128x8xf32>
    %12 = arith.mulf %10, %11 : vector<128x8xf32>
    %cst_8 = arith.constant 0.000000e+00 : f32
    %13 = vector.broadcast %cst_8 : f32 to vector<32x8xf32>
    %c0_9 = arith.constant 0 : index
    %c0_10 = arith.constant 0 : index
    %14 = vector.load %arg8[%c0_9, %c0_10] : memref<176x8xf32, #tpu.memory_space<vmem>>, vector<32x8xf32>
    tpu.vector_store %arg8[%c0_9, %c0_10], %13 {strides = array<i32>} : memref<176x8xf32, #tpu.memory_space<vmem>>, vector<32x8xf32>,
    %cst_11 = arith.constant 0.000000e+00 : f32
    %15 = vector.broadcast %cst_11 : f32 to vector<32x8xf32>
    %c144 = arith.constant 144 : index
    %c0_12 = arith.constant 0 : index
    %16 = vector.load %arg8[%c144, %c0_12] : memref<176x8xf32, #tpu.memory_space<vmem>>, vector<32x8xf32>
    tpu.vector_store %arg8[%c144, %c0_12], %15 {strides = array<i32>} : memref<176x8xf32, #tpu.memory_space<vmem>>, vector<32x8xf32>,
    %c17 = arith.constant 17 : index
    %c0_13 = arith.constant 0 : index
    %17 = vector.load %arg8[%c17, %c0_13] : memref<176x8xf32, #tpu.memory_space<vmem>>, vector<128x8xf32>
    tpu.vector_store %arg8[%c17, %c0_13], %12 {strides = array<i32>} : memref<176x8xf32, #tpu.memory_space<vmem>>, vector<128x8xf32>,
    %cst_14 = arith.constant 0.000000e+00 : f32
    %18 = vector.broadcast %cst_14 : f32 to vector<128x8xf32>
    %c0_15 = arith.constant 0 : index
    %c0_16 = arith.constant 0 : index
    %19 = vector.load %arg8[%c0_15, %c0_16] : memref<176x8xf32, #tpu.memory_space<vmem>>, vector<128x8xf32>
    %c0_17 = arith.constant 0 : index
    %c0_18 = arith.constant 0 : index
    %c0_19 = arith.constant 0 : index
    %20 = vector.load %arg2[%c0_17, %c0_18, %c0_19] : memref<9x8x8xf32, #tpu.memory_space<vmem>>, vector<1x8x8xf32>
    %21 = vector.shape_cast %20 : vector<1x8x8xf32> to vector<8x8xf32>
    %cst_20 = arith.constant dense<0.000000e+00> : vector<128x8xf32>
    %22 = tpu.matmul %19, %21, %cst_20 {dimension_numbers = #tpu.dot_dimension_numbers<[1], [0], [0], [1], [0, 0, 1, 1], [], []>} : vector<128x8xf32>, vector<8x8xf32>, vector<128x8xf32> -> vector<128x8xf32>
    %23 = arith.addf %18, %22 : vector<128x8xf32>
    %c1 = arith.constant 1 : index
    %c0_21 = arith.constant 0 : index
    %24 = vector.load %arg8[%c1, %c0_21] : memref<176x8xf32, #tpu.memory_space<vmem>>, vector<128x8xf32>
    %c1_22 = arith.constant 1 : index
    %c0_23 = arith.constant 0 : index
    %c0_24 = arith.constant 0 : index
    %25 = vector.load %arg2[%c1_22, %c0_23, %c0_24] : memref<9x8x8xf32, #tpu.memory_space<vmem>>, vector<1x8x8xf32>
    %26 = vector.shape_cast %25 : vector<1x8x8xf32> to vector<8x8xf32>
    %cst_25 = arith.constant dense<0.000000e+00> : vector<128x8xf32>
    %27 = tpu.matmul %24, %26, %cst_25 {dimension_numbers = #tpu.dot_dimension_numbers<[1], [0], [0], [1], [0, 0, 1, 1], [], []>} : vector<128x8xf32>, vector<8x8xf32>, vector<128x8xf32> -> vector<128x8xf32>
    %28 = arith.addf %23, %27 : vector<128x8xf32>
    %c2 = arith.constant 2 : index
    %c0_26 = arith.constant 0 : index
    %29 = vector.load %arg8[%c2, %c0_26] : memref<176x8xf32, #tpu.memory_space<vmem>>, vector<128x8xf32>
    %c2_27 = arith.constant 2 : index
    %c0_28 = arith.constant 0 : index
    %c0_29 = arith.constant 0 : index
    %30 = vector.load %arg2[%c2_27, %c0_28, %c0_29] : memref<9x8x8xf32, #tpu.memory_space<vmem>>, vector<1x8x8xf32>
    %31 = vector.shape_cast %30 : vector<1x8x8xf32> to vector<8x8xf32>
    %cst_30 = arith.constant dense<0.000000e+00> : vector<128x8xf32>
    %32 = tpu.matmul %29, %31, %cst_30 {dimension_numbers = #tpu.dot_dimension_numbers<[1], [0], [0], [1], [0, 0, 1, 1], [], []>} : vector<128x8xf32>, vector<8x8xf32>, vector<128x8xf32> -> vector<128x8xf32>
    %33 = arith.addf %28, %32 : vector<128x8xf32>
    %c16 = arith.constant 16 : index
    %c0_31 = arith.constant 0 : index
    %34 = vector.load %arg8[%c16, %c0_31] : memref<176x8xf32, #tpu.memory_space<vmem>>, vector<128x8xf32>
    %c3 = arith.constant 3 : index
    %c0_32 = arith.constant 0 : index
    %c0_33 = arith.constant 0 : index
    %35 = vector.load %arg2[%c3, %c0_32, %c0_33] : memref<9x8x8xf32, #tpu.memory_space<vmem>>, vector<1x8x8xf32>
    %36 = vector.shape_cast %35 : vector<1x8x8xf32> to vector<8x8xf32>
    %cst_34 = arith.constant dense<0.000000e+00> : vector<128x8xf32>
    %37 = tpu.matmul %34, %36, %cst_34 {dimension_numbers = #tpu.dot_dimension_numbers<[1], [0], [0], [1], [0, 0, 1, 1], [], []>} : vector<128x8xf32>, vector<8x8xf32>, vector<128x8xf32> -> vector<128x8xf32>
    %38 = arith.addf %33, %37 : vector<128x8xf32>
    %c17_35 = arith.constant 17 : index
    %c0_36 = arith.constant 0 : index
    %39 = vector.load %arg8[%c17_35, %c0_36] : memref<176x8xf32, #tpu.memory_space<vmem>>, vector<128x8xf32>
    %c4 = arith.constant 4 : index
    %c0_37 = arith.constant 0 : index
    %c0_38 = arith.constant 0 : index
    %40 = vector.load %arg2[%c4, %c0_37, %c0_38] : memref<9x8x8xf32, #tpu.memory_space<vmem>>, vector<1x8x8xf32>
    %41 = vector.shape_cast %40 : vector<1x8x8xf32> to vector<8x8xf32>
    %cst_39 = arith.constant dense<0.000000e+00> : vector<128x8xf32>
    %42 = tpu.matmul %39, %41, %cst_39 {dimension_numbers = #tpu.dot_dimension_numbers<[1], [0], [0], [1], [0, 0, 1, 1], [], []>} : vector<128x8xf32>, vector<8x8xf32>, vector<128x8xf32> -> vector<128x8xf32>
    %43 = arith.addf %38, %42 : vector<128x8xf32>
    %c18 = arith.constant 18 : index
    %c0_40 = arith.constant 0 : index
    %44 = vector.load %arg8[%c18, %c0_40] : memref<176x8xf32, #tpu.memory_space<vmem>>, vector<128x8xf32>
    %c5 = arith.constant 5 : index
    %c0_41 = arith.constant 0 : index
    %c0_42 = arith.constant 0 : index
    %45 = vector.load %arg2[%c5, %c0_41, %c0_42] : memref<9x8x8xf32, #tpu.memory_space<vmem>>, vector<1x8x8xf32>
    %46 = vector.shape_cast %45 : vector<1x8x8xf32> to vector<8x8xf32>
    %cst_43 = arith.constant dense<0.000000e+00> : vector<128x8xf32>
    %47 = tpu.matmul %44, %46, %cst_43 {dimension_numbers = #tpu.dot_dimension_numbers<[1], [0], [0], [1], [0, 0, 1, 1], [], []>} : vector<128x8xf32>, vector<8x8xf32>, vector<128x8xf32> -> vector<128x8xf32>
    %48 = arith.addf %43, %47 : vector<128x8xf32>
    %c32 = arith.constant 32 : index
    %c0_44 = arith.constant 0 : index
    %49 = vector.load %arg8[%c32, %c0_44] : memref<176x8xf32, #tpu.memory_space<vmem>>, vector<128x8xf32>
    %c6 = arith.constant 6 : index
    %c0_45 = arith.constant 0 : index
    %c0_46 = arith.constant 0 : index
    %50 = vector.load %arg2[%c6, %c0_45, %c0_46] : memref<9x8x8xf32, #tpu.memory_space<vmem>>, vector<1x8x8xf32>
    %51 = vector.shape_cast %50 : vector<1x8x8xf32> to vector<8x8xf32>
    %cst_47 = arith.constant dense<0.000000e+00> : vector<128x8xf32>
    %52 = tpu.matmul %49, %51, %cst_47 {dimension_numbers = #tpu.dot_dimension_numbers<[1], [0], [0], [1], [0, 0, 1, 1], [], []>} : vector<128x8xf32>, vector<8x8xf32>, vector<128x8xf32> -> vector<128x8xf32>
    %53 = arith.addf %48, %52 : vector<128x8xf32>
    %c33 = arith.constant 33 : index
    %c0_48 = arith.constant 0 : index
    %54 = vector.load %arg8[%c33, %c0_48] : memref<176x8xf32, #tpu.memory_space<vmem>>, vector<128x8xf32>
    %c7 = arith.constant 7 : index
    %c0_49 = arith.constant 0 : index
    %c0_50 = arith.constant 0 : index
    %55 = vector.load %arg2[%c7, %c0_49, %c0_50] : memref<9x8x8xf32, #tpu.memory_space<vmem>>, vector<1x8x8xf32>
    %56 = vector.shape_cast %55 : vector<1x8x8xf32> to vector<8x8xf32>
    %cst_51 = arith.constant dense<0.000000e+00> : vector<128x8xf32>
    %57 = tpu.matmul %54, %56, %cst_51 {dimension_numbers = #tpu.dot_dimension_numbers<[1], [0], [0], [1], [0, 0, 1, 1], [], []>} : vector<128x8xf32>, vector<8x8xf32>, vector<128x8xf32> -> vector<128x8xf32>
    %58 = arith.addf %53, %57 : vector<128x8xf32>
    %c34 = arith.constant 34 : index
    %c0_52 = arith.constant 0 : index
    %59 = vector.load %arg8[%c34, %c0_52] : memref<176x8xf32, #tpu.memory_space<vmem>>, vector<128x8xf32>
    %c8 = arith.constant 8 : index
    %c0_53 = arith.constant 0 : index
    %c0_54 = arith.constant 0 : index
    %60 = vector.load %arg2[%c8, %c0_53, %c0_54] : memref<9x8x8xf32, #tpu.memory_space<vmem>>, vector<1x8x8xf32>
    %61 = vector.shape_cast %60 : vector<1x8x8xf32> to vector<8x8xf32>
    %cst_55 = arith.constant dense<0.000000e+00> : vector<128x8xf32>
    %62 = tpu.matmul %59, %61, %cst_55 {dimension_numbers = #tpu.dot_dimension_numbers<[1], [0], [0], [1], [0, 0, 1, 1], [], []>} : vector<128x8xf32>, vector<8x8xf32>, vector<128x8xf32> -> vector<128x8xf32>
    %63 = arith.addf %58, %62 : vector<128x8xf32>
    %64 = vector.broadcast %0 : vector<128x1xf32> to vector<128x8xf32>
    %65 = arith.mulf %63, %64 : vector<128x8xf32>
    %c0_56 = arith.constant 0 : index
    %c0_57 = arith.constant 0 : index
    %c0_58 = arith.constant 0 : index
    %66 = vector.load %arg6[%c0_56, %c0_57, %c0_58] : memref<1x128x8xf32, #tpu.memory_space<vmem>>, vector<1x128x8xf32>
    %67 = vector.shape_cast %66 : vector<1x128x8xf32> to vector<128x8xf32>
    %68 = vector.shape_cast %65 : vector<128x8xf32> to vector<1x128x8xf32>
    tpu.vector_store %arg6[%c0_56, %c0_57, %c0_58], %68 {strides = array<i32>} : memref<1x128x8xf32, #tpu.memory_space<vmem>>, vector<1x128x8xf32>,
    %cst_59 = arith.constant dense<0.000000e+00> : vector<8xf32>
    %69 = vector.multi_reduction <add>, %65, %cst_59 [0] : vector<128x8xf32> to vector<8xf32>
    %70 = vector.shape_cast %69 : vector<8xf32> to vector<1x8xf32>
    %c0_60 = arith.constant 0 : index
    %c0_61 = arith.constant 0 : index
    %c0_62 = arith.constant 0 : index
    %71 = vector.load %arg7[%c0_60, %c0_61, %c0_62] : memref<1x2x8xf32, #tpu.memory_space<vmem>>, vector<1x1x8xf32>
    %72 = vector.shape_cast %71 : vector<1x1x8xf32> to vector<1x8xf32>
    %73 = vector.shape_cast %70 : vector<1x8xf32> to vector<1x1x8xf32>
    tpu.vector_store %arg7[%c0_60, %c0_61, %c0_62], %73 {strides = array<i32>} : memref<1x2x8xf32, #tpu.memory_space<vmem>>, vector<1x1x8xf32>,
    %74 = arith.mulf %65, %65 : vector<128x8xf32>
    %cst_63 = arith.constant dense<0.000000e+00> : vector<8xf32>
    %75 = vector.multi_reduction <add>, %74, %cst_63 [0] : vector<128x8xf32> to vector<8xf32>
    %76 = vector.shape_cast %75 : vector<8xf32> to vector<1x8xf32>
    %c0_64 = arith.constant 0 : index
    %c1_65 = arith.constant 1 : index
    %c0_66 = arith.constant 0 : index
    %77 = vector.load %arg7[%c0_64, %c1_65, %c0_66] : memref<1x2x8xf32, #tpu.memory_space<vmem>>, vector<1x1x8xf32>
    %78 = vector.shape_cast %77 : vector<1x1x8xf32> to vector<1x8xf32>
    %79 = vector.shape_cast %76 : vector<1x8xf32> to vector<1x1x8xf32>
    tpu.vector_store %arg7[%c0_64, %c1_65, %c0_66], %79 {strides = array<i32>} : memref<1x2x8xf32, #tpu.memory_space<vmem>>, vector<1x1x8xf32>,
    return
  }
  func.func @transform_0(%arg0: i32) -> (i32, i32, i32) {
    %c0_i32 = arith.constant 0 : i32
    %c0_i32_0 = arith.constant 0 : i32
    %c0_i32_1 = arith.constant 0 : i32
    return %arg0, %c0_i32, %c0_i32_0 : i32, i32, i32
  }
  func.func @transform_1(%arg0: i32) -> (i32, i32, i32) {
    %c0_i32 = arith.constant 0 : i32
    %c0_i32_0 = arith.constant 0 : i32
    %c0_i32_1 = arith.constant 0 : i32
    %c0_i32_2 = arith.constant 0 : i32
    return %c0_i32, %c0_i32_0, %c0_i32_1 : i32, i32, i32
  }
  func.func @transform_2(%arg0: i32) -> (i32, i32) {
    %c0_i32 = arith.constant 0 : i32
    %c0_i32_0 = arith.constant 0 : i32
    %c0_i32_1 = arith.constant 0 : i32
    return %c0_i32, %c0_i32_0 : i32, i32
  }
  func.func @transform_3(%arg0: i32) -> (i32, i32) {
    %c0_i32 = arith.constant 0 : i32
    %c0_i32_0 = arith.constant 0 : i32
    %c0_i32_1 = arith.constant 0 : i32
    return %c0_i32, %c0_i32_0 : i32, i32
  }
  func.func @transform_4(%arg0: i32) -> (i32, i32) {
    %c0_i32 = arith.constant 0 : i32
    %c0_i32_0 = arith.constant 0 : i32
    %c0_i32_1 = arith.constant 0 : i32
    return %c0_i32, %c0_i32_0 : i32, i32
  }
  func.func @transform_5(%arg0: i32) -> (i32, i32, i32) {
    %c0_i32 = arith.constant 0 : i32
    %c0_i32_0 = arith.constant 0 : i32
    %c0_i32_1 = arith.constant 0 : i32
    return %arg0, %c0_i32, %c0_i32_0 : i32, i32, i32
  }
  func.func @transform_6(%arg0: i32) -> (i32, i32, i32) {
    %c0_i32 = arith.constant 0 : i32
    %c0_i32_0 = arith.constant 0 : i32
    %c0_i32_1 = arith.constant 0 : i32
    return %arg0, %c0_i32, %c0_i32_0 : i32, i32, i32
  }
}

</mosaic_0001>

<bundles_post_ra>
// kernel: down_forward.5
= control target key start
LH: loop header
LB: loop body
LE: loop exit
PB: predicated region body
PF: predicated region fallthrough
CT: control target
= control target key end

     0   :  { %s326_s12 = smov 0   ;;  %s357_s0 = inlined_call_operand.vmem [shape: f32[2,8,16,8], index: 0, kind: input, shape index: {}]   ;;  %s358_s1 = inlined_call_operand.vmem [shape: f32[1,1,8], index: 1, kind: input, shape index: {}]   ;;  %s359_s2 = inlined_call_operand.vmem [shape: f32[1,1,8], index: 2, kind: input, shape index: {}]   ;;  %s360_s3 = inlined_call_operand.vmem [shape: f32[2,8,8,8], index: 3, kind: output, shape index: {}]  }
   0x1 LB: > { %s275_s13 = sadd.s32 4294967295, %s304_s12   ;;  %p279_p0 = scmp.ge.s32.totalorder %s304_s12, 1  ;;  %s304_s12 = sphi %s326_s12, %s13_s12  }
   0x2   : > { %p137_p1 = scmp.lt.s32.totalorder %s304_s12, 3 }
   0x4   : > { %p138_p2 = pnand %p279_p0, %p137_p1 }
   0x5   : > { %p161_p3 = scmp.lt.s32.totalorder (!%p138_p2), %s275_s13, 1 }
   0x6   : > { %141 = sbr.rel (%p138_p2) target bundleno = 29 (0x1d), region = 32 }
   0xb   : > { %s362_s13 = smov (!%p161_p3, %s275_s13), 1  ;;  %v296_v0 = vld [vmem:[%s358_s1] ss:$0 sm:$0xff]  ;;  %vm211_vm0 = vcmask 64512  }
   0xc   : > { %s286_s16 = sshll.u32 %s362_s13, 7  ;;  %v297_v1 = vld [vmem:[%s359_s2] ss:$0 sm:$0xff]  ;;  %s287_s22 = sshll.u32 %s362_s13, 6 }
   0xd   : > { %s165_s19 = scalar_lea.vmem %s357_s0, %s286_s16  ;;  %s170_s25 = scalar_lea.vmem %s360_s3, %s287_s22 }
   0xe   : > { %v171_v2 = vld [vmem:[%s165_s19] sm:$0xff]  ;;  %v172_v3 = vld [vmem:[%s165_s19 + $0x10] sm:$0xff] }
   0xf   : > { %v173_v4 = vld [vmem:[%s165_s19 + $0x20] sm:$0xff]  ;;  %v183_v5 = vmul.f32 %v296_v0, %v171_v2  ;;  %v184_v6 = vmul.f32 %v296_v0, %v172_v3  ;;  %v174_v8 = vld [vmem:[%s165_s19 + $0x30] sm:$0xff] }
  0x10   : > { %v185_v7 = vmul.f32 %v296_v0, %v173_v4  ;;  %v175_v9 = vld [vmem:[%s165_s19 + $0x40] sm:$0xff]  ;;  %v176_v10 = vld [vmem:[%s165_s19 + $0x50] sm:$0xff]  ;;  %v186_v11 = vmul.f32 %v296_v0, %v174_v8 }
  0x11   : > { %v187_v12 = vmul.f32 %v296_v0, %v175_v9  ;;  %v188_v13 = vmul.f32 %v296_v0, %v176_v10  ;;  %v177_v14 = vld [vmem:[%s165_s19 + $0x60] sm:$0xff]  ;;  %v178_v15 = vld [vmem:[%s165_s19 + $0x70] sm:$0xff]  ;;  %v195_v16 = vadd.f32 %v297_v1, %v183_v5  ;;  %v196_v17 = vadd.f32 %v297_v1, %v184_v6 }
  0x12   : > { %v197_v18 = vadd.f32 %v297_v1, %v185_v7  ;;  %v189_v19 = vmul.f32 %v296_v0, %v177_v14  ;;  %v198_v20 = vadd.f32 %v297_v1, %v186_v11  ;;  %v190_v23 = vmul.f32 %v296_v0, %v178_v15 }
  0x13   : > { %v199_v21 = vadd.f32 %v297_v1, %v187_v12  ;;  %v200_v22 = vadd.f32 %v297_v1, %v188_v13  ;;  %v203_v24 = vmax.f32 %v195_v16, 0.0  ;;  %v204_v25 = vmax.f32 %v196_v17, 0.0 }
  0x14   : > { %v205_v26 = vmax.f32 %v197_v18, 0.0  ;;  %v201_v27 = vadd.f32 %v297_v1, %v189_v19  ;;  %v206_v28 = vmax.f32 %v198_v20, 0.0  ;;  %v202_v29 = vadd.f32 %v297_v1, %v190_v23 }
  0x15   : > { %212 = vst.msk [vmem:[%s170_s25] sm:$0xff] %vm211_vm0, %v203_v24  ;;  %v207_v30 = vmax.f32 %v199_v21, 0.0  ;;  %v208_v31 = vmax.f32 %v200_v22, 0.0 }
  0x16   : > { %213 = vst.msk [vmem:[%s170_s25 + $0x8] sm:$0xff] %vm211_vm0, %v204_v25  ;;  %v209_v32 = vmax.f32 %v201_v27, 0.0  ;;  %v210_v33 = vmax.f32 %v202_v29, 0.0 }
  0x17   : > { %214 = vst.msk [vmem:[%s170_s25 + $0x10] sm:$0xff] %vm211_vm0, %v205_v26 }
  0x18   : > { %215 = vst.msk [vmem:[%s170_s25 + $0x18] sm:$0xff] %vm211_vm0, %v206_v28 }
  0x19   : > { %216 = vst.msk [vmem:[%s170_s25 + $0x20] sm:$0xff] %vm211_vm0, %v207_v30 }
  0x1a   : > { %217 = vst.msk [vmem:[%s170_s25 + $0x28] sm:$0xff] %vm211_vm0, %v208_v31 }
  0x1b   : > { %218 = vst.msk [vmem:[%s170_s25 + $0x30] sm:$0xff] %vm211_vm0, %v209_v32 }
  0x1c   : > { %219 = vst.msk [vmem:[%s170_s25 + $0x38] sm:$0xff] %vm211_vm0, %v210_v33 }
  0x1d PF: > { %s13_s12 = sadd.s32 1, %s304_s12  }
  0x1e   : > { %p10_p4 = scmp.ge.s32.totalorder %s13_s12, 4  }
  0x20   :  { %12 = sbr.rel (!%p10_p4) target bundleno = 1 (0x1), region = 62 }

// kernel: down_forward.3
= control target key start
LH: loop header
LB: loop body
LE: loop exit
PB: predicated region body
PF: predicated region fallthrough
CT: control target
= control target key end

     0   :  { %s2191_s15 = smov 0   ;;  %s2865_s0 = inlined_call_operand.vmem [shape: f32[2,8,2,8,8], index: 0, kind: input, shape index: {}]   ;;  %s2866_s1 = inlined_call_operand.vmem [shape: f32[9,4,8], index: 1, kind: input, shape index: {}]   ;;  %s2867_s2 = inlined_call_operand.vmem [shape: f32[128,1], index: 2, kind: input, shape index: {}]   ;;  %s2868_s3 = inlined_call_operand.vmem [shape: f32[2,128,8], index: 3, kind: output, shape index: {0}]   ;;  %s2869_s4 = inlined_call_operand.vmem [shape: f32[2,2,8], index: 4, kind: output, shape index: {1}]  }
   0x1 LB: > { %s1963_s16 = sadd.s32 4294967295, %s2161_s15   ;;  %p1967_p0 = scmp.ge.s32.totalorder %s2161_s15, 1  ;;  %s2161_s15 = sphi %s2191_s15, %s15_s15  }
   0x2   : > { %p165_p1 = scmp.lt.s32.totalorder %s2161_s15, 3 }
   0x4   : > { %p166_p2 = pnand %p1967_p0, %p165_p1 }
   0x6   : > { %169 = sbr.rel (%p166_p2) target bundleno = 592 (0x250), region = 32 }
   0xb   : > { %p195_p3 = scmp.lt.s32.totalorder %s1963_s16, 1  ;;  %s2163_s21 = smov 124   ;;  %vm297_vm0 = vcmask 1040384   ;;  %v1973_v27 = vld [vmem:[%s2866_s1 + $0x4] sm:$0xf]  ;;  %vm420_vm1 = vcmask 1043456  }
   0xc   : > { %vm314_vm2 = vcmask 31744   ;;  %2138 = vmatpush.msk.msra.mxu1 %vm420_vm1, %v1973_v27  ;;  %2139 = vmatpush.msk.msra.mxu2 %vm420_vm1, %v1973_v27  ;;  %v2164_v31 = vmov 0.0   ;;  %v2008_v36 = vld [vmem:[%s2866_s1 + $0x8] sm:$0xf]  ;;  %v2026_v37 = vld [vmem:[%s2866_s1 + $0xc] sm:$0xf] }
   0xd   : > { %s2878_s16 = smov (!%p195_p3, %s1963_s16), 1  ;;  %1974 = vmatpush.msk.msra.mxu0 %vm420_vm1, %v1973_v27  ;;  %2140 = vmatpush.msk.msra.mxu3 %vm420_vm1, %v1973_v27  ;;  %315 = vst.msk [vmem:[#allocation2] sm:$0xff] %vm314_vm2, %v2164_v31  ;;  %v353_v38 = vld [vmem:[%s2866_s1] sm:$0xf]  ;;  %v2044_v43 = vld [vmem:[%s2866_s1 + $0x10] sm:$0xf] }
   0xe   : > { %s2136_s17 = sshll.u32 %s2878_s16, 7  ;;  %316 = vst.msk [vmem:[#allocation2 + $0x8] sm:$0xff] %vm314_vm2, %v2164_v31  ;;  %2009 = vmatpush.msk.msrb.mxu2 %vm420_vm1, %v2008_v36  ;;  %1991 = vmatpush.msk.msrb.mxu1 %vm420_vm1, %v353_v38  ;;  %vm1767_vm3 = vcmask 64512   ;;  %vm1821_vm4 = vcmask 57344  }
   0xf   : > { %s199_s20 = scalar_lea.vmem %s2865_s0, %s2136_s17  ;;  %317 = vst.msk [vmem:[#allocation2 + $0x90] sm:$0xff] %vm314_vm2, %v2164_v31  ;;  %2027 = vmatpush.msk.msrb.mxu3 %vm420_vm1, %v2026_v37  ;;  %2045 = vmatpush.msk.msrb.mxu0 %vm420_vm1, %v2044_v43  ;;  %s2777_s28 = scalar_lea.vmem %s2868_s3, %s2136_s17 }
  0x10   : > { %v215_v0 = vld [vmem:[%s199_s20 + $0x30] sm:$0xff]  ;;  %v216_v1 = vld [vmem:[%s199_s20 + $0x38] sm:$0xff]  ;;  %v221_v6 = vld [vmem:[%s199_s20 + $0x60] sm:$0xff]  ;;  %318 = vst.msk [vmem:[#allocation2 + $0x98] sm:$0xff] %vm314_vm2, %v2164_v31  ;;  %s1972_s17 = sshll.u32 %s2878_s16, 1 }
  0x11   : > { %v211_v2 = vld [vmem:[%s199_s20 + $0x10] sm:$0xff]  ;;  %v2207_v3 = vmax.f32 %v215_v0, %v216_v1  ;;  %v212_v4 = vld [vmem:[%s199_s20 + $0x18] sm:$0xff]  ;;  %v222_v7 = vld [vmem:[%s199_s20 + $0x68] sm:$0xff]  ;;  %319 = vst.msk [vmem:[#allocation2 + $0xa0] sm:$0xff] %vm314_vm2, %v2164_v31  ;;  %s208_s5 = scalar_lea.vmem %s2869_s4, %s1972_s17 }
  0x12   : > { %v2209_v5 = vmax.f32 %v211_v2, %v212_v4  ;;  %v219_v8 = vld [vmem:[%s199_s20 + $0x50] sm:$0xff]  ;;  %v220_v9 = vld [vmem:[%s199_s20 + $0x58] sm:$0xff]  ;;  %v231_v10 = vmax.f32 %v221_v6, %v222_v7  ;;  %v217_v11 = vld [vmem:[%s199_s20 + $0x40] sm:$0xff] }
  0x13   : > { %247 = vrot.lane.b32.xlu0 %v2207_v3, %s2163_s21  ;;  %v218_v12 = vld [vmem:[%s199_s20 + $0x48] sm:$0xff]  ;;  %v2213_v13 = vmax.f32 %v219_v8, %v220_v9  ;;  %v213_v14 = vld [vmem:[%s199_s20 + $0x20] sm:$0xff]  ;;  %v223_v20 = vld [vmem:[%s199_s20 + $0x70] sm:$0xff] }
  0x14   : > { %243 = vrot.lane.b32.xlu1 %v2209_v5, %s2163_s21  ;;  %253 = vrot.lane.b32.xlu2 %v231_v10, %s2163_s21  ;;  %v214_v15 = vld [vmem:[%s199_s20 + $0x28] sm:$0xff]  ;;  %v2215_v16 = vmax.f32 %v217_v11, %v218_v12  ;;  %v209_v18 = vld [vmem:[%s199_s20] sm:$0xff] }
  0x15   : > { %v227_v17 = vmax.f32 %v213_v14, %v214_v15  ;;  %v210_v19 = vld [vmem:[%s199_s20 + $0x8] sm:$0xff]  ;;  %v224_v21 = vld [vmem:[%s199_s20 + $0x78] sm:$0xff]  ;;  %v2062_v14 = vld [vmem:[%s2866_s1 + $0x14] sm:$0xf] }
  0x16   : > { %v2219_v22 = vmax.f32 %v209_v18, %v210_v19  ;;  %v2221_v23 = vmax.f32 %v223_v20, %v224_v21  ;;  %v354_v39 = vld [vmem:[#allocation2 + $0x1] sm:$0xff]  ;;  %v2080_v2 = vld [vmem:[%s2866_s1 + $0x18] sm:$0xf] }
  0x17   : > { %1975 = vmatmul.msk.f32.vlgmr.msra.gmra.mxu0 %vm314_vm2, %v354_v39  ;;  %v2116_v19 = vld [vmem:[%s2866_s1 + $0x20] sm:$0xf] }
  0x18   : > { %2117 = vmatpush.msk.msra.mxu0 %vm420_vm1, %v2116_v19  ;;  %v337_v27 = vld [vmem:[#allocation2] sm:$0xff] }
  0x1b   : > { %251 = vrot.lane.b32.xlu0 %v2213_v13, %s2163_s21 }
  0x1c   : > { %249 = vrot.lane.b32.xlu1 %v2215_v16, %s2163_s21  ;;  %245 = vrot.lane.b32.xlu2 %v227_v17, %s2163_s21 }
  0x23   : > { %241 = vrot.lane.b32.xlu0 %v2219_v22, %s2163_s21 }
  0x24   : > { %255 = vrot.lane.b32.xlu1 %v2221_v23, %s2163_s21 }
  0x6e   : > { %v254_v24 = vpop.permute.xlu2 %253 }
  0x6f   : > { %v271_v25 = vmax.f32 %v231_v10, %v254_v24 }
  0x71   : > { %v287_v26 = vrot.slane %v271_v25, 7  ;;  %v605_v25 = vld [vmem:[#allocation2 + $0x2] sm:$0xff] }
  0x73   : > { %v304_v28 = vsel %vm297_vm0, 0.0, %v287_v26  ;;  %v312_v29 = vsel %vm297_vm0, %v287_v26, 0.0 }
  0x74   : > { %333 = vst.msk [vmem:[#allocation2 + $0x70] sm:$0xff] %vm314_vm2, %v304_v28  ;;  %v338_v28 = vld [vmem:[#allocation2 + $0x8] sm:$0xff] }
  0x75   : > { %334 = vst.msk [vmem:[#allocation2 + $0x78] sm:$0xff] %vm314_vm2, %v312_v29 }
  0x76   : > { %v246_v30 = vpop.permute.xlu2 %245 }
  0x77   : > { %v267_v32 = vmax.f32 %v227_v17, %v246_v30 }
  0x79   : > { %v283_v33 = vrot.slane %v267_v32, 7 }
  0x7b   : > { %v300_v34 = vsel %vm297_vm0, 0.0, %v283_v33  ;;  %v308_v35 = vsel %vm297_vm0, %v283_v33, 0.0 }
  0x7c   : > { %325 = vst.msk [vmem:[#allocation2 + $0x30] sm:$0xff] %vm314_vm2, %v300_v34  ;;  %v2342_v21 = vld [vmem:[#allocation2 + $0x71] sm:$0xff] }
  0x7d   : > { %326 = vst.msk [vmem:[#allocation2 + $0x38] sm:$0xff] %vm314_vm2, %v308_v35 }
  0x83   : > { %v2395_v37 = vld [vmem:[#allocation2 + $0x30] sm:$0xff] }
  0x84   : > { %v2407_v39 = vld [vmem:[#allocation2 + $0x38] sm:$0xff] }
  0x85   : > { %v248_v40 = vpop.permute.xlu0 %247 }
  0x86   : > { %v268_v41 = vmax.f32 %v2207_v3, %v248_v40  ;;  %v244_v42 = vpop.permute.xlu1 %243  ;;  %v2411_v40 = vld [vmem:[#allocation2 + $0x32] sm:$0xff] }
  0x87   : > { %v266_v44 = vmax.f32 %v2209_v5, %v244_v42 }
  0x88   : > { %v284_v45 = vrot.slane %v268_v41, 7 }
  0x89   : > { %v282_v46 = vrot.slane %v266_v44, 7 }
  0x8a   : > { %v301_v47 = vsel %vm297_vm0, 0.0, %v284_v45  ;;  %v309_v48 = vsel %vm297_vm0, %v284_v45, 0.0 }
  0x8b   : > { %327 = vst.msk [vmem:[#allocation2 + $0x40] sm:$0xff] %vm314_vm2, %v301_v47  ;;  %v299_v49 = vsel %vm297_vm0, 0.0, %v282_v46  ;;  %v307_v50 = vsel %vm297_vm0, %v282_v46, 0.0 }
  0x8c   : > { %328 = vst.msk [vmem:[#allocation2 + $0x48] sm:$0xff] %vm314_vm2, %v309_v48 }
  0x8d   : > { %323 = vst.msk [vmem:[#allocation2 + $0x20] sm:$0xff] %vm314_vm2, %v299_v49  ;;  %v252_v51 = vpop.permute.xlu0 %251 }
  0x8e   : > { %324 = vst.msk [vmem:[#allocation2 + $0x28] sm:$0xff] %vm314_vm2, %v307_v50  ;;  %v270_v52 = vmax.f32 %v2213_v13, %v252_v51  ;;  %v250_v53 = vpop.permute.xlu1 %249  ;;  %v2098_v13 = vld [vmem:[%s2866_s1 + $0x1c] sm:$0xf] }
  0x8f   : > { %v269_v54 = vmax.f32 %v2215_v16, %v250_v53  ;;  %v2325_v16 = vld [vmem:[#allocation2 + $0x31] sm:$0xff] }
  0x90   : > { %v286_v55 = vrot.slane %v270_v52, 7 }
  0x91   : > { %v285_v56 = vrot.slane %v269_v54, 7 }
  0x92   : > { %v303_v57 = vsel %vm297_vm0, 0.0, %v286_v55  ;;  %v311_v58 = vsel %vm297_vm0, %v286_v55, 0.0  ;;  %v2419_v41 = vld [vmem:[#allocation2 + $0x40] sm:$0xff] }
  0x93   : > { %331 = vst.msk [vmem:[#allocation2 + $0x60] sm:$0xff] %vm314_vm2, %v303_v57  ;;  %v302_v59 = vsel %vm297_vm0, 0.0, %v285_v56  ;;  %v310_v60 = vsel %vm297_vm0, %v285_v56, 0.0  ;;  %v2279_v61 = vld [vmem:[#allocation2 + $0x41] sm:$0xff]  ;;  %v2497_v57 = vld [vmem:[#allocation2 + $0x70] sm:$0xff] }
  0x94   : > { %332 = vst.msk [vmem:[#allocation2 + $0x68] sm:$0xff] %vm314_vm2, %v311_v58  ;;  %1983 = vmatmul.msk.f32.vlgmr.msra.gmra.mxu2 %vm314_vm2, %v2279_v61  ;;  %v2372_v33 = vld [vmem:[#allocation2 + $0x20] sm:$0xff]  ;;  %v2431_v43 = vld [vmem:[#allocation2 + $0x48] sm:$0xff]  ;;  %v441_v54 = vpop.f32.mrf.mxu0 }
  0x95   : > { %329 = vst.msk [vmem:[#allocation2 + $0x50] sm:$0xff] %vm314_vm2, %v302_v59  ;;  %v2285_v62 = vld [vmem:[#allocation2 + $0x21] sm:$0xff]  ;;  %v242_v63 = vpop.permute.xlu0 %241  ;;  %2081 = vmatpush.msk.msra.mxu2 %vm420_vm1, %v2080_v2  ;;  %v2309_v12 = vld [vmem:[#allocation2 + $0x29] sm:$0xff]  ;;  %v2519_v2 = vld [vmem:[#allocation2 + $0x72] sm:$0xff] }
  0x96   : > { %330 = vst.msk [vmem:[#allocation2 + $0x58] sm:$0xff] %vm314_vm2, %v310_v60  ;;  %1979 = vmatmul.msk.f32.vlgmr.msra.gmra.mxu1 %vm314_vm2, %v2285_v62  ;;  %v256_v0 = vpop.permute.xlu1 %255  ;;  %v265_v1 = vmax.f32 %v2219_v22, %v242_v63  ;;  %v2383_v35 = vld [vmem:[#allocation2 + $0x28] sm:$0xff]  ;;  %v2423_v42 = vld [vmem:[#allocation2 + $0x3a] sm:$0xff] }
  0x97   : > { %v272_v3 = vmax.f32 %v2221_v23, %v256_v0  ;;  %2063 = vmatpush.msk.msra.mxu1 %vm420_vm1, %v2062_v14  ;;  %v2348_v23 = vld [vmem:[#allocation2 + $0x39] sm:$0xff]  ;;  %v2387_v36 = vld [vmem:[#allocation2 + $0x22] sm:$0xff]  ;;  %v2399_v38 = vld [vmem:[#allocation2 + $0x2a] sm:$0xff] }
  0x98   : > { %v281_v4 = vrot.slane %v265_v1, 7  ;;  %v2435_v44 = vld [vmem:[#allocation2 + $0x42] sm:$0xff]  ;;  %v2515_v1 = vld [vmem:[#allocation2 + $0x78] sm:$0xff] }
  0x99   : > { %v288_v5 = vrot.slane %v272_v3, 7 }
  0x9a   : > { %v298_v6 = vsel %vm297_vm0, 0.0, %v281_v4  ;;  %v306_v9 = vsel %vm297_vm0, %v281_v4, 0.0  ;;  %v2467_v49 = vld [vmem:[#allocation2 + $0x60] sm:$0xff] }
  0x9b   : > { %v305_v7 = vsel %vm297_vm0, 0.0, %v288_v5  ;;  %v313_v8 = vsel %vm297_vm0, %v288_v5, 0.0  ;;  %321 = vst.msk [vmem:[#allocation2 + $0x10] sm:$0xff] %vm314_vm2, %v298_v6  ;;  %v2301_v10 = vld [vmem:[#allocation2 + $0x61] sm:$0xff]  ;;  %v2327_v17 = vld [vmem:[#allocation2 + $0x69] sm:$0xff] }
  0x9c   : > { %335 = vst.msk [vmem:[#allocation2 + $0x80] sm:$0xff] %vm314_vm2, %v305_v7  ;;  %v2304_v11 = vld [vmem:[#allocation2 + $0x49] sm:$0xff]  ;;  %1987 = vmatmul.msk.f32.vlgmr.msra.gmra.mxu3 %vm314_vm2, %v2301_v10 }
  0x9d   : > { %336 = vst.msk [vmem:[#allocation2 + $0x88] sm:$0xff] %vm314_vm2, %v313_v8  ;;  %1984 = vmatmul.msk.f32.gmra.mxu2 %vm314_vm2, %v2304_v11  ;;  %2099 = vmatpush.msk.msra.mxu3 %vm420_vm1, %v2098_v13  ;;  %v2329_v18 = vld [vmem:[#allocation2 + $0x51] sm:$0xff]  ;;  %v2344_v22 = vld [vmem:[#allocation2 + $0x59] sm:$0xff]  ;;  %v2481_v52 = vld [vmem:[#allocation2 + $0x68] sm:$0xff] }
  0x9e   : > { %322 = vst.msk [vmem:[#allocation2 + $0x18] sm:$0xff] %vm314_vm2, %v306_v9  ;;  %1980 = vmatmul.msk.f32.gmra.mxu1 %vm314_vm2, %v2309_v12  ;;  %v2443_v45 = vld [vmem:[#allocation2 + $0x50] sm:$0xff]  ;;  %v2455_v47 = vld [vmem:[#allocation2 + $0x58] sm:$0xff]  ;;  %v2485_v53 = vld [vmem:[#allocation2 + $0x62] sm:$0xff] }
  0x9f   : > { %v2447_v46 = vld [vmem:[#allocation2 + $0x4a] sm:$0xff]  ;;  %v2459_v48 = vld [vmem:[#allocation2 + $0x52] sm:$0xff]  ;;  %v2471_v50 = vld [vmem:[#allocation2 + $0x5a] sm:$0xff] }
  0xa0   : > { %v2501_v58 = vld [vmem:[#allocation2 + $0x6a] sm:$0xff] }
  0xa2   : > { %v355_v15 = vld [vmem:[#allocation2 + $0x9] sm:$0xff] }
  0xa3   : > { %1976 = vmatmul.msk.f32.gmra.mxu0 %vm314_vm2, %v355_v15  ;;  %v2355_v26 = vld [vmem:[#allocation2 + $0x79] sm:$0xff]  ;;  %v755_v29 = vld [vmem:[#allocation2 + $0x10] sm:$0xff] }
  0xa4   : > { %1988 = vmatmul.msk.f32.gmra.mxu3 %vm314_vm2, %v2327_v17  ;;  %v606_v30 = vld [vmem:[#allocation2 + $0xa] sm:$0xff]  ;;  %v2531_v6 = vld [vmem:[#allocation2 + $0x81] sm:$0xff] }
  0xa5   : > { %1985 = vmatmul.msk.f32.gmra.mxu2 %vm314_vm2, %v2329_v18  ;;  %v356_v20 = vld [vmem:[#allocation2 + $0x11] sm:$0xff]  ;;  %v357_v24 = vld [vmem:[#allocation2 + $0x19] sm:$0xff]  ;;  %v2551_v19 = vld [vmem:[#allocation2 + $0x89] sm:$0xff] }
  0xa6   : > { %1981 = vmatmul.msk.f32.gmra.mxu1 %vm314_vm2, %v2325_v16  ;;  %v756_v31 = vld [vmem:[#allocation2 + $0x18] sm:$0xff]  ;;  %v2535_v8 = vld [vmem:[#allocation2 + $0x80] sm:$0xff]  ;;  %2872 = vst [vmem:[#allocation4_spill] sm:$0xff] %v2551_v19 }
  0xa7   : > { %v2366_v32 = vld [vmem:[#allocation2 + $0x12] sm:$0xff]  ;;  %v2376_v34 = vld [vmem:[#allocation2 + $0x1a] sm:$0xff] }
  0xa8   : > { %v2539_v9 = vld [vmem:[#allocation2 + $0x7a] sm:$0xff] }
  0xab   : > { %1977 = vmatmul.msk.f32.gmra.mxu0 %vm314_vm2, %v356_v20 }
  0xac   : > { %1989 = vmatmul.msk.f32.gmra.mxu3 %vm314_vm2, %v2342_v21 }
  0xad   : > { %1986 = vmatmul.msk.f32.gmra.mxu2 %vm314_vm2, %v2344_v22 }
  0xae   : > { %1982 = vmatmul.msk.f32.gmra.mxu1 %vm314_vm2, %v2348_v23 }
  0xb3   : > { %1978 = vmatmul.msk.f32.gmra.mxu0 %vm314_vm2, %v357_v24 }
  0xb4   : > { %1990 = vmatmul.msk.f32.gmra.mxu3 %vm314_vm2, %v2355_v26 }
  0xb5   : > { %2010 = vmatmul.msk.f32.vlgmr.msrb.gmra.mxu2 %vm314_vm2, %v605_v25 }
  0xb6   : > { %1992 = vmatmul.msk.f32.vlgmr.msrb.gmra.mxu1 %vm314_vm2, %v337_v27 }
  0xbb   : > { %2046 = vmatmul.msk.f32.vlgmr.msrb.gmra.mxu0 %vm314_vm2, %v356_v20 }
  0xbc   : > { %2028 = vmatmul.msk.f32.vlgmr.msrb.gmra.mxu3 %vm314_vm2, %v755_v29 }
  0xbd   : > { %2011 = vmatmul.msk.f32.gmra.mxu2 %vm314_vm2, %v606_v30 }
  0xbe   : > { %1993 = vmatmul.msk.f32.gmra.mxu1 %vm314_vm2, %v338_v28 }
  0xc3   : > { %2047 = vmatmul.msk.f32.gmra.mxu0 %vm314_vm2, %v357_v24  ;;  %v2553_v24 = vld [vmem:[#allocation2 + $0x88] sm:$0xff] }
  0xc4   : > { %2029 = vmatmul.msk.f32.gmra.mxu3 %vm314_vm2, %v756_v31 }
  0xc5   : > { %2012 = vmatmul.msk.f32.gmra.mxu2 %vm314_vm2, %v2366_v32 }
  0xc6   : > { %1994 = vmatmul.msk.f32.gmra.mxu1 %vm314_vm2, %v755_v29 }
  0xcb   : > { %2048 = vmatmul.msk.f32.gmra.mxu0 %vm314_vm2, %v2285_v62 }
  0xcc   : > { %2030 = vmatmul.msk.f32.gmra.mxu3 %vm314_vm2, %v2372_v33 }
  0xcd   : > { %2013 = vmatmul.msk.f32.gmra.mxu2 %vm314_vm2, %v2376_v34 }
  0xce   : > { %1995 = vmatmul.msk.f32.gmra.mxu1 %vm314_vm2, %v756_v31  ;;  %v1656_v31 = vld [vmem:[%s2867_s2 + $0x8] sm:$0xff] }
  0xd3   : > { %2049 = vmatmul.msk.f32.gmra.mxu0 %vm314_vm2, %v2309_v12 }
  0xd4   : > { %2031 = vmatmul.msk.f32.gmra.mxu3 %vm314_vm2, %v2383_v35 }
  0xd5   : > { %2014 = vmatmul.msk.f32.gmra.mxu2 %vm314_vm2, %v2387_v36 }
  0xd6   : > { %1996 = vmatmul.msk.f32.gmra.mxu1 %vm314_vm2, %v2372_v33 }
  0xdb   : > { %2050 = vmatmul.msk.f32.gmra.mxu0 %vm314_vm2, %v2325_v16 }
  0xdc   : > { %2032 = vmatmul.msk.f32.gmra.mxu3 %vm314_vm2, %v2395_v37 }
  0xdd   : > { %2015 = vmatmul.msk.f32.gmra.mxu2 %vm314_vm2, %v2399_v38 }
  0xde   : > { %1997 = vmatmul.msk.f32.gmra.mxu1 %vm314_vm2, %v2383_v35 }
  0xe3   : > { %2051 = vmatmul.msk.f32.gmra.mxu0 %vm314_vm2, %v2348_v23 }
  0xe4   : > { %2033 = vmatmul.msk.f32.gmra.mxu3 %vm314_vm2, %v2407_v39 }
  0xe5   : > { %2016 = vmatmul.msk.f32.gmra.mxu2 %vm314_vm2, %v2411_v40 }
  0xe6   : > { %1998 = vmatmul.msk.f32.gmra.mxu1 %vm314_vm2, %v2395_v37 }
  0xeb   : > { %2052 = vmatmul.msk.f32.gmra.mxu0 %vm314_vm2, %v2279_v61 }
  0xec   : > { %2034 = vmatmul.msk.f32.gmra.mxu3 %vm314_vm2, %v2419_v41 }
  0xed   : > { %2017 = vmatmul.msk.f32.gmra.mxu2 %vm314_vm2, %v2423_v42 }
  0xee   : > { %1999 = vmatmul.msk.f32.gmra.mxu1 %vm314_vm2, %v2407_v39 }
  0xf3   : > { %2053 = vmatmul.msk.f32.gmra.mxu0 %vm314_vm2, %v2304_v11 }
  0xf4   : > { %2035 = vmatmul.msk.f32.gmra.mxu3 %vm314_vm2, %v2431_v43 }
  0xf5   : > { %2018 = vmatmul.msk.f32.gmra.mxu2 %vm314_vm2, %v2435_v44 }
  0xf6   : > { %2000 = vmatmul.msk.f32.gmra.mxu1 %vm314_vm2, %v2419_v41 }
  0xfb   : > { %2054 = vmatmul.msk.f32.gmra.mxu0 %vm314_vm2, %v2329_v18 }
  0xfc   : > { %2036 = vmatmul.msk.f32.gmra.mxu3 %vm314_vm2, %v2443_v45 }
  0xfd   : > { %2019 = vmatmul.msk.f32.gmra.mxu2 %vm314_vm2, %v2447_v46 }
  0xfe   : > { %2001 = vmatmul.msk.f32.gmra.mxu1 %vm314_vm2, %v2431_v43 }
 0x103   : > { %2055 = vmatmul.msk.f32.gmra.mxu0 %vm314_vm2, %v2344_v22 }
 0x104   : > { %2037 = vmatmul.msk.f32.gmra.mxu3 %vm314_vm2, %v2455_v47 }
 0x105   : > { %2020 = vmatmul.msk.f32.gmra.mxu2 %vm314_vm2, %v2459_v48 }
 0x106   : > { %2002 = vmatmul.msk.f32.gmra.mxu1 %vm314_vm2, %v2443_v45 }
 0x10b   : > { %2056 = vmatmul.msk.f32.gmra.mxu0 %vm314_vm2, %v2301_v10 }
 0x10c   : > { %2038 = vmatmul.msk.f32.gmra.mxu3 %vm314_vm2, %v2467_v49 }
 0x10d   : > { %2021 = vmatmul.msk.f32.gmra.mxu2 %vm314_vm2, %v2471_v50 }
 0x10e   : > { %2003 = vmatmul.msk.f32.gmra.mxu1 %vm314_vm2, %v2455_v47 }
 0x113   : > { %v2479_v51 = vpop.f32.mrf.mxu1  ;;  %2057 = vmatmul.msk.f32.gmra.mxu0 %vm314_vm2, %v2327_v17 }
 0x114   : > { %2039 = vmatmul.msk.f32.gmra.mxu3 %vm314_vm2, %v2481_v52 }
 0x115   : > { %2022 = vmatmul.msk.f32.gmra.mxu2 %vm314_vm2, %v2485_v53 }
 0x116   : > { %2004 = vmatmul.msk.f32.gmra.mxu1 %vm314_vm2, %v2467_v49 }
 0x117   : > { %v2493_v55 = vpop.f32.mrf.mxu2 }
 0x11b   : > { %v2495_v56 = vpop.f32.mrf.mxu1  ;;  %2058 = vmatmul.msk.f32.gmra.mxu0 %vm314_vm2, %v2342_v21 }
 0x11c   : > { %2040 = vmatmul.msk.f32.gmra.mxu3 %vm314_vm2, %v2497_v57 }
 0x11d   : > { %2023 = vmatmul.msk.f32.gmra.mxu2 %vm314_vm2, %v2501_v58 }
 0x11e   : > { %2005 = vmatmul.msk.f32.gmra.mxu1 %vm314_vm2, %v2481_v52 }
 0x11f   : > { %v2509_v59 = vpop.f32.mrf.mxu3 }
 0x120   : > { %v2511_v60 = vpop.f32.mrf.mxu2  ;;  %v444_v63 = vpop.f32.mrf.mxu0 }
 0x123   : > { %v2513_v0 = vpop.f32.mrf.mxu1  ;;  %2059 = vmatmul.msk.f32.gmra.mxu0 %vm314_vm2, %v2355_v26 }
 0x124   : > { %2041 = vmatmul.msk.f32.gmra.mxu3 %vm314_vm2, %v2515_v1 }
 0x125   : > { %2024 = vmatmul.msk.f32.gmra.mxu2 %vm314_vm2, %v2519_v2 }
 0x126   : > { %2006 = vmatmul.msk.f32.gmra.mxu1 %vm314_vm2, %v2497_v57 }
 0x127   : > { %v2527_v3 = vpop.f32.mrf.mxu3 }
 0x128   : > { %v2529_v4 = vpop.f32.mrf.mxu2  ;;  %v447_v5 = vpop.f32.mrf.mxu0 }
 0x12b   : > { %v2533_v7 = vpop.f32.mrf.mxu1  ;;  %2060 = vmatmul.msk.f32.gmra.mxu0 %vm314_vm2, %v2531_v6 }
 0x12c   : > { %2042 = vmatmul.msk.f32.gmra.mxu3 %vm314_vm2, %v2535_v8 }
 0x12d   : > { %2025 = vmatmul.msk.f32.gmra.mxu2 %vm314_vm2, %v2539_v9 }
 0x12e   : > { %2007 = vmatmul.msk.f32.gmra.mxu1 %vm314_vm2, %v2515_v1 }
 0x12f   : > { %v2547_v13 = vpop.f32.mrf.mxu3 }
 0x130   : > { %2871 = vst [vmem:[#allocation3_spill] sm:$0xff] %v2547_v13  ;;  %v2549_v14 = vpop.f32.mrf.mxu2  ;;  %v450_v15 = vpop.f32.mrf.mxu0  ;;  %v2165_v13 = vmov 0  }
 0x131   : > { %2153 = vset.pattern.permute.xlu0 %v2165_v13  ;;  %2154 = vset.pattern.permute.xlu1 %v2165_v13 }
 0x132   : > { %1678 = vperm.xlu0 %2153, %v1656_v31   ;;  %2152 = vset.pattern.permute.xlu2 %v2165_v13  ;;  %v1657_v31 = vld [vmem:[%s2867_s2 + $0x10] sm:$0xff] }
 0x133   : > { %v557_v20 = vpop.f32.mrf.mxu1  ;;  %2061 = vmatmul.msk.f32.gmra.mxu0 %vm314_vm2, %v2551_v19  ;;  %1683 = vperm.xlu1 %2154, %v1657_v31  }
 0x134   : > { %2043 = vmatmul.msk.f32.gmra.mxu3 %vm314_vm2, %v2553_v24  ;;  %v558_v25 = vadd.f32 %v557_v20, %v441_v54 }
 0x135   : > { %2082 = vmatmul.msk.f32.vlgmr.msra.gmra.mxu2 %vm314_vm2, %v2372_v33 }
 0x136   : > { %2064 = vmatmul.msk.f32.vlgmr.msra.gmra.mxu1 %vm314_vm2, %v2366_v32 }
 0x137   : > { %v2563_v27 = vpop.f32.mrf.mxu3 }
 0x138   : > { %2873 = vst [vmem:[#allocation5_spill] sm:$0xff] %v2563_v27  ;;  %v691_v28 = vpop.f32.mrf.mxu2  ;;  %v991_v29 = vpop.f32.mrf.mxu0 }
 0x139   : > { %v739_v30 = vadd.f32 %v691_v28, %v558_v25 }
 0x13b   : > { %v560_v19 = vpop.f32.mrf.mxu1  ;;  %2118 = vmatmul.msk.f32.vlgmr.msra.gmra.mxu0 %vm314_vm2, %v2387_v36 }
 0x13c   : > { %2100 = vmatmul.msk.f32.vlgmr.msra.gmra.mxu3 %vm314_vm2, %v2285_v62  ;;  %v561_v32 = vadd.f32 %v560_v19, %v444_v63 }
 0x13d   : > { %2083 = vmatmul.msk.f32.gmra.mxu2 %vm314_vm2, %v2383_v35 }
 0x13e   : > { %2065 = vmatmul.msk.f32.gmra.mxu1 %vm314_vm2, %v2376_v34 }
 0x13f   : > { %v841_v33 = vpop.f32.mrf.mxu3 }
 0x140   : > { %v694_v54 = vpop.f32.mrf.mxu2  ;;  %v889_v20 = vadd.f32 %v841_v33, %v739_v30  ;;  %v994_v25 = vpop.f32.mrf.mxu0  ;;  %v1655_v30 = vld [vmem:[%s2867_s2] sm:$0xff] }
 0x141   : > { %v740_v28 = vadd.f32 %v694_v54, %v561_v32  ;;  %1673 = vperm.xlu2 %2152, %v1655_v30  }
 0x142   : > { %v2579_v27 = vadd.f32 %v991_v29, %v889_v20 }
 0x143   : > { %v563_v62 = vpop.f32.mrf.mxu1  ;;  %2119 = vmatmul.msk.f32.gmra.mxu0 %vm314_vm2, %v2399_v38 }
 0x144   : > { %2101 = vmatmul.msk.f32.gmra.mxu3 %vm314_vm2, %v2309_v12  ;;  %v564_v34 = vadd.f32 %v563_v62, %v447_v5 }
 0x145   : > { %2084 = vmatmul.msk.f32.gmra.mxu2 %vm314_vm2, %v2395_v37 }
 0x146   : > { %2066 = vmatmul.msk.f32.gmra.mxu1 %vm314_vm2, %v2387_v36 }
 0x147   : > { %v844_v35 = vpop.f32.mrf.mxu3 }
 0x148   : > { %v697_v63 = vpop.f32.mrf.mxu2  ;;  %v890_v13 = vadd.f32 %v844_v35, %v740_v28  ;;  %v997_v19 = vpop.f32.mrf.mxu0 }
 0x149   : > { %v741_v29 = vadd.f32 %v697_v63, %v564_v34 }
 0x14a   : > { %v2592_v32 = vadd.f32 %v994_v25, %v890_v13  ;;  %v1659_v25 = vld [vmem:[%s2867_s2 + $0x20] sm:$0xff] }
 0x14b   : > { %v566_v12 = vpop.f32.mrf.mxu1  ;;  %2120 = vmatmul.msk.f32.gmra.mxu0 %vm314_vm2, %v2411_v40  ;;  %1693 = vperm.xlu1 %2154, %v1659_v25  }
 0x14c   : > { %2102 = vmatmul.msk.f32.gmra.mxu3 %vm314_vm2, %v2325_v16  ;;  %v567_v36 = vadd.f32 %v566_v12, %v450_v15 }
 0x14d   : > { %2085 = vmatmul.msk.f32.gmra.mxu2 %vm314_vm2, %v2407_v39 }
 0x14e   : > { %2067 = vmatmul.msk.f32.gmra.mxu1 %vm314_vm2, %v2399_v38 }
 0x14f   : > { %v847_v37 = vpop.f32.mrf.mxu3 }
 0x150   : > { %v700_v5 = vpop.f32.mrf.mxu2  ;;  %v891_v33 = vadd.f32 %v847_v37, %v741_v29  ;;  %v1000_v54 = vpop.f32.mrf.mxu0  ;;  %v1658_v29 = vld [vmem:[%s2867_s2 + $0x18] sm:$0xff] }
 0x151   : > { %v742_v20 = vadd.f32 %v700_v5, %v567_v36  ;;  %1688 = vperm.xlu2 %2152, %v1658_v29  }
 0x152   : > { %v2605_v28 = vadd.f32 %v997_v19, %v891_v33  ;;  %v1662_v33 = vld [vmem:[%s2867_s2 + $0x38] sm:$0xff] }
 0x153   : > { %v569_v16 = vpop.f32.mrf.mxu1  ;;  %2121 = vmatmul.msk.f32.gmra.mxu0 %vm314_vm2, %v2423_v42  ;;  %1708 = vperm.xlu1 %2154, %v1662_v33  }
 0x154   : > { %2103 = vmatmul.msk.f32.gmra.mxu3 %vm314_vm2, %v2348_v23  ;;  %v570_v38 = vadd.f32 %v569_v16, %v2479_v51 }
 0x155   : > { %2086 = vmatmul.msk.f32.gmra.mxu2 %vm314_vm2, %v2419_v41 }
 0x156   : > { %2068 = vmatmul.msk.f32.gmra.mxu1 %vm314_vm2, %v2411_v40 }
 0x157   : > { %v850_v39 = vpop.f32.mrf.mxu3 }
 0x158   : > { %v703_v15 = vpop.f32.mrf.mxu2  ;;  %v892_v31 = vadd.f32 %v850_v39, %v742_v20  ;;  %v1003_v62 = vpop.f32.mrf.mxu0 }
 0x159   : > { %v743_v34 = vadd.f32 %v703_v15, %v570_v38  ;;  %v1660_v38 = vld [vmem:[%s2867_s2 + $0x28] sm:$0xff] }
 0x15a   : > { %v2616_v35 = vadd.f32 %v1000_v54, %v892_v31  ;;  %1698 = vperm.xlu2 %2152, %v1660_v38  }
 0x15b   : > { %v572_v63 = vpop.f32.mrf.mxu1  ;;  %2122 = vmatmul.msk.f32.gmra.mxu0 %vm314_vm2, %v2435_v44 }
 0x15c   : > { %2104 = vmatmul.msk.f32.gmra.mxu3 %vm314_vm2, %v2279_v61  ;;  %v573_v23 = vadd.f32 %v572_v63, %v2495_v56  ;;  %v1661_v61 = vld [vmem:[%s2867_s2 + $0x30] sm:$0xff] }
 0x15d   : > { %2087 = vmatmul.msk.f32.gmra.mxu2 %vm314_vm2, %v2431_v43  ;;  %1703 = vperm.xlu0 %2153, %v1661_v61  }
 0x15e   : > { %2069 = vmatmul.msk.f32.gmra.mxu1 %vm314_vm2, %v2423_v42 }
 0x15f   : > { %v853_v40 = vpop.f32.mrf.mxu3 }
 0x160   : > { %v706_v41 = vpop.f32.mrf.mxu2  ;;  %v893_v51 = vadd.f32 %v853_v40, %v743_v34  ;;  %v1006_v13 = vpop.f32.mrf.mxu0  ;;  %v1664_v34 = vld [vmem:[%s2867_s2 + $0x48] sm:$0xff] }
 0x161   : > { %v744_v19 = vadd.f32 %v706_v41, %v573_v23 }
 0x162   : > { %v2633_v43 = vadd.f32 %v1003_v62, %v893_v51 }
 0x163   : > { %v575_v42 = vpop.f32.mrf.mxu1  ;;  %2123 = vmatmul.msk.f32.gmra.mxu0 %vm314_vm2, %v2447_v46 }
 0x164   : > { %2105 = vmatmul.msk.f32.gmra.mxu3 %vm314_vm2, %v2304_v11  ;;  %v576_v56 = vadd.f32 %v575_v42, %v2513_v0 }
 0x165   : > { %2088 = vmatmul.msk.f32.gmra.mxu2 %vm314_vm2, %v2443_v45  ;;  %1718 = vperm.xlu0 %2153, %v1664_v34  }
 0x166   : > { %2070 = vmatmul.msk.f32.gmra.mxu1 %vm314_vm2, %v2435_v44 }
 0x167   : > { %v856_v30 = vpop.f32.mrf.mxu3 }
 0x168   : > { %v709_v12 = vpop.f32.mrf.mxu2  ;;  %v894_v36 = vadd.f32 %v856_v30, %v744_v19  ;;  %v1009_v37 = vpop.f32.mrf.mxu0 }
 0x169   : > { %v745_v5 = vadd.f32 %v709_v12, %v576_v56 }
 0x16a   : > { %v2647_v54 = vadd.f32 %v1006_v13, %v894_v36  ;;  %v1663_v13 = vld [vmem:[%s2867_s2 + $0x40] sm:$0xff] }
 0x16b   : > { %v578_v11 = vpop.f32.mrf.mxu1  ;;  %2124 = vmatmul.msk.f32.gmra.mxu0 %vm314_vm2, %v2459_v48  ;;  %1713 = vperm.xlu2 %2152, %v1663_v13  }
 0x16c   : > { %2106 = vmatmul.msk.f32.gmra.mxu3 %vm314_vm2, %v2329_v18  ;;  %v579_v44 = vadd.f32 %v578_v11, %v2533_v7 }
 0x16d   : > { %2089 = vmatmul.msk.f32.gmra.mxu2 %vm314_vm2, %v2455_v47 }
 0x16e   : > { %2071 = vmatmul.msk.f32.gmra.mxu1 %vm314_vm2, %v2447_v46 }
 0x16f   : > { %v859_v45 = vpop.f32.mrf.mxu3 }
 0x170   : > { %v712_v0 = vpop.f32.mrf.mxu2  ;;  %v895_v20 = vadd.f32 %v859_v45, %v745_v5  ;;  %v1012_v25 = vpop.f32.mrf.mxu0 }
 0x171   : > { %v746_v16 = vadd.f32 %v712_v0, %v579_v44 }
 0x172   : > { %v2661_v39 = vadd.f32 %v1009_v37, %v895_v20 }
 0x173   : > { %v581_v18 = vpop.f32.mrf.mxu1  ;;  %2125 = vmatmul.msk.f32.gmra.mxu0 %vm314_vm2, %v2471_v50 }
 0x174   : > { %2107 = vmatmul.msk.f32.gmra.mxu3 %vm314_vm2, %v2344_v22  ;;  %v582_v46 = vadd.f32 %v581_v18, %v2493_v55 }
 0x175   : > { %2090 = vmatmul.msk.f32.gmra.mxu2 %vm314_vm2, %v2467_v49 }
 0x176   : > { %2072 = vmatmul.msk.f32.gmra.mxu1 %vm314_vm2, %v2459_v48  ;;  %v1665_v48 = vld [vmem:[%s2867_s2 + $0x50] sm:$0xff] }
 0x177   : > { %v862_v47 = vpop.f32.mrf.mxu3  ;;  %1723 = vperm.xlu1 %2154, %v1665_v48  }
 0x178   : > { %v715_v7 = vpop.f32.mrf.mxu2  ;;  %v896_v15 = vadd.f32 %v862_v47, %v746_v16  ;;  %v1015_v31 = vpop.f32.mrf.mxu0  ;;  %v1517_v16 = vld [vmem:[#allocation2 + $0x82] sm:$0xff] }
 0x179   : > { %v747_v62 = vadd.f32 %v715_v7, %v582_v46  ;;  %v1219_v7 = vld [vmem:[#allocation2 + $0x90] sm:$0xff] }
 0x17a   : > { %v2675_v63 = vadd.f32 %v1012_v25, %v896_v15  ;;  %v1518_v15 = vld [vmem:[#allocation2 + $0x8a] sm:$0xff] }
 0x17b   : > { %v584_v22 = vpop.f32.mrf.mxu1  ;;  %2126 = vmatmul.msk.f32.gmra.mxu0 %vm314_vm2, %v2485_v53 }
 0x17c   : > { %2108 = vmatmul.msk.f32.gmra.mxu3 %vm314_vm2, %v2301_v10  ;;  %v585_v49 = vadd.f32 %v584_v22, %v2511_v60  ;;  %v1667_v10 = vld [vmem:[%s2867_s2 + $0x60] sm:$0xff]  ;;  %v1668_v60 = vld [vmem:[%s2867_s2 + $0x68] sm:$0xff] }
 0x17d   : > { %2091 = vmatmul.msk.f32.gmra.mxu2 %vm314_vm2, %v2481_v52  ;;  %1733 = vperm.xlu0 %2153, %v1667_v10   ;;  %v2876_v10 = vld [vmem:[#allocation5_spill] sm:$0xff] }
 0x17e   : > { %2073 = vmatmul.msk.f32.gmra.mxu1 %vm314_vm2, %v2471_v50 }
 0x17f   : > { %v865_v55 = vpop.f32.mrf.mxu3  ;;  %1738 = vperm.xlu1 %2154, %v1668_v60  }
 0x180   : > { %v718_v23 = vpop.f32.mrf.mxu2  ;;  %v897_v40 = vadd.f32 %v865_v55, %v747_v62  ;;  %v1018_v41 = vpop.f32.mrf.mxu0 }
 0x181   : > { %v748_v51 = vadd.f32 %v718_v23, %v585_v49  ;;  %v1519_v49 = vld [vmem:[#allocation2 + $0x92] sm:$0xff] }
 0x182   : > { %v2692_v52 = vadd.f32 %v1015_v31, %v897_v40  ;;  %v1369_v23 = vld [vmem:[#allocation2 + $0x91] sm:$0xff] }
 0x183   : > { %v587_v50 = vpop.f32.mrf.mxu1  ;;  %2127 = vmatmul.msk.f32.gmra.mxu0 %vm314_vm2, %v2501_v58  ;;  %v1220_v40 = vld [vmem:[#allocation2 + $0x98] sm:$0xff] }
 0x184   : > { %2109 = vmatmul.msk.f32.gmra.mxu3 %vm314_vm2, %v2327_v17  ;;  %v588_v19 = vadd.f32 %v587_v50, %v2529_v4  ;;  %v1666_v4 = vld [vmem:[%s2867_s2 + $0x58] sm:$0xff] }
 0x185   : > { %2092 = vmatmul.msk.f32.gmra.mxu2 %vm314_vm2, %v2497_v57  ;;  %1728 = vperm.xlu2 %2152, %v1666_v4  }
 0x186   : > { %2074 = vmatmul.msk.f32.gmra.mxu1 %vm314_vm2, %v2485_v53  ;;  %v1670_v53 = vld [vmem:[%s2867_s2 + $0x78] sm:$0xff] }
 0x187   : > { %v868_v29 = vpop.f32.mrf.mxu3  ;;  %1748 = vperm.xlu0 %2153, %v1670_v53  }
 0x188   : > { %v721_v17 = vpop.f32.mrf.mxu2  ;;  %v898_v61 = vadd.f32 %v868_v29, %v748_v51  ;;  %v1021_v42 = vpop.f32.mrf.mxu0 }
 0x189   : > { %v749_v57 = vadd.f32 %v721_v17, %v588_v19  ;;  %v1520_v17 = vld [vmem:[#allocation2 + $0x9a] sm:$0xff] }
 0x18a   : > { %v2712_v56 = vadd.f32 %v1018_v41, %v898_v61 }
 0x18b   : > { %v590_v30 = vpop.f32.mrf.mxu1  ;;  %2128 = vmatmul.msk.f32.gmra.mxu0 %vm314_vm2, %v2519_v2 }
 0x18c   : > { %2110 = vmatmul.msk.f32.gmra.mxu3 %vm314_vm2, %v2342_v21  ;;  %v591_v12 = vadd.f32 %v590_v30, %v2549_v14 }
 0x18d   : > { %2093 = vmatmul.msk.f32.gmra.mxu2 %vm314_vm2, %v2515_v1 }
 0x18e   : > { %2075 = vmatmul.msk.f32.gmra.mxu1 %vm314_vm2, %v2501_v58  ;;  %v1669_v58 = vld [vmem:[%s2867_s2 + $0x70] sm:$0xff] }
 0x18f   : > { %v871_v36 = vpop.f32.mrf.mxu3  ;;  %1743 = vperm.xlu2 %2152, %v1669_v58  }
 0x190   : > { %v724_v37 = vpop.f32.mrf.mxu2  ;;  %v899_v5 = vadd.f32 %v871_v36, %v749_v57  ;;  %v1024_v33 = vpop.f32.mrf.mxu0 }
 0x191   : > { %v750_v11 = vadd.f32 %v724_v37, %v591_v12 }
 0x192   : > { %v2726_v44 = vadd.f32 %v1021_v42, %v899_v5  ;;  %v1370_v42 = vld [vmem:[#allocation2 + $0x99] sm:$0xff] }
 0x193   : > { %v593_v21 = vpop.f32.mrf.mxu1  ;;  %2129 = vmatmul.msk.f32.gmra.mxu0 %vm314_vm2, %v2539_v9 }
 0x194   : > { %2111 = vmatmul.msk.f32.gmra.mxu3 %vm314_vm2, %v2355_v26  ;;  %v594_v1 = vadd.f32 %v593_v21, %v2509_v59 }
 0x195   : > { %2094 = vmatmul.msk.f32.gmra.mxu2 %vm314_vm2, %v2535_v8 }
 0x196   : > { %2076 = vmatmul.msk.f32.gmra.mxu1 %vm314_vm2, %v2519_v2 }
 0x197   : > { %v874_v14 = vpop.f32.mrf.mxu3 }
 0x198   : > { %v727_v45 = vpop.f32.mrf.mxu2  ;;  %v900_v0 = vadd.f32 %v874_v14, %v750_v11  ;;  %v1027_v20 = vpop.f32.mrf.mxu0 }
 0x199   : > { %v751_v25 = vadd.f32 %v727_v45, %v594_v1 }
 0x19a   : > { %v2740_v26 = vadd.f32 %v1024_v33, %v900_v0 }
 0x19b   : > { %v596_v38 = vpop.f32.mrf.mxu1  ;;  %2130 = vmatmul.msk.f32.gmra.mxu0 %vm314_vm2, %v1517_v16  ;;  %v1674_v45 = vpop.permute.xlu2 %1673 }
 0x19c   : > { %2112 = vmatmul.msk.f32.gmra.mxu3 %vm314_vm2, %v2531_v6  ;;  %v597_v59 = vadd.f32 %v596_v38, %v2527_v3  ;;  %v2874_v6 = vld [vmem:[#allocation4_spill] sm:$0xff]  ;;  %v2875_v3 = vld [vmem:[#allocation3_spill] sm:$0xff] }
 0x19d   : > { %2095 = vmatmul.msk.f32.gmra.mxu2 %vm314_vm2, %v2553_v24 }
 0x19e   : > { %2077 = vmatmul.msk.f32.gmra.mxu1 %vm314_vm2, %v2539_v9 }
 0x19f   : > { %v877_v2 = vpop.f32.mrf.mxu3 }
 0x1a0   : > { %v730_v8 = vpop.f32.mrf.mxu2  ;;  %v901_v18 = vadd.f32 %v877_v2, %v751_v25  ;;  %v1030_v46 = vpop.f32.mrf.mxu0 }
 0x1a1   : > { %v752_v47 = vadd.f32 %v730_v8, %v597_v59 }
 0x1a2   : > { %v2750_v31 = vadd.f32 %v1027_v20, %v901_v18 }
 0x1a3   : > { %v599_v62 = vpop.f32.mrf.mxu1  ;;  %2131 = vmatmul.msk.f32.gmra.mxu0 %vm314_vm2, %v1518_v15 }
 0x1a4   : > { %2113 = vmatmul.msk.f32.gmra.mxu3 %vm314_vm2, %v2874_v6  ;;  %v600_v9 = vadd.f32 %v599_v62, %v2875_v3  ;;  %v1679_v18 = vpop.permute.xlu0 %1678 }
 0x1a5   : > { %2096 = vmatmul.msk.f32.gmra.mxu2 %vm314_vm2, %v1219_v7 }
 0x1a6   : > { %2078 = vmatmul.msk.f32.gmra.mxu1 %vm314_vm2, %v1517_v16 }
 0x1a7   : > { %v880_v24 = vpop.f32.mrf.mxu3 }
 0x1a8   : > { %v733_v34 = vpop.f32.mrf.mxu2  ;;  %v902_v22 = vadd.f32 %v880_v24, %v752_v47  ;;  %v1033_v48 = vpop.f32.mrf.mxu0 }
 0x1a9   : > { %v753_v55 = vadd.f32 %v733_v34, %v600_v9 }
 0x1aa   : > { %v2758_v41 = vadd.f32 %v1030_v46, %v902_v22 }
 0x1ab   : > { %v602_v51 = vpop.f32.mrf.mxu1  ;;  %2132 = vmatmul.msk.f32.gmra.mxu0 %vm314_vm2, %v1519_v49 }
 0x1ac   : > { %2114 = vmatmul.msk.f32.gmra.mxu3 %vm314_vm2, %v1369_v23  ;;  %v603_v50 = vadd.f32 %v602_v51, %v2876_v10 }
 0x1ad   : > { %2097 = vmatmul.msk.f32.gmra.mxu2 %vm314_vm2, %v1220_v40  ;;  %v1684_v40 = vpop.permute.xlu1 %1683 }
 0x1ae   : > { %2079 = vmatmul.msk.f32.gmra.mxu1 %vm314_vm2, %v1518_v15 }
 0x1af   : > { %v883_v60 = vpop.f32.mrf.mxu3 }
 0x1b0   : > { %v736_v13 = vpop.f32.mrf.mxu2  ;;  %v903_v19 = vadd.f32 %v883_v60, %v753_v55  ;;  %v1036_v29 = vpop.f32.mrf.mxu0 }
 0x1b1   : > { %v754_v61 = vadd.f32 %v736_v13, %v603_v50 }
 0x1b2   : > { %v2765_v57 = vadd.f32 %v1033_v48, %v903_v19 }
 0x1b3   : > { %v1141_v53 = vpop.f32.mrf.mxu1  ;;  %2133 = vmatmul.msk.f32.gmra.mxu0 %vm314_vm2, %v1520_v17 }
 0x1b4   : > { %2115 = vmatmul.msk.f32.gmra.mxu3 %vm314_vm2, %v1370_v42  ;;  %v1189_v33 = vadd.f32 %v1141_v53, %v2579_v27 }
 0x1b7   : > { %v886_v30 = vpop.f32.mrf.mxu3 }
 0x1b8   : > { %v904_v4 = vadd.f32 %v886_v30, %v754_v61  ;;  %v1291_v12 = vpop.f32.mrf.mxu2  ;;  %v1591_v36 = vpop.f32.mrf.mxu0 }
 0x1b9   : > { %v1339_v11 = vadd.f32 %v1291_v12, %v1189_v33 }
 0x1ba   : > { %v2769_v37 = vadd.f32 %v1036_v29, %v904_v4 }
 0x1bb   : > { %v1144_v5 = vpop.f32.mrf.mxu1 }
 0x1bc   : > { %v1190_v25 = vadd.f32 %v1144_v5, %v2592_v32 }
 0x1bf   : > { %v1441_v21 = vpop.f32.mrf.mxu3 }
 0x1c0   : > { %v1294_v58 = vpop.f32.mrf.mxu2  ;;  %v1489_v1 = vadd.f32 %v1441_v21, %v1339_v11  ;;  %v1594_v14 = vpop.f32.mrf.mxu0 }
 0x1c1   : > { %v1340_v16 = vadd.f32 %v1294_v58, %v1190_v25 }
 0x1c2   : > { %v1639_v0 = vadd.f32 %v1591_v36, %v1489_v1  ;;  %v1689_v36 = vpop.permute.xlu2 %1688 }
 0x1c3   : > { %v1147_v20 = vpop.f32.mrf.mxu1 }
 0x1c4   : > { %v1751_v27 = vmul.f32 %v1674_v45, %v1639_v0  ;;  %v1191_v7 = vadd.f32 %v1147_v20, %v2605_v28 }
 0x1c6   : > { %1768 = vst.msk [vmem:[%s2777_s28] sm:$0xff] %vm1767_vm3, %v1751_v27  ;;  %v1823_v15 = vmul.f32 %v1751_v27, %v1751_v27  ;;  %v1784_v6 = vsel %vm1767_vm3, %v1751_v27, 0.0 }
 0x1c7   : > { %v1444_v38 = vpop.f32.mrf.mxu3 }
 0x1c8   : > { %v1297_v59 = vpop.f32.mrf.mxu2  ;;  %v1490_v2 = vadd.f32 %v1444_v38, %v1340_v16  ;;  %v1597_v8 = vpop.f32.mrf.mxu0  ;;  %v1839_v22 = vsel %vm1767_vm3, %v1823_v15, 0.0 }
 0x1c9   : > { %v1341_v3 = vadd.f32 %v1297_v59, %v1191_v7  ;;  %v1694_v38 = vpop.permute.xlu1 %1693 }
 0x1ca   : > { %v1640_v46 = vadd.f32 %v1594_v14, %v1490_v2 }
 0x1cb   : > { %v1150_v47 = vpop.f32.mrf.mxu1 }
 0x1cc   : > { %v1752_v62 = vmul.f32 %v1679_v18, %v1640_v46  ;;  %v1192_v50 = vadd.f32 %v1150_v47, %v2616_v35 }
 0x1ce   : > { %1769 = vst.msk [vmem:[%s2777_s28 + $0x8] sm:$0xff] %vm1767_vm3, %v1752_v62  ;;  %v1785_v32 = vsel %vm1767_vm3, %v1752_v62, 0.0  ;;  %v1824_v9 = vmul.f32 %v1752_v62, %v1752_v62 }
 0x1cf   : > { %v1786_v24 = vadd.f32 %v1785_v32, %v1784_v6  ;;  %v1447_v34 = vpop.f32.mrf.mxu3 }
 0x1d0   : > { %v1840_v48 = vsel %vm1767_vm3, %v1824_v9, 0.0  ;;  %v1300_v49 = vpop.f32.mrf.mxu2  ;;  %v1491_v55 = vadd.f32 %v1447_v34, %v1341_v3  ;;  %v1600_v28 = vpop.f32.mrf.mxu0 }
 0x1d1   : > { %v1841_v23 = vadd.f32 %v1840_v48, %v1839_v22  ;;  %v1342_v13 = vadd.f32 %v1300_v49, %v1192_v50 }
 0x1d2   : > { %v1641_v51 = vadd.f32 %v1597_v8, %v1491_v55 }
 0x1d3   : > { %v1153_v10 = vpop.f32.mrf.mxu1 }
 0x1d4   : > { %v1753_v60 = vmul.f32 %v1684_v40, %v1641_v51  ;;  %v1193_v35 = vadd.f32 %v1153_v10, %v2633_v43 }
 0x1d6   : > { %1770 = vst.msk [vmem:[%s2777_s28 + $0x10] sm:$0xff] %vm1767_vm3, %v1753_v60  ;;  %v1787_v19 = vsel %vm1767_vm3, %v1753_v60, 0.0  ;;  %v1825_v29 = vmul.f32 %v1753_v60, %v1753_v60 }
 0x1d7   : > { %v1788_v17 = vadd.f32 %v1787_v19, %v1786_v24  ;;  %v1450_v61 = vpop.f32.mrf.mxu3  ;;  %v1699_v24 = vpop.permute.xlu2 %1698 }
 0x1d8   : > { %v1842_v42 = vsel %vm1767_vm3, %v1825_v29, 0.0  ;;  %v1303_v53 = vpop.f32.mrf.mxu2  ;;  %v1492_v30 = vadd.f32 %v1450_v61, %v1342_v13  ;;  %v1603_v4 = vpop.f32.mrf.mxu0 }
 0x1d9   : > { %v1843_v12 = vadd.f32 %v1842_v42, %v1841_v23  ;;  %v1343_v21 = vadd.f32 %v1303_v53, %v1193_v35  ;;  %v1704_v19 = vpop.permute.xlu0 %1703 }
 0x1da   : > { %v1642_v5 = vadd.f32 %v1600_v28, %v1492_v30 }
 0x1db   : > { %v1156_v33 = vpop.f32.mrf.mxu1 }
 0x1dc   : > { %v1754_v11 = vmul.f32 %v1689_v36, %v1642_v5  ;;  %v1194_v43 = vadd.f32 %v1156_v33, %v2647_v54 }
 0x1de   : > { %1771 = vst.msk [vmem:[%s2777_s28 + $0x18] sm:$0xff] %vm1767_vm3, %v1754_v11  ;;  %v1789_v58 = vsel %vm1767_vm3, %v1754_v11, 0.0  ;;  %v1826_v1 = vmul.f32 %v1754_v11, %v1754_v11 }
 0x1df   : > { %v1790_v14 = vadd.f32 %v1789_v58, %v1788_v17  ;;  %v1453_v45 = vpop.f32.mrf.mxu3 }
 0x1e0   : > { %v1844_v0 = vsel %vm1767_vm3, %v1826_v1, 0.0  ;;  %v1306_v20 = vpop.f32.mrf.mxu2  ;;  %v1493_v25 = vadd.f32 %v1453_v45, %v1343_v21  ;;  %v1606_v27 = vpop.f32.mrf.mxu0 }
 0x1e1   : > { %v1845_v16 = vadd.f32 %v1844_v0, %v1843_v12  ;;  %v1344_v18 = vadd.f32 %v1306_v20, %v1194_v43  ;;  %v1709_v21 = vpop.permute.xlu1 %1708 }
 0x1e2   : > { %v1643_v59 = vadd.f32 %v1603_v4, %v1493_v25 }
 0x1e3   : > { %v1159_v2 = vpop.f32.mrf.mxu1 }
 0x1e4   : > { %v1755_v8 = vmul.f32 %v1694_v38, %v1643_v59  ;;  %v1195_v54 = vadd.f32 %v1159_v2, %v2661_v39 }
 0x1e6   : > { %1772 = vst.msk [vmem:[%s2777_s28 + $0x20] sm:$0xff] %vm1767_vm3, %v1755_v8  ;;  %v1791_v46 = vsel %vm1767_vm3, %v1755_v8, 0.0  ;;  %v1827_v47 = vmul.f32 %v1755_v8, %v1755_v8 }
 0x1e7   : > { %v1792_v7 = vadd.f32 %v1791_v46, %v1790_v14  ;;  %v1456_v15 = vpop.f32.mrf.mxu3 }
 0x1e8   : > { %v1846_v62 = vsel %vm1767_vm3, %v1827_v47, 0.0  ;;  %v1309_v6 = vpop.f32.mrf.mxu2  ;;  %v1494_v3 = vadd.f32 %v1456_v15, %v1344_v18  ;;  %v1609_v32 = vpop.f32.mrf.mxu0 }
 0x1e9   : > { %v1847_v9 = vadd.f32 %v1846_v62, %v1845_v16  ;;  %v1345_v49 = vadd.f32 %v1309_v6, %v1195_v54  ;;  %v1714_v18 = vpop.permute.xlu2 %1713  ;;  %v1719_v54 = vpop.permute.xlu0 %1718 }
 0x1ea   : > { %v1644_v34 = vadd.f32 %v1606_v27, %v1494_v3 }
 0x1eb   : > { %v1162_v22 = vpop.f32.mrf.mxu1 }
 0x1ec   : > { %v1756_v48 = vmul.f32 %v1699_v24, %v1644_v34  ;;  %v1196_v39 = vadd.f32 %v1162_v22, %v2675_v63 }
 0x1ee   : > { %1773 = vst.msk [vmem:[%s2777_s28 + $0x28] sm:$0xff] %vm1767_vm3, %v1756_v48  ;;  %v1793_v55 = vsel %vm1767_vm3, %v1756_v48, 0.0  ;;  %v1828_v28 = vmul.f32 %v1756_v48, %v1756_v48 }
 0x1ef   : > { %v1794_v23 = vadd.f32 %v1793_v55, %v1792_v7  ;;  %v1459_v40 = vpop.f32.mrf.mxu3 }
 0x1f0   : > { %v1848_v51 = vsel %vm1767_vm3, %v1828_v28, 0.0  ;;  %v1312_v10 = vpop.f32.mrf.mxu2  ;;  %v1495_v50 = vadd.f32 %v1459_v40, %v1345_v49  ;;  %v1612_v60 = vpop.f32.mrf.mxu0 }
 0x1f1   : > { %v1849_v13 = vadd.f32 %v1848_v51, %v1847_v9  ;;  %v1346_v42 = vadd.f32 %v1312_v10, %v1196_v39  ;;  %v1724_v39 = vpop.permute.xlu1 %1723 }
 0x1f2   : > { %v1645_v29 = vadd.f32 %v1609_v32, %v1495_v50 }
 0x1f3   : > { %v1165_v17 = vpop.f32.mrf.mxu1 }
 0x1f4   : > { %v1757_v61 = vmul.f32 %v1704_v19, %v1645_v29  ;;  %v1197_v63 = vadd.f32 %v1165_v17, %v2692_v52 }
 0x1f6   : > { %1774 = vst.msk [vmem:[%s2777_s28 + $0x30] sm:$0xff] %vm1767_vm3, %v1757_v61  ;;  %v1795_v53 = vsel %vm1767_vm3, %v1757_v61, 0.0  ;;  %v1829_v30 = vmul.f32 %v1757_v61, %v1757_v61 }
 0x1f7   : > { %v1796_v4 = vadd.f32 %v1795_v53, %v1794_v23  ;;  %v1462_v12 = vpop.f32.mrf.mxu3 }
 0x1f8   : > { %v1850_v36 = vsel %vm1767_vm3, %v1829_v30, 0.0  ;;  %v1315_v5 = vpop.f32.mrf.mxu2  ;;  %v1496_v33 = vadd.f32 %v1462_v12, %v1346_v42  ;;  %v1615_v35 = vpop.f32.mrf.mxu0 }
 0x1f9   : > { %v1851_v11 = vadd.f32 %v1850_v36, %v1849_v13  ;;  %v1347_v45 = vadd.f32 %v1315_v5, %v1197_v63 }
 0x1fa   : > { %v1646_v58 = vadd.f32 %v1612_v60, %v1496_v33 }
 0x1fb   : > { %v1168_v1 = vpop.f32.mrf.mxu1 }
 0x1fc   : > { %v1758_v14 = vmul.f32 %v1709_v21, %v1646_v58  ;;  %v1198_v52 = vadd.f32 %v1168_v1, %v2712_v56  ;;  %v1729_v58 = vpop.permute.xlu2 %1728 }
 0x1fe   : > { %1775 = vst.msk [vmem:[%s2777_s28 + $0x38] sm:$0xff] %vm1767_vm3, %v1758_v14  ;;  %v1797_v0 = vsel %vm1767_vm3, %v1758_v14, 0.0  ;;  %v1830_v20 = vmul.f32 %v1758_v14, %v1758_v14 }
 0x1ff   : > { %v1798_v25 = vadd.f32 %v1797_v0, %v1796_v4  ;;  %v1465_v27 = vpop.f32.mrf.mxu3 }
 0x200   : > { %v1852_v16 = vsel %vm1767_vm3, %v1830_v20, 0.0  ;;  %v1318_v38 = vpop.f32.mrf.mxu2  ;;  %v1497_v59 = vadd.f32 %v1465_v27, %v1347_v45  ;;  %v1618_v2 = vpop.f32.mrf.mxu0 }
 0x201   : > { %v1853_v43 = vadd.f32 %v1852_v16, %v1851_v11  ;;  %v1348_v7 = vadd.f32 %v1318_v38, %v1198_v52 }
 0x202   : > { %v1647_v8 = vadd.f32 %v1615_v35, %v1497_v59 }
 0x203   : > { %v1171_v46 = vpop.f32.mrf.mxu1 }
 0x204   : > { %v1759_v47 = vmul.f32 %v1714_v18, %v1647_v8  ;;  %v1199_v56 = vadd.f32 %v1171_v46, %v2726_v44  ;;  %v1734_v8 = vpop.permute.xlu0 %1733 }
 0x206   : > { %1776 = vst.msk [vmem:[%s2777_s28 + $0x40] sm:$0xff] %vm1767_vm3, %v1759_v47  ;;  %v1799_v15 = vsel %vm1767_vm3, %v1759_v47, 0.0  ;;  %v1831_v62 = vmul.f32 %v1759_v47, %v1759_v47 }
 0x207   : > { %v1800_v6 = vadd.f32 %v1799_v15, %v1798_v25  ;;  %v1468_v3 = vpop.f32.mrf.mxu3 }
 0x208   : > { %v1854_v32 = vsel %vm1767_vm3, %v1831_v62, 0.0  ;;  %v1321_v9 = vpop.f32.mrf.mxu2  ;;  %v1498_v24 = vadd.f32 %v1468_v3, %v1348_v7  ;;  %v1621_v34 = vpop.f32.mrf.mxu0 }
 0x209   : > { %v1855_v22 = vadd.f32 %v1854_v32, %v1853_v43  ;;  %v1349_v28 = vadd.f32 %v1321_v9, %v1199_v56 }
 0x20a   : > { %v1648_v48 = vadd.f32 %v1618_v2, %v1498_v24 }
 0x20b   : > { %v1174_v49 = vpop.f32.mrf.mxu1 }
 0x20c   : > { %v1760_v55 = vmul.f32 %v1719_v54, %v1648_v48  ;;  %v1200_v44 = vadd.f32 %v1174_v49, %v2740_v26 }
 0x20e   : > { %1777 = vst.msk [vmem:[%s2777_s28 + $0x48] sm:$0xff] %vm1767_vm3, %v1760_v55  ;;  %v1801_v23 = vsel %vm1767_vm3, %v1760_v55, 0.0  ;;  %v1832_v40 = vmul.f32 %v1760_v55, %v1760_v55 }
 0x20f   : > { %v1802_v51 = vadd.f32 %v1801_v23, %v1800_v6  ;;  %v1471_v10 = vpop.f32.mrf.mxu3 }
 0x210   : > { %v1856_v50 = vsel %vm1767_vm3, %v1832_v40, 0.0  ;;  %v1324_v60 = vpop.f32.mrf.mxu2  ;;  %v1499_v13 = vadd.f32 %v1471_v10, %v1349_v28  ;;  %v1624_v29 = vpop.f32.mrf.mxu0 }
 0x211   : > { %v1857_v19 = vadd.f32 %v1856_v50, %v1855_v22  ;;  %v1350_v53 = vadd.f32 %v1324_v60, %v1200_v44  ;;  %v1739_v22 = vpop.permute.xlu1 %1738 }
 0x212   : > { %v1649_v17 = vadd.f32 %v1621_v34, %v1499_v13  ;;  %v1744_v13 = vpop.permute.xlu2 %1743 }
 0x213   : > { %v1177_v61 = vpop.f32.mrf.mxu1 }
 0x214   : > { %v1761_v42 = vmul.f32 %v1724_v39, %v1649_v17  ;;  %v1201_v26 = vadd.f32 %v1177_v61, %v2750_v31 }
 0x216   : > { %1778 = vst.msk [vmem:[%s2777_s28 + $0x50] sm:$0xff] %vm1767_vm3, %v1761_v42  ;;  %v1803_v30 = vsel %vm1767_vm3, %v1761_v42, 0.0  ;;  %v1833_v4 = vmul.f32 %v1761_v42, %v1761_v42 }
 0x217   : > { %v1804_v12 = vadd.f32 %v1803_v30, %v1802_v51  ;;  %v1474_v36 = vpop.f32.mrf.mxu3 }
 0x218   : > { %v1858_v5 = vsel %vm1767_vm3, %v1833_v4, 0.0  ;;  %v1327_v33 = vpop.f32.mrf.mxu2  ;;  %v1500_v35 = vadd.f32 %v1474_v36, %v1350_v53  ;;  %v1627_v1 = vpop.f32.mrf.mxu0 }
 0x219   : > { %v1859_v11 = vadd.f32 %v1858_v5, %v1857_v19  ;;  %v1351_v45 = vadd.f32 %v1327_v33, %v1201_v26  ;;  %v1749_v5 = vpop.permute.xlu0 %1748 }
 0x21a   : > { %v1650_v21 = vadd.f32 %v1624_v29, %v1500_v35 }
 0x21b   : > { %v1180_v14 = vpop.f32.mrf.mxu1 }
 0x21c   : > { %v1762_v63 = vmul.f32 %v1729_v58, %v1650_v21  ;;  %v1202_v31 = vadd.f32 %v1180_v14, %v2758_v41 }
 0x21e   : > { %1779 = vst.msk [vmem:[%s2777_s28 + $0x58] sm:$0xff] %vm1767_vm3, %v1762_v63  ;;  %v1805_v0 = vsel %vm1767_vm3, %v1762_v63, 0.0  ;;  %v1834_v20 = vmul.f32 %v1762_v63, %v1762_v63 }
 0x21f   : > { %v1806_v25 = vadd.f32 %v1805_v0, %v1804_v12  ;;  %v1477_v27 = vpop.f32.mrf.mxu3 }
 0x220   : > { %v1860_v16 = vsel %vm1767_vm3, %v1834_v20, 0.0  ;;  %v1330_v38 = vpop.f32.mrf.mxu2  ;;  %v1501_v59 = vadd.f32 %v1477_v27, %v1351_v45  ;;  %v1630_v46 = vpop.f32.mrf.mxu0 }
 0x221   : > { %v1861_v2 = vadd.f32 %v1860_v16, %v1859_v11  ;;  %v1352_v52 = vadd.f32 %v1330_v38, %v1202_v31 }
 0x222   : > { %v1651_v43 = vadd.f32 %v1627_v1, %v1501_v59 }
 0x223   : > { %v1183_v62 = vpop.f32.mrf.mxu1 }
 0x224   : > { %v1763_v18 = vmul.f32 %v1734_v8, %v1651_v43  ;;  %v1203_v41 = vadd.f32 %v1183_v62, %v2765_v57 }
 0x226   : > { %1780 = vst.msk [vmem:[%s2777_s28 + $0x60] sm:$0xff] %vm1767_vm3, %v1763_v18  ;;  %v1807_v47 = vsel %vm1767_vm3, %v1763_v18, 0.0  ;;  %v1835_v7 = vmul.f32 %v1763_v18, %v1763_v18 }
 0x227   : > { %v1808_v15 = vadd.f32 %v1807_v47, %v1806_v25  ;;  %v1480_v6 = vpop.f32.mrf.mxu3 }
 0x228   : > { %v1862_v3 = vsel %vm1767_vm3, %v1835_v7, 0.0  ;;  %v1502_v32 = vadd.f32 %v1480_v6, %v1352_v52  ;;  %v1333_v24 = vpop.f32.mrf.mxu2  ;;  %v1633_v48 = vpop.f32.mrf.mxu0 }
 0x229   : > { %v1863_v9 = vadd.f32 %v1862_v3, %v1861_v2  ;;  %v1353_v49 = vadd.f32 %v1333_v24, %v1203_v41 }
 0x22a   : > { %v1652_v34 = vadd.f32 %v1630_v46, %v1502_v32 }
 0x22b   : > { %v1186_v10 = vpop.f32.mrf.mxu1 }
 0x22c   : > { %v1764_v54 = vmul.f32 %v1739_v22, %v1652_v34  ;;  %v1204_v57 = vadd.f32 %v1186_v10, %v2769_v37 }
 0x22e   : > { %1781 = vst.msk [vmem:[%s2777_s28 + $0x68] sm:$0xff] %vm1767_vm3, %v1764_v54  ;;  %v1809_v56 = vsel %vm1767_vm3, %v1764_v54, 0.0  ;;  %v1836_v55 = vmul.f32 %v1764_v54, %v1764_v54 }
 0x22f   : > { %v1483_v28 = vpop.f32.mrf.mxu3  ;;  %v1810_v23 = vadd.f32 %v1809_v56, %v1808_v15 }
 0x230   : > { %v1864_v40 = vsel %vm1767_vm3, %v1836_v55, 0.0  ;;  %v1503_v51 = vadd.f32 %v1483_v28, %v1353_v49  ;;  %v1336_v19 = vpop.f32.mrf.mxu2  ;;  %v1636_v53 = vpop.f32.mrf.mxu0 }
 0x231   : > { %v1865_v50 = vadd.f32 %v1864_v40, %v1863_v9  ;;  %v1354_v17 = vadd.f32 %v1336_v19, %v1204_v57 }
 0x232   : > { %v1653_v60 = vadd.f32 %v1633_v48, %v1503_v51 }
 0x234   : > { %v1765_v29 = vmul.f32 %v1744_v13, %v1653_v60 }
 0x236   : > { %1782 = vst.msk [vmem:[%s2777_s28 + $0x70] sm:$0xff] %vm1767_vm3, %v1765_v29  ;;  %v1811_v39 = vsel %vm1767_vm3, %v1765_v29, 0.0  ;;  %v1837_v61 = vmul.f32 %v1765_v29, %v1765_v29 }
 0x237   : > { %v1812_v44 = vadd.f32 %v1811_v39, %v1810_v23  ;;  %v1486_v42 = vpop.f32.mrf.mxu3 }
 0x238   : > { %v1866_v30 = vsel %vm1767_vm3, %v1837_v61, 0.0  ;;  %v1504_v4 = vadd.f32 %v1486_v42, %v1354_v17 }
 0x239   : > { %v1867_v12 = vadd.f32 %v1866_v30, %v1865_v50 }
 0x23a   : > { %v1654_v36 = vadd.f32 %v1636_v53, %v1504_v4 }
 0x23c   : > { %v1766_v33 = vmul.f32 %v1749_v5, %v1654_v36 }
 0x23e   : > { %1783 = vst.msk [vmem:[%s2777_s28 + $0x78] sm:$0xff] %vm1767_vm3, %v1766_v33  ;;  %v1813_v37 = vsel %vm1767_vm3, %v1766_v33, 0.0  ;;  %v1838_v35 = vmul.f32 %v1766_v33, %v1766_v33 }
 0x23f   : > { %v1814_v11 = vadd.f32 %v1813_v37, %v1812_v44 }
 0x240   : > { %v1868_v21 = vsel %vm1767_vm3, %v1838_v35, 0.0 }
 0x241   : > { %v1815_v58 = vrot.slane %v1814_v11, 4  ;;  %v1869_v1 = vadd.f32 %v1868_v21, %v1867_v12 }
 0x243   : > { %v1816_v26 = vadd.f32 %v1815_v58, %v1814_v11  ;;  %v1870_v63 = vrot.slane %v1869_v1, 4 }
 0x245   : > { %v1817_v14 = vrot.slane %v1816_v26, 2  ;;  %v1871_v45 = vadd.f32 %v1870_v63, %v1869_v1 }
 0x247   : > { %v1818_v0 = vadd.f32 %v1817_v14, %v1816_v26  ;;  %v1872_v20 = vrot.slane %v1871_v45, 2 }
 0x249   : > { %v1819_v25 = vrot.slane %v1818_v0, 1  ;;  %v1873_v27 = vadd.f32 %v1872_v20, %v1871_v45 }
 0x24b   : > { %v1820_v16 = vadd.f32 %v1819_v25, %v1818_v0  ;;  %v1874_v38 = vrot.slane %v1873_v27, 1 }
 0x24d   : > { %1822 = vst.msk [vmem:[%s208_s5] sm:$0x1] %vm1821_vm4, %v1820_v16  ;;  %v1875_v59 = vadd.f32 %v1874_v38, %v1873_v27 }
 0x24f   : > { %1876 = vst.msk [vmem:[%s208_s5 + $0x1] sm:$0x1] %vm1821_vm4, %v1875_v59 }
 0x250 PF: > { %s15_s15 = sadd.s32 1, %s2161_s15  }
 0x251   : > { %p12_p4 = scmp.ge.s32.totalorder %s15_s15, 4  }
 0x253   :  { %14 = sbr.rel (!%p12_p4) target bundleno = 1 (0x1), region = 82 }

// kernel: down_forward.4
= control target key start
LH: loop header
LB: loop body
LE: loop exit
PB: predicated region body
PF: predicated region fallthrough
CT: control target
= control target key end

     0   :  { %s2202_s21 = smov 0   ;;  %s2957_s0 = inlined_call_operand.vmem [shape: f32[2,128,8], index: 0, kind: input, shape index: {}]   ;;  %s2958_s1 = inlined_call_operand.vmem [shape: f32[9,8,8], index: 1, kind: input, shape index: {}]   ;;  %s2959_s2 = inlined_call_operand.vmem [shape: f32[1,8], index: 2, kind: input, shape index: {}]   ;;  %s2960_s3 = inlined_call_operand.vmem [shape: f32[1,8], index: 3, kind: input, shape index: {}]   ;;  %s2961_s4 = inlined_call_operand.vmem [shape: f32[128,1], index: 4, kind: input, shape index: {}]   ;;  %s2962_s5 = inlined_call_operand.vmem [shape: f32[2,128,8], index: 5, kind: output, shape index: {0}]   ;;  %s2963_s6 = inlined_call_operand.vmem [shape: f32[2,2,8], index: 6, kind: output, shape index: {1}]  }
   0x1 LB: > { %s1973_s22 = sadd.s32 4294967295, %s2163_s21   ;;  %p1977_p0 = scmp.ge.s32.totalorder %s2163_s21, 1  ;;  %s2163_s21 = sphi %s2202_s21, %s17_s21  }
   0x2   : > { %p215_p1 = scmp.lt.s32.totalorder %s2163_s21, 3 }
   0x4   : > { %p216_p2 = pnand %p1977_p0, %p215_p1 }
   0x6   : > { %219 = sbr.rel (%p216_p2) target bundleno = 584 (0x248), region = 40 }
   0xb   : > { %v274_v0 = vld [vmem:[%s2961_s4 + $0x58] sm:$0xff]  ;;  %v269_v1 = vld [vmem:[%s2961_s4 + $0x30] sm:$0xff]  ;;  %v2165_v3 = vmov 0   ;;  %v267_v7 = vld [vmem:[%s2961_s4 + $0x20] sm:$0xff]  ;;  %p249_p3 = scmp.lt.s32.totalorder %s1973_s22, 1  ;;  %vm447_vm0 = vcmask 64512  }
   0xc   : > { %v265_v2 = vld [vmem:[%s2961_s4 + $0x10] sm:$0xff]  ;;  %2154 = vset.pattern.permute.xlu2 %v2165_v3  ;;  %2153 = vset.pattern.permute.xlu1 %v2165_v3  ;;  %v266_v4 = vld [vmem:[%s2961_s4 + $0x18] sm:$0xff]  ;;  %v271_v8 = vld [vmem:[%s2961_s4 + $0x40] sm:$0xff]  ;;  %v2166_v32 = vmov 0.0   ;;  %vm1831_vm1 = vcmask 57344  }
   0xd   : > { %2152 = vset.pattern.permute.xlu0 %v2165_v3  ;;  %408 = vperm.xlu2 %2154, %v274_v0   ;;  %v273_v5 = vld [vmem:[%s2961_s4 + $0x50] sm:$0xff]  ;;  %v270_v6 = vld [vmem:[%s2961_s4 + $0x38] sm:$0xff]  ;;  %v275_v9 = vld [vmem:[%s2961_s4 + $0x60] sm:$0xff]  ;;  %s3020_s22 = smov (!%p249_p3, %s1973_s22), 1  ;;  %448 = vst.msk [vmem:[#allocation2] sm:$0xff] %vm447_vm0, %v2166_v32 }
   0xe   : > { %383 = vperm.xlu0 %2152, %v269_v1   ;;  %363 = vperm.xlu1 %2153, %v265_v2   ;;  %v276_v10 = vld [vmem:[%s2961_s4 + $0x68] sm:$0xff]  ;;  %v263_v12 = vld [vmem:[%s2961_s4] sm:$0xff]  ;;  %v277_v13 = vld [vmem:[%s2961_s4 + $0x70] sm:$0xff]  ;;  %s2137_s9 = sshll.u32 %s3020_s22, 7  ;;  %449 = vst.msk [vmem:[#allocation2 + $0x8] sm:$0xff] %vm447_vm0, %v2166_v32 }
   0xf   : > { %v272_v11 = vld [vmem:[%s2961_s4 + $0x48] sm:$0xff]  ;;  %v278_v16 = vld [vmem:[%s2961_s4 + $0x78] sm:$0xff]  ;;  %s2270_s12 = scalar_lea.vmem %s2957_s0, %s2137_s9  ;;  %v2276_v18 = vld [vmem:[%s2959_s2] ss:$0 sm:$0xff]  ;;  %450 = vst.msk [vmem:[#allocation2 + $0x10] sm:$0xff] %vm447_vm0, %v2166_v32  ;;  %s2854_s16 = scalar_lea.vmem %s2962_s5, %s2137_s9 }
  0x10   : > { %v268_v14 = vld [vmem:[%s2961_s4 + $0x28] sm:$0xff]  ;;  %v290_v17 = vld [vmem:[%s2270_s12 + $0x58] sm:$0xff]  ;;  %v2282_v20 = vld [vmem:[%s2960_s3] ss:$0 sm:$0xff]  ;;  %451 = vst.msk [vmem:[#allocation2 + $0x18] sm:$0xff] %vm447_vm0, %v2166_v32  ;;  %s1982_s9 = sshll.u32 %s3020_s22, 1 }
  0x11   : > { %v264_v15 = vld [vmem:[%s2961_s4 + $0x8] sm:$0xff]  ;;  %v310_v19 = vmul.f32 %v2276_v18, %v290_v17  ;;  %v282_v22 = vld [vmem:[%s2270_s12 + $0x18] sm:$0xff]  ;;  %v283_v28 = vld [vmem:[%s2270_s12 + $0x20] sm:$0xff]  ;;  %452 = vst.msk [vmem:[#allocation2 + $0x90] sm:$0xff] %vm447_vm0, %v2166_v32  ;;  %s262_s19 = scalar_lea.vmem %s2963_s6, %s1982_s9 }
  0x12   : > { %v302_v24 = vmul.f32 %v2276_v18, %v282_v22  ;;  %v1983_v29 = vld [vmem:[%s2958_s1 + $0x8] sm:$0xff]  ;;  %v303_v31 = vmul.f32 %v2276_v18, %v283_v28  ;;  %v285_v37 = vld [vmem:[%s2270_s12 + $0x30] sm:$0xff]  ;;  %453 = vst.msk [vmem:[#allocation2 + $0x98] sm:$0xff] %vm447_vm0, %v2166_v32  ;;  %v2033_v43 = vld [vmem:[%s2958_s1 + $0x18] sm:$0xff] }
  0x13   : > { %v330_v21 = vadd.f32 %v2282_v20, %v310_v19  ;;  %2139 = vmatpush.msra.mxu1 %v1983_v29  ;;  %2140 = vmatpush.msra.mxu2 %v1983_v29  ;;  %v292_v36 = vld [vmem:[%s2270_s12 + $0x68] sm:$0xff]  ;;  %v281_v38 = vld [vmem:[%s2270_s12 + $0x10] sm:$0xff]  ;;  %454 = vst.msk [vmem:[#allocation2 + $0xa0] sm:$0xff] %vm447_vm0, %v2166_v32  ;;  %v305_v44 = vmul.f32 %v2276_v18, %v285_v37  ;;  %v488_v46 = vld [vmem:[%s2958_s1] sm:$0xff] }
  0x14   : > { %v322_v27 = vadd.f32 %v2282_v20, %v302_v24  ;;  %570 = vmatpush.msra.mxu0 %v1983_v29  ;;  %2141 = vmatpush.msra.mxu3 %v1983_v29  ;;  %v323_v35 = vadd.f32 %v2282_v20, %v303_v31  ;;  %v312_v40 = vmul.f32 %v2276_v18, %v292_v36  ;;  %v2016_v41 = vld [vmem:[%s2958_s1 + $0x10] sm:$0xff]  ;;  %v286_v54 = vld [vmem:[%s2270_s12 + $0x38] sm:$0xff]  ;;  %v2050_v58 = vld [vmem:[%s2958_s1 + $0x20] sm:$0xff] }
  0x15   : > { %368 = vperm.xlu2 %2154, %v266_v4   ;;  %v346_v23 = vmax.f32 %v330_v21, 0.0  ;;  %v489_v42 = vld [vmem:[#allocation2 + $0x1] sm:$0xff]  ;;  %v301_v45 = vmul.f32 %v2276_v18, %v281_v38  ;;  %814 = vmatpush.msrb.mxu2 %v2016_v41  ;;  %v325_v50 = vadd.f32 %v2282_v20, %v305_v44  ;;  %v293_v52 = vld [vmem:[%s2270_s12 + $0x70] sm:$0xff]  ;;  %v306_v62 = vmul.f32 %v2276_v18, %v286_v54 }
  0x16   : > { %403 = vperm.xlu0 %2152, %v273_v5   ;;  %388 = vperm.xlu1 %2153, %v270_v6   ;;  %v338_v30 = vmax.f32 %v322_v27, 0.0  ;;  %v339_v39 = vmax.f32 %v323_v35, 0.0  ;;  %v332_v49 = vadd.f32 %v2282_v20, %v312_v40  ;;  %v289_v53 = vld [vmem:[%s2270_s12 + $0x50] sm:$0xff]  ;;  %v313_v57 = vmul.f32 %v2276_v18, %v293_v52  ;;  %v279_v31 = vld [vmem:[%s2270_s12] sm:$0xff]  ;;  %v2067_v52 = vld [vmem:[%s2958_s1 + $0x28] sm:$0xff] }
  0x17   : > { %1984 = vmatmul.msk.f32.vlgmr.msra.gmra.mxu0 %vm447_vm0, %v489_v42  ;;  %961 = vmatpush.msrb.mxu3 %v2033_v43  ;;  %v321_v51 = vadd.f32 %v2282_v20, %v301_v45  ;;  %v490_v55 = vld [vmem:[#allocation2 + $0x9] sm:$0xff]  ;;  %v341_v59 = vmax.f32 %v325_v50, 0.0  ;;  %v309_v61 = vmul.f32 %v2276_v18, %v289_v53  ;;  %v299_v38 = vmul.f32 %v2276_v18, %v279_v31 }
  0x18   : > { %683 = vmatpush.msrb.mxu1 %v488_v46  ;;  %v348_v56 = vmax.f32 %v332_v49, 0.0  ;;  %1108 = vmatpush.msrb.mxu0 %v2050_v58  ;;  %v333_v3 = vadd.f32 %v2282_v20, %v313_v57  ;;  %v280_v49 = vld [vmem:[%s2270_s12 + $0x8] sm:$0xff] }
  0x19   : > { %v337_v60 = vmax.f32 %v321_v51, 0.0  ;;  %v329_v6 = vadd.f32 %v2282_v20, %v309_v61  ;;  %v319_v45 = vadd.f32 %v2282_v20, %v299_v38  ;;  %v2101_v51 = vld [vmem:[%s2958_s1 + $0x38] sm:$0xff] }
  0x1b   : > { %v335_v54 = vmax.f32 %v319_v45, 0.0 }
  0x1d   : > { %373 = vperm.xlu2 %2154, %v267_v7   ;;  %v326_v7 = vadd.f32 %v2282_v20, %v306_v62 }
  0x1e   : > { %393 = vperm.xlu0 %2152, %v271_v8   ;;  %413 = vperm.xlu1 %2153, %v275_v9   ;;  %v287_v8 = vld [vmem:[%s2270_s12 + $0x40] sm:$0xff] }
  0x1f   : > { %1985 = vmatmul.msk.f32.gmra.mxu0 %vm447_vm0, %v490_v55  ;;  %v291_v9 = vld [vmem:[%s2270_s12 + $0x60] sm:$0xff] }
  0x25   : > { %418 = vperm.xlu2 %2154, %v276_v10   ;;  %v294_v10 = vld [vmem:[%s2270_s12 + $0x78] sm:$0xff] }
  0x26   : > { %398 = vperm.xlu0 %2152, %v272_v11   ;;  %353 = vperm.xlu1 %2153, %v263_v12   ;;  %v349_v11 = vmax.f32 %v333_v3, 0.0  ;;  %v314_v12 = vmul.f32 %v2276_v18, %v294_v10 }
  0x28   : > { %v2364_v17 = vadd.f32 %v2282_v20, %v314_v12 }
  0x2d   : > { %423 = vperm.xlu2 %2154, %v277_v13   ;;  %v345_v13 = vmax.f32 %v329_v6, 0.0 }
  0x2e   : > { %378 = vperm.xlu0 %2152, %v268_v14   ;;  %358 = vperm.xlu1 %2153, %v264_v15   ;;  %v342_v14 = vmax.f32 %v326_v7, 0.0  ;;  %v307_v15 = vmul.f32 %v2276_v18, %v287_v8 }
  0x30   : > { %v327_v27 = vadd.f32 %v2282_v20, %v307_v15 }
  0x32   : > { %v343_v35 = vmax.f32 %v327_v27, 0.0 }
  0x36   : > { %428 = vperm.xlu0 %2152, %v278_v16   ;;  %v311_v16 = vmul.f32 %v2276_v18, %v291_v9 }
  0x38   : > { %v331_v28 = vadd.f32 %v2282_v20, %v311_v16  ;;  %v733_v16 = vld [vmem:[#allocation2 + $0x2] sm:$0xff] }
  0x3a   : > { %v347_v36 = vmax.f32 %v331_v28, 0.0 }
  0x67   : > { %v2287_v25 = vpop.permute.xlu2 %408 }
  0x68   : > { %2981 = vst [vmem:[#allocation3_spill] sm:$0xff] %v2287_v25  ;;  %v442_v26 = vmul.f32 %v2287_v25, %v346_v23 }
  0x6a   : > { %467 = vst.msk [vmem:[#allocation2 + $0x69] sm:$0xff] %vm447_vm0, %v442_v26 }
  0x6f   : > { %v2299_v33 = vpop.permute.xlu2 %368 }
  0x70   : > { %2982 = vst [vmem:[#allocation4_spill] sm:$0xff] %v2299_v33  ;;  %v434_v34 = vmul.f32 %v2299_v33, %v338_v30  ;;  %v288_v30 = vld [vmem:[%s2270_s12 + $0x48] sm:$0xff] }
  0x71   : > { %v308_v37 = vmul.f32 %v2276_v18, %v288_v30  ;;  %v2437_v3 = vld [vmem:[#allocation2 + $0x69] sm:$0xff] }
  0x72   : > { %459 = vst.msk [vmem:[#allocation2 + $0x29] sm:$0xff] %vm447_vm0, %v434_v34  ;;  %v2084_v34 = vld [vmem:[%s2958_s1 + $0x30] sm:$0xff]  ;;  %v473_v30 = vld [vmem:[#allocation2 + $0x8] sm:$0xff] }
  0x73   : > { %v328_v44 = vadd.f32 %v2282_v20, %v308_v37 }
  0x75   : > { %v344_v53 = vmax.f32 %v328_v44, 0.0 }
  0x77   : > { %v2325_v47 = vpop.permute.xlu2 %373 }
  0x78   : > { %2983 = vst [vmem:[#allocation5_spill] sm:$0xff] %v2325_v47  ;;  %v435_v48 = vmul.f32 %v2325_v47, %v339_v39 }
  0x79   : > { %v2401_v43 = vld [vmem:[#allocation2 + $0x29] sm:$0xff] }
  0x7a   : > { %460 = vst.msk [vmem:[#allocation2 + $0x31] sm:$0xff] %vm447_vm0, %v435_v48  ;;  %v284_v48 = vld [vmem:[%s2270_s12 + $0x28] sm:$0xff] }
  0x7b   : > { %v304_v55 = vmul.f32 %v2276_v18, %v284_v48 }
  0x7d   : > { %v324_v61 = vadd.f32 %v2282_v20, %v304_v55 }
  0x7f   : > { %v2342_v63 = vpop.permute.xlu2 %418 }
  0x80   : > { %2984 = vst [vmem:[#allocation6_spill] sm:$0xff] %v2342_v63  ;;  %v2344_v0 = vpop.permute.xlu0 %383  ;;  %v444_v1 = vmul.f32 %v2342_v63, %v348_v56  ;;  %v2347_v2 = vpop.permute.xlu1 %363  ;;  %v300_v56 = vmul.f32 %v2276_v18, %v280_v49 }
  0x81   : > { %2985 = vst [vmem:[#allocation7_spill] sm:$0xff] %v2344_v0  ;;  %v437_v4 = vmul.f32 %v2344_v0, %v341_v59  ;;  %v433_v5 = vmul.f32 %v2347_v2, %v337_v60  ;;  %v2440_v18 = vld [vmem:[#allocation2 + $0x31] sm:$0xff] }
  0x82   : > { %2986 = vst [vmem:[#allocation8_spill] sm:$0xff] %v2347_v2  ;;  %v320_v62 = vadd.f32 %v2282_v20, %v300_v56  ;;  %v2118_v20 = vld [vmem:[%s2958_s1 + $0x40] sm:$0xff] }
  0x83   : > { %469 = vst.msk [vmem:[#allocation2 + $0x79] sm:$0xff] %vm447_vm0, %v444_v1  ;;  %1696 = vmatpush.msra.mxu0 %v2118_v20 }
  0x84   : > { %462 = vst.msk [vmem:[#allocation2 + $0x41] sm:$0xff] %vm447_vm0, %v437_v4  ;;  %v340_v4 = vmax.f32 %v324_v61, 0.0 }
  0x85   : > { %458 = vst.msk [vmem:[#allocation2 + $0x21] sm:$0xff] %vm447_vm0, %v433_v5  ;;  %v336_v5 = vmax.f32 %v320_v62, 0.0 }
  0x87   : > { %v2366_v19 = vpop.permute.xlu2 %423 }
  0x88   : > { %2987 = vst [vmem:[#allocation9_spill] sm:$0xff] %v2366_v19  ;;  %v2368_v21 = vpop.permute.xlu0 %403  ;;  %v445_v22 = vmul.f32 %v2366_v19, %v349_v11  ;;  %v2371_v23 = vpop.permute.xlu1 %388 }
  0x89   : > { %2988 = vst [vmem:[#allocation10_spill] sm:$0xff] %v2368_v21  ;;  %v441_v24 = vmul.f32 %v2368_v21, %v345_v13  ;;  %v438_v26 = vmul.f32 %v2371_v23, %v342_v14  ;;  %v350_v13 = vmax.f32 %v2364_v17, 0.0  ;;  %v472_v17 = vld [vmem:[#allocation2] sm:$0xff] }
  0x8a   : > { %2989 = vst [vmem:[#allocation11_spill] sm:$0xff] %v2371_v23 }
  0x8b   : > { %470 = vst.msk [vmem:[#allocation2 + $0x81] sm:$0xff] %vm447_vm0, %v445_v22  ;;  %v2378_v29 = vld [vmem:[#allocation2 + $0x41] sm:$0xff] }
  0x8c   : > { %466 = vst.msk [vmem:[#allocation2 + $0x61] sm:$0xff] %vm447_vm0, %v441_v24  ;;  %v2383_v32 = vld [vmem:[#allocation2 + $0x21] sm:$0xff]  ;;  %1992 = vmatmul.msk.f32.vlgmr.msra.gmra.mxu2 %vm447_vm0, %v2378_v29  ;;  %v2475_v24 = vld [vmem:[#allocation2 + $0x79] sm:$0xff] }
  0x8d   : > { %463 = vst.msk [vmem:[#allocation2 + $0x49] sm:$0xff] %vm447_vm0, %v438_v26  ;;  %1988 = vmatmul.msk.f32.vlgmr.msra.gmra.mxu1 %vm447_vm0, %v2383_v32  ;;  %1402 = vmatpush.msra.mxu2 %v2084_v34  ;;  %v2506_v37 = vld [vmem:[#allocation2 + $0x28] sm:$0xff] }
  0x8e   : > { %1255 = vmatpush.msra.mxu1 %v2067_v52  ;;  %v2509_v38 = vld [vmem:[#allocation2 + $0x22] sm:$0xff] }
  0x90   : > { %v2395_v39 = vpop.permute.xlu0 %393  ;;  %v2397_v40 = vpop.permute.xlu1 %413 }
  0x91   : > { %2990 = vst [vmem:[#allocation12_spill] sm:$0xff] %v2395_v39  ;;  %v439_v41 = vmul.f32 %v2395_v39, %v343_v35  ;;  %v443_v42 = vmul.f32 %v2397_v40, %v347_v36 }
  0x92   : > { %2991 = vst [vmem:[#allocation13_spill] sm:$0xff] %v2397_v40  ;;  %v2657_v19 = vld [vmem:[#allocation2 + $0x7a] sm:$0xff] }
  0x93   : > { %v2405_v46 = vld [vmem:[#allocation2 + $0x61] sm:$0xff]  ;;  %464 = vst.msk [vmem:[#allocation2 + $0x51] sm:$0xff] %vm447_vm0, %v439_v41  ;;  %v2517_v41 = vld [vmem:[#allocation2 + $0x30] sm:$0xff] }
  0x94   : > { %v2410_v50 = vld [vmem:[#allocation2 + $0x49] sm:$0xff]  ;;  %1996 = vmatmul.msk.f32.vlgmr.msra.gmra.mxu3 %vm447_vm0, %v2405_v46  ;;  %468 = vst.msk [vmem:[#allocation2 + $0x71] sm:$0xff] %vm447_vm0, %v443_v42  ;;  %v2661_v63 = vld [vmem:[#allocation2 + $0x81] sm:$0xff] }
  0x95   : > { %1989 = vmatmul.msk.f32.gmra.mxu1 %vm447_vm0, %v2401_v43  ;;  %1993 = vmatmul.msk.f32.gmra.mxu2 %vm447_vm0, %v2410_v50  ;;  %v2521_v42 = vld [vmem:[#allocation2 + $0x2a] sm:$0xff]  ;;  %v2557_v52 = vld [vmem:[#allocation2 + $0x42] sm:$0xff] }
  0x96   : > { %1549 = vmatpush.msra.mxu3 %v2101_v51  ;;  %v2553_v51 = vld [vmem:[#allocation2 + $0x48] sm:$0xff] }
  0x97   : > { %v2601_v61 = vld [vmem:[#allocation2 + $0x68] sm:$0xff] }
  0x98   : > { %v2427_v57 = vpop.permute.xlu0 %398  ;;  %v2429_v58 = vpop.permute.xlu1 %353  ;;  %v2605_v62 = vld [vmem:[#allocation2 + $0x62] sm:$0xff] }
  0x99   : > { %2992 = vst [vmem:[#allocation14_spill] sm:$0xff] %v2427_v57  ;;  %v440_v59 = vmul.f32 %v2427_v57, %v344_v53  ;;  %v431_v60 = vmul.f32 %v2429_v58, %v335_v54 }
  0x9a   : > { %2993 = vst [vmem:[#allocation15_spill] sm:$0xff] %v2429_v58  ;;  %v2435_v1 = vld [vmem:[#allocation2 + $0x51] sm:$0xff] }
  0x9b   : > { %465 = vst.msk [vmem:[#allocation2 + $0x59] sm:$0xff] %vm447_vm0, %v440_v59  ;;  %v2460_v11 = vld [vmem:[#allocation2 + $0x71] sm:$0xff] }
  0x9c   : > { %1997 = vmatmul.msk.f32.gmra.mxu3 %vm447_vm0, %v2437_v3  ;;  %456 = vst.msk [vmem:[#allocation2 + $0x11] sm:$0xff] %vm447_vm0, %v431_v60  ;;  %v2565_v53 = vld [vmem:[#allocation2 + $0x50] sm:$0xff] }
  0x9d   : > { %1990 = vmatmul.msk.f32.gmra.mxu1 %vm447_vm0, %v2440_v18  ;;  %1994 = vmatmul.msk.f32.gmra.mxu2 %vm447_vm0, %v2435_v1  ;;  %v2569_v54 = vld [vmem:[#allocation2 + $0x4a] sm:$0xff] }
  0xa0   : > { %v2452_v6 = vpop.permute.xlu0 %378  ;;  %v2454_v7 = vpop.permute.xlu1 %358 }
  0xa1   : > { %2994 = vst [vmem:[#allocation16_spill] sm:$0xff] %v2452_v6  ;;  %v436_v8 = vmul.f32 %v2452_v6, %v340_v4  ;;  %v432_v9 = vmul.f32 %v2454_v7, %v336_v5  ;;  %v572_v4 = vpop.f32.mrf.mxu0 }
  0xa2   : > { %2995 = vst [vmem:[#allocation17_spill] sm:$0xff] %v2454_v7  ;;  %v2458_v10 = vld [vmem:[#allocation2 + $0x59] sm:$0xff] }
  0xa3   : > { %461 = vst.msk [vmem:[#allocation2 + $0x39] sm:$0xff] %vm447_vm0, %v436_v8  ;;  %v491_v12 = vld [vmem:[#allocation2 + $0x11] sm:$0xff]  ;;  %v2589_v59 = vld [vmem:[#allocation2 + $0x60] sm:$0xff] }
  0xa4   : > { %1998 = vmatmul.msk.f32.gmra.mxu3 %vm447_vm0, %v2460_v11  ;;  %457 = vst.msk [vmem:[#allocation2 + $0x19] sm:$0xff] %vm447_vm0, %v432_v9  ;;  %1986 = vmatmul.msk.f32.gmra.mxu0 %vm447_vm0, %v491_v12  ;;  %v880_v27 = vld [vmem:[#allocation2 + $0x10] sm:$0xff]  ;;  %v2577_v55 = vld [vmem:[#allocation2 + $0x58] sm:$0xff] }
  0xa5   : > { %1995 = vmatmul.msk.f32.gmra.mxu2 %vm447_vm0, %v2458_v10  ;;  %v734_v28 = vld [vmem:[#allocation2 + $0xa] sm:$0xff]  ;;  %v2581_v56 = vld [vmem:[#allocation2 + $0x52] sm:$0xff]  ;;  %v2593_v60 = vld [vmem:[#allocation2 + $0x5a] sm:$0xff] }
  0xa6   : > { %v2617_v8 = vld [vmem:[#allocation2 + $0x70] sm:$0xff] }
  0xa7   : > { %v2621_v9 = vld [vmem:[#allocation2 + $0x6a] sm:$0xff] }
  0xa8   : > { %v2470_v14 = vpop.permute.xlu0 %428 }
  0xa9   : > { %2996 = vst [vmem:[#allocation18_spill] sm:$0xff] %v2470_v14  ;;  %v446_v15 = vmul.f32 %v2470_v14, %v350_v13  ;;  %v2653_v14 = vld [vmem:[#allocation2 + $0x80] sm:$0xff] }
  0xaa   : > { %v2473_v22 = vld [vmem:[#allocation2 + $0x39] sm:$0xff] }
  0xab   : > { %471 = vst.msk [vmem:[#allocation2 + $0x89] sm:$0xff] %vm447_vm0, %v446_v15  ;;  %v492_v26 = vld [vmem:[#allocation2 + $0x19] sm:$0xff]  ;;  %1991 = vmatmul.msk.f32.gmra.mxu1 %vm447_vm0, %v2473_v22 }
  0xac   : > { %1999 = vmatmul.msk.f32.gmra.mxu3 %vm447_vm0, %v2475_v24  ;;  %1987 = vmatmul.msk.f32.gmra.mxu0 %vm447_vm0, %v492_v26  ;;  %v881_v31 = vld [vmem:[#allocation2 + $0x18] sm:$0xff]  ;;  %v2495_v35 = vld [vmem:[#allocation2 + $0x20] sm:$0xff] }
  0xad   : > { %2017 = vmatmul.msk.f32.vlgmr.msrb.gmra.mxu2 %vm447_vm0, %v733_v16  ;;  %v2489_v34 = vld [vmem:[#allocation2 + $0x12] sm:$0xff]  ;;  %v2498_v36 = vld [vmem:[#allocation2 + $0x1a] sm:$0xff]  ;;  %v575_v16 = vpop.f32.mrf.mxu0 }
  0xae   : > { %v2529_v44 = vld [vmem:[#allocation2 + $0x38] sm:$0xff]  ;;  %v2541_v48 = vld [vmem:[#allocation2 + $0x40] sm:$0xff] }
  0xaf   : > { %v2533_v45 = vld [vmem:[#allocation2 + $0x32] sm:$0xff]  ;;  %v2545_v49 = vld [vmem:[#allocation2 + $0x3a] sm:$0xff] }
  0xb2   : > { %v2673_v39 = vld [vmem:[#allocation2 + $0x88] sm:$0xff] }
  0xb3   : > { %2000 = vmatmul.msk.f32.vlgmr.msrb.gmra.mxu1 %vm447_vm0, %v472_v17  ;;  %v2639_v17 = vld [vmem:[#allocation2 + $0x72] sm:$0xff]  ;;  %v2679_v23 = vld [vmem:[#allocation2 + $0x89] sm:$0xff] }
  0xb4   : > { %2034 = vmatmul.msk.f32.vlgmr.msrb.gmra.mxu3 %vm447_vm0, %v880_v27  ;;  %2051 = vmatmul.msk.f32.vlgmr.msrb.gmra.mxu0 %vm447_vm0, %v491_v12  ;;  %2998 = vst [vmem:[#allocation20_spill] sm:$0xff] %v2679_v23 }
  0xb5   : > { %2018 = vmatmul.msk.f32.gmra.mxu2 %vm447_vm0, %v734_v28 }
  0xbb   : > { %2001 = vmatmul.msk.f32.gmra.mxu1 %vm447_vm0, %v473_v30 }
  0xbc   : > { %2035 = vmatmul.msk.f32.gmra.mxu3 %vm447_vm0, %v881_v31  ;;  %2052 = vmatmul.msk.f32.gmra.mxu0 %vm447_vm0, %v492_v26  ;;  %v2635_v26 = vld [vmem:[#allocation2 + $0x78] sm:$0xff] }
  0xbd   : > { %2019 = vmatmul.msk.f32.gmra.mxu2 %vm447_vm0, %v2489_v34 }
  0xc3   : > { %2002 = vmatmul.msk.f32.gmra.mxu1 %vm447_vm0, %v880_v27 }
  0xc4   : > { %2036 = vmatmul.msk.f32.gmra.mxu3 %vm447_vm0, %v2495_v35  ;;  %2053 = vmatmul.msk.f32.gmra.mxu0 %vm447_vm0, %v2383_v32 }
  0xc5   : > { %2020 = vmatmul.msk.f32.gmra.mxu2 %vm447_vm0, %v2498_v36 }
  0xcb   : > { %2003 = vmatmul.msk.f32.gmra.mxu1 %vm447_vm0, %v881_v31 }
  0xcc   : > { %2037 = vmatmul.msk.f32.gmra.mxu3 %vm447_vm0, %v2506_v37  ;;  %2054 = vmatmul.msk.f32.gmra.mxu0 %vm447_vm0, %v2401_v43 }
  0xcd   : > { %2021 = vmatmul.msk.f32.gmra.mxu2 %vm447_vm0, %v2509_v38 }
  0xd3   : > { %2004 = vmatmul.msk.f32.gmra.mxu1 %vm447_vm0, %v2495_v35 }
  0xd4   : > { %2038 = vmatmul.msk.f32.gmra.mxu3 %vm447_vm0, %v2517_v41  ;;  %2055 = vmatmul.msk.f32.gmra.mxu0 %vm447_vm0, %v2440_v18 }
  0xd5   : > { %2022 = vmatmul.msk.f32.gmra.mxu2 %vm447_vm0, %v2521_v42 }
  0xdb   : > { %2005 = vmatmul.msk.f32.gmra.mxu1 %vm447_vm0, %v2506_v37 }
  0xdc   : > { %2039 = vmatmul.msk.f32.gmra.mxu3 %vm447_vm0, %v2529_v44  ;;  %2056 = vmatmul.msk.f32.gmra.mxu0 %vm447_vm0, %v2473_v22 }
  0xdd   : > { %2023 = vmatmul.msk.f32.gmra.mxu2 %vm447_vm0, %v2533_v45 }
  0xe3   : > { %2006 = vmatmul.msk.f32.gmra.mxu1 %vm447_vm0, %v2517_v41 }
  0xe4   : > { %2040 = vmatmul.msk.f32.gmra.mxu3 %vm447_vm0, %v2541_v48  ;;  %2057 = vmatmul.msk.f32.gmra.mxu0 %vm447_vm0, %v2378_v29 }
  0xe5   : > { %2024 = vmatmul.msk.f32.gmra.mxu2 %vm447_vm0, %v2545_v49 }
  0xeb   : > { %2007 = vmatmul.msk.f32.gmra.mxu1 %vm447_vm0, %v2529_v44 }
  0xec   : > { %2041 = vmatmul.msk.f32.gmra.mxu3 %vm447_vm0, %v2553_v51  ;;  %2058 = vmatmul.msk.f32.gmra.mxu0 %vm447_vm0, %v2410_v50 }
  0xed   : > { %2025 = vmatmul.msk.f32.gmra.mxu2 %vm447_vm0, %v2557_v52 }
  0xf3   : > { %2008 = vmatmul.msk.f32.gmra.mxu1 %vm447_vm0, %v2541_v48 }
  0xf4   : > { %2042 = vmatmul.msk.f32.gmra.mxu3 %vm447_vm0, %v2565_v53  ;;  %2059 = vmatmul.msk.f32.gmra.mxu0 %vm447_vm0, %v2435_v1 }
  0xf5   : > { %2026 = vmatmul.msk.f32.gmra.mxu2 %vm447_vm0, %v2569_v54 }
  0xfb   : > { %2009 = vmatmul.msk.f32.gmra.mxu1 %vm447_vm0, %v2553_v51 }
  0xfc   : > { %2043 = vmatmul.msk.f32.gmra.mxu3 %vm447_vm0, %v2577_v55  ;;  %2060 = vmatmul.msk.f32.gmra.mxu0 %vm447_vm0, %v2458_v10 }
  0xfd   : > { %2027 = vmatmul.msk.f32.gmra.mxu2 %vm447_vm0, %v2581_v56 }
 0x103   : > { %2010 = vmatmul.msk.f32.gmra.mxu1 %vm447_vm0, %v2565_v53 }
 0x104   : > { %2044 = vmatmul.msk.f32.gmra.mxu3 %vm447_vm0, %v2589_v59  ;;  %2061 = vmatmul.msk.f32.gmra.mxu0 %vm447_vm0, %v2405_v46 }
 0x105   : > { %2028 = vmatmul.msk.f32.gmra.mxu2 %vm447_vm0, %v2593_v60 }
 0x10a   : > { %v2609_v20 = vpop.f32.mrf.mxu1 }
 0x10b   : > { %2011 = vmatmul.msk.f32.gmra.mxu1 %vm447_vm0, %v2577_v55 }
 0x10c   : > { %2045 = vmatmul.msk.f32.gmra.mxu3 %vm447_vm0, %v2601_v61  ;;  %2062 = vmatmul.msk.f32.gmra.mxu0 %vm447_vm0, %v2437_v3 }
 0x10d   : > { %2029 = vmatmul.msk.f32.gmra.mxu2 %vm447_vm0, %v2605_v62 }
 0x10f   : > { %v2615_v5 = vpop.f32.mrf.mxu2 }
 0x112   : > { %v2629_v12 = vpop.f32.mrf.mxu1 }
 0x113   : > { %2012 = vmatmul.msk.f32.gmra.mxu1 %vm447_vm0, %v2589_v59 }
 0x114   : > { %2046 = vmatmul.msk.f32.gmra.mxu3 %vm447_vm0, %v2617_v8  ;;  %2063 = vmatmul.msk.f32.gmra.mxu0 %vm447_vm0, %v2460_v11 }
 0x115   : > { %2030 = vmatmul.msk.f32.gmra.mxu2 %vm447_vm0, %v2621_v9 }
 0x117   : > { %v2631_v13 = vpop.f32.mrf.mxu3 }
 0x118   : > { %v2633_v15 = vpop.f32.mrf.mxu2 }
 0x11a   : > { %v2651_v30 = vpop.f32.mrf.mxu1 }
 0x11b   : > { %2013 = vmatmul.msk.f32.gmra.mxu1 %vm447_vm0, %v2601_v61 }
 0x11c   : > { %2047 = vmatmul.msk.f32.gmra.mxu3 %vm447_vm0, %v2635_v26  ;;  %2064 = vmatmul.msk.f32.gmra.mxu0 %vm447_vm0, %v2475_v24 }
 0x11d   : > { %2031 = vmatmul.msk.f32.gmra.mxu2 %vm447_vm0, %v2639_v17 }
 0x11f   : > { %v2647_v27 = vpop.f32.mrf.mxu3 }
 0x120   : > { %v2649_v28 = vpop.f32.mrf.mxu2 }
 0x121   : > { %v578_v31 = vpop.f32.mrf.mxu0 }
 0x123   : > { %2014 = vmatmul.msk.f32.gmra.mxu1 %vm447_vm0, %v2617_v8 }
 0x124   : > { %2048 = vmatmul.msk.f32.gmra.mxu3 %vm447_vm0, %v2653_v14  ;;  %2065 = vmatmul.msk.f32.gmra.mxu0 %vm447_vm0, %v2661_v63 }
 0x125   : > { %2032 = vmatmul.msk.f32.gmra.mxu2 %vm447_vm0, %v2657_v19 }
 0x127   : > { %v2667_v40 = vpop.f32.mrf.mxu3 }
 0x128   : > { %2997 = vst [vmem:[#allocation19_spill] sm:$0xff] %v2667_v40  ;;  %v2669_v25 = vpop.f32.mrf.mxu2  ;;  %v2671_v21 = vpop.f32.mrf.mxu1 }
 0x129   : > { %v581_v57 = vpop.f32.mrf.mxu0 }
 0x12b   : > { %2015 = vmatmul.msk.f32.gmra.mxu1 %vm447_vm0, %v2635_v26 }
 0x12c   : > { %2049 = vmatmul.msk.f32.gmra.mxu3 %vm447_vm0, %v2673_v39  ;;  %2066 = vmatmul.msk.f32.gmra.mxu0 %vm447_vm0, %v2679_v23 }
 0x12d   : > { %2085 = vmatmul.msk.f32.vlgmr.msra.gmra.mxu2 %vm447_vm0, %v2495_v35 }
 0x12f   : > { %v2685_v0 = vpop.f32.mrf.mxu3 }
 0x130   : > { %2999 = vst [vmem:[#allocation21_spill] sm:$0xff] %v2685_v0  ;;  %v816_v6 = vpop.f32.mrf.mxu2  ;;  %v685_v47 = vpop.f32.mrf.mxu1 }
 0x131   : > { %v686_v33 = vadd.f32 %v685_v47, %v572_v4  ;;  %v1110_v2 = vpop.f32.mrf.mxu0 }
 0x133   : > { %2068 = vmatmul.msk.f32.vlgmr.msra.gmra.mxu1 %vm447_vm0, %v2489_v34  ;;  %v864_v7 = vadd.f32 %v816_v6, %v686_v33 }
 0x134   : > { %2102 = vmatmul.msk.f32.vlgmr.msra.gmra.mxu3 %vm447_vm0, %v2383_v32  ;;  %2119 = vmatmul.msk.f32.vlgmr.msra.gmra.mxu0 %vm447_vm0, %v2509_v38 }
 0x135   : > { %2086 = vmatmul.msk.f32.gmra.mxu2 %vm447_vm0, %v2506_v37 }
 0x137   : > { %v963_v35 = vpop.f32.mrf.mxu3 }
 0x138   : > { %v819_v58 = vpop.f32.mrf.mxu2  ;;  %v1011_v0 = vadd.f32 %v963_v35, %v864_v7  ;;  %v688_v40 = vpop.f32.mrf.mxu1 }
 0x139   : > { %v689_v23 = vadd.f32 %v688_v40, %v575_v16  ;;  %v1113_v47 = vpop.f32.mrf.mxu0 }
 0x13a   : > { %v2695_v4 = vadd.f32 %v1110_v2, %v1011_v0 }
 0x13b   : > { %2069 = vmatmul.msk.f32.gmra.mxu1 %vm447_vm0, %v2498_v36  ;;  %v865_v32 = vadd.f32 %v819_v58, %v689_v23 }
 0x13c   : > { %2103 = vmatmul.msk.f32.gmra.mxu3 %vm447_vm0, %v2401_v43  ;;  %2120 = vmatmul.msk.f32.gmra.mxu0 %vm447_vm0, %v2521_v42 }
 0x13d   : > { %2087 = vmatmul.msk.f32.gmra.mxu2 %vm447_vm0, %v2517_v41 }
 0x13f   : > { %v966_v33 = vpop.f32.mrf.mxu3 }
 0x140   : > { %v822_v6 = vpop.f32.mrf.mxu2  ;;  %v1012_v7 = vadd.f32 %v966_v33, %v865_v32  ;;  %v691_v40 = vpop.f32.mrf.mxu1 }
 0x141   : > { %v692_v34 = vadd.f32 %v691_v40, %v578_v31  ;;  %v1116_v0 = vpop.f32.mrf.mxu0 }
 0x142   : > { %v2705_v2 = vadd.f32 %v1113_v47, %v1012_v7 }
 0x143   : > { %2070 = vmatmul.msk.f32.gmra.mxu1 %vm447_vm0, %v2509_v38  ;;  %v866_v23 = vadd.f32 %v822_v6, %v692_v34 }
 0x144   : > { %2104 = vmatmul.msk.f32.gmra.mxu3 %vm447_vm0, %v2440_v18  ;;  %2121 = vmatmul.msk.f32.gmra.mxu0 %vm447_vm0, %v2533_v45 }
 0x145   : > { %2088 = vmatmul.msk.f32.gmra.mxu2 %vm447_vm0, %v2529_v44 }
 0x147   : > { %v969_v43 = vpop.f32.mrf.mxu3 }
 0x148   : > { %v825_v58 = vpop.f32.mrf.mxu2  ;;  %v1013_v36 = vadd.f32 %v969_v43, %v866_v23  ;;  %v694_v37 = vpop.f32.mrf.mxu1 }
 0x149   : > { %v695_v41 = vadd.f32 %v694_v37, %v581_v57  ;;  %v1119_v16 = vpop.f32.mrf.mxu0 }
 0x14a   : > { %v2715_v31 = vadd.f32 %v1116_v0, %v1013_v36 }
 0x14b   : > { %2071 = vmatmul.msk.f32.gmra.mxu1 %vm447_vm0, %v2521_v42  ;;  %v867_v18 = vadd.f32 %v825_v58, %v695_v41 }
 0x14c   : > { %2105 = vmatmul.msk.f32.gmra.mxu3 %vm447_vm0, %v2473_v22  ;;  %2122 = vmatmul.msk.f32.gmra.mxu0 %vm447_vm0, %v2545_v49 }
 0x14d   : > { %2089 = vmatmul.msk.f32.gmra.mxu2 %vm447_vm0, %v2541_v48 }
 0x14f   : > { %v972_v38 = vpop.f32.mrf.mxu3 }
 0x150   : > { %v828_v44 = vpop.f32.mrf.mxu2  ;;  %v1014_v35 = vadd.f32 %v972_v38, %v867_v18  ;;  %v697_v57 = vpop.f32.mrf.mxu1 }
 0x151   : > { %v698_v47 = vadd.f32 %v697_v57, %v2609_v20  ;;  %v1122_v32 = vpop.f32.mrf.mxu0 }
 0x152   : > { %v2726_v33 = vadd.f32 %v1119_v16, %v1014_v35 }
 0x153   : > { %2072 = vmatmul.msk.f32.gmra.mxu1 %vm447_vm0, %v2533_v45  ;;  %v868_v22 = vadd.f32 %v828_v44, %v698_v47 }
 0x154   : > { %2106 = vmatmul.msk.f32.gmra.mxu3 %vm447_vm0, %v2378_v29  ;;  %2123 = vmatmul.msk.f32.gmra.mxu0 %vm447_vm0, %v2557_v52 }
 0x155   : > { %2090 = vmatmul.msk.f32.gmra.mxu2 %vm447_vm0, %v2553_v51 }
 0x157   : > { %v975_v42 = vpop.f32.mrf.mxu3 }
 0x158   : > { %v831_v48 = vpop.f32.mrf.mxu2  ;;  %v1015_v6 = vadd.f32 %v975_v42, %v868_v22  ;;  %v700_v20 = vpop.f32.mrf.mxu1 }
 0x159   : > { %v701_v7 = vadd.f32 %v700_v20, %v2629_v12  ;;  %v1125_v40 = vpop.f32.mrf.mxu0 }
 0x15a   : > { %v2737_v34 = vadd.f32 %v1122_v32, %v1015_v6 }
 0x15b   : > { %2073 = vmatmul.msk.f32.gmra.mxu1 %vm447_vm0, %v2545_v49  ;;  %v869_v29 = vadd.f32 %v831_v48, %v701_v7 }
 0x15c   : > { %2107 = vmatmul.msk.f32.gmra.mxu3 %vm447_vm0, %v2410_v50  ;;  %2124 = vmatmul.msk.f32.gmra.mxu0 %vm447_vm0, %v2569_v54 }
 0x15d   : > { %2091 = vmatmul.msk.f32.gmra.mxu2 %vm447_vm0, %v2565_v53 }
 0x15f   : > { %v978_v45 = vpop.f32.mrf.mxu3 }
 0x160   : > { %v834_v51 = vpop.f32.mrf.mxu2  ;;  %v1016_v0 = vadd.f32 %v978_v45, %v869_v29  ;;  %v703_v12 = vpop.f32.mrf.mxu1 }
 0x161   : > { %v704_v23 = vadd.f32 %v703_v12, %v2651_v30  ;;  %v1128_v43 = vpop.f32.mrf.mxu0 }
 0x162   : > { %v2748_v58 = vadd.f32 %v1125_v40, %v1016_v0 }
 0x163   : > { %2074 = vmatmul.msk.f32.gmra.mxu1 %vm447_vm0, %v2557_v52  ;;  %v870_v50 = vadd.f32 %v834_v51, %v704_v23 }
 0x164   : > { %2108 = vmatmul.msk.f32.gmra.mxu3 %vm447_vm0, %v2435_v1  ;;  %2125 = vmatmul.msk.f32.gmra.mxu0 %vm447_vm0, %v2581_v56 }
 0x165   : > { %2092 = vmatmul.msk.f32.gmra.mxu2 %vm447_vm0, %v2577_v55 }
 0x167   : > { %v981_v49 = vpop.f32.mrf.mxu3 }
 0x168   : > { %v837_v53 = vpop.f32.mrf.mxu2  ;;  %v1017_v36 = vadd.f32 %v981_v49, %v870_v50  ;;  %v706_v30 = vpop.f32.mrf.mxu1 }
 0x169   : > { %v707_v37 = vadd.f32 %v706_v30, %v2671_v21  ;;  %v1131_v41 = vpop.f32.mrf.mxu0  ;;  %v1628_v30 = vld [vmem:[#allocation2 + $0x8a] sm:$0xff] }
 0x16a   : > { %v2759_v16 = vadd.f32 %v1128_v43, %v1017_v36 }
 0x16b   : > { %2075 = vmatmul.msk.f32.gmra.mxu1 %vm447_vm0, %v2569_v54  ;;  %v871_v1 = vadd.f32 %v837_v53, %v707_v37 }
 0x16c   : > { %2109 = vmatmul.msk.f32.gmra.mxu3 %vm447_vm0, %v2458_v10  ;;  %2126 = vmatmul.msk.f32.gmra.mxu0 %vm447_vm0, %v2593_v60 }
 0x16d   : > { %2093 = vmatmul.msk.f32.gmra.mxu2 %vm447_vm0, %v2589_v59 }
 0x16f   : > { %v984_v52 = vpop.f32.mrf.mxu3 }
 0x170   : > { %v840_v55 = vpop.f32.mrf.mxu2  ;;  %v1018_v18 = vadd.f32 %v984_v52, %v871_v1  ;;  %v709_v21 = vpop.f32.mrf.mxu1  ;;  %v1482_v52 = vld [vmem:[#allocation2 + $0x91] sm:$0xff] }
 0x171   : > { %v710_v38 = vadd.f32 %v709_v21, %v2615_v5  ;;  %v1134_v44 = vpop.f32.mrf.mxu0 }
 0x172   : > { %v2770_v35 = vadd.f32 %v1131_v41, %v1018_v18 }
 0x173   : > { %2076 = vmatmul.msk.f32.gmra.mxu1 %vm447_vm0, %v2581_v56  ;;  %v872_v10 = vadd.f32 %v840_v55, %v710_v38  ;;  %v3001_v55 = vld [vmem:[#allocation19_spill] sm:$0xff]  ;;  %v1336_v38 = vld [vmem:[#allocation2 + $0x98] sm:$0xff] }
 0x174   : > { %2110 = vmatmul.msk.f32.gmra.mxu3 %vm447_vm0, %v2405_v46  ;;  %2127 = vmatmul.msk.f32.gmra.mxu0 %vm447_vm0, %v2605_v62 }
 0x175   : > { %2094 = vmatmul.msk.f32.gmra.mxu2 %vm447_vm0, %v2601_v61 }
 0x177   : > { %v987_v54 = vpop.f32.mrf.mxu3 }
 0x178   : > { %v843_v59 = vpop.f32.mrf.mxu2  ;;  %v1019_v57 = vadd.f32 %v987_v54, %v872_v10  ;;  %v712_v5 = vpop.f32.mrf.mxu1 }
 0x179   : > { %v713_v47 = vadd.f32 %v712_v5, %v2633_v15  ;;  %v1137_v32 = vpop.f32.mrf.mxu0 }
 0x17a   : > { %v2781_v22 = vadd.f32 %v1134_v44, %v1019_v57 }
 0x17b   : > { %2077 = vmatmul.msk.f32.gmra.mxu1 %vm447_vm0, %v2593_v60  ;;  %v873_v46 = vadd.f32 %v843_v59, %v713_v47  ;;  %v1483_v47 = vld [vmem:[#allocation2 + $0x99] sm:$0xff] }
 0x17c   : > { %2111 = vmatmul.msk.f32.gmra.mxu3 %vm447_vm0, %v2437_v3  ;;  %2128 = vmatmul.msk.f32.gmra.mxu0 %vm447_vm0, %v2621_v9 }
 0x17d   : > { %2095 = vmatmul.msk.f32.gmra.mxu2 %vm447_vm0, %v2617_v8 }
 0x17f   : > { %v990_v56 = vpop.f32.mrf.mxu3 }
 0x180   : > { %v846_v61 = vpop.f32.mrf.mxu2  ;;  %v1020_v42 = vadd.f32 %v990_v56, %v873_v46  ;;  %v715_v15 = vpop.f32.mrf.mxu1 }
 0x181   : > { %v716_v48 = vadd.f32 %v715_v15, %v2649_v28  ;;  %v1140_v6 = vpop.f32.mrf.mxu0 }
 0x182   : > { %v2792_v20 = vadd.f32 %v1137_v32, %v1020_v42  ;;  %v3002_v32 = vld [vmem:[#allocation21_spill] sm:$0xff] }
 0x183   : > { %2078 = vmatmul.msk.f32.gmra.mxu1 %vm447_vm0, %v2605_v62  ;;  %v874_v3 = vadd.f32 %v846_v61, %v716_v48  ;;  %v1630_v61 = vld [vmem:[#allocation2 + $0x9a] sm:$0xff] }
 0x184   : > { %2112 = vmatmul.msk.f32.gmra.mxu3 %vm447_vm0, %v2460_v11  ;;  %2129 = vmatmul.msk.f32.gmra.mxu0 %vm447_vm0, %v2639_v17 }
 0x185   : > { %2096 = vmatmul.msk.f32.gmra.mxu2 %vm447_vm0, %v2635_v26 }
 0x187   : > { %v993_v60 = vpop.f32.mrf.mxu3 }
 0x188   : > { %v849_v8 = vpop.f32.mrf.mxu2  ;;  %v1021_v7 = vadd.f32 %v993_v60, %v874_v3  ;;  %v718_v28 = vpop.f32.mrf.mxu1 }
 0x189   : > { %v719_v40 = vadd.f32 %v718_v28, %v2669_v25  ;;  %v1143_v29 = vpop.f32.mrf.mxu0 }
 0x18a   : > { %v2803_v45 = vadd.f32 %v1140_v6, %v1021_v7 }
 0x18b   : > { %2079 = vmatmul.msk.f32.gmra.mxu1 %vm447_vm0, %v2621_v9  ;;  %v875_v11 = vadd.f32 %v849_v8, %v719_v40 }
 0x18c   : > { %2113 = vmatmul.msk.f32.gmra.mxu3 %vm447_vm0, %v2475_v24  ;;  %2130 = vmatmul.msk.f32.gmra.mxu0 %vm447_vm0, %v2657_v19  ;;  %v1627_v24 = vld [vmem:[#allocation2 + $0x82] sm:$0xff] }
 0x18d   : > { %2097 = vmatmul.msk.f32.gmra.mxu2 %vm447_vm0, %v2653_v14 }
 0x18f   : > { %v996_v62 = vpop.f32.mrf.mxu3 }
 0x190   : > { %v852_v26 = vpop.f32.mrf.mxu2  ;;  %v1022_v51 = vadd.f32 %v996_v62, %v875_v11  ;;  %v721_v25 = vpop.f32.mrf.mxu1 }
 0x191   : > { %v722_v0 = vadd.f32 %v721_v25, %v2631_v13  ;;  %v1146_v12 = vpop.f32.mrf.mxu0 }
 0x192   : > { %v2814_v23 = vadd.f32 %v1143_v29, %v1022_v51 }
 0x193   : > { %2080 = vmatmul.msk.f32.gmra.mxu1 %vm447_vm0, %v2639_v17  ;;  %v876_v14 = vadd.f32 %v852_v26, %v722_v0  ;;  %v3000_v17 = vld [vmem:[#allocation20_spill] sm:$0xff] }
 0x194   : > { %2114 = vmatmul.msk.f32.gmra.mxu3 %vm447_vm0, %v2661_v63  ;;  %2131 = vmatmul.msk.f32.gmra.mxu0 %vm447_vm0, %v1627_v24  ;;  %v1335_v63 = vld [vmem:[#allocation2 + $0x90] sm:$0xff] }
 0x195   : > { %2098 = vmatmul.msk.f32.gmra.mxu2 %vm447_vm0, %v2673_v39 }
 0x197   : > { %v999_v9 = vpop.f32.mrf.mxu3 }
 0x198   : > { %v855_v43 = vpop.f32.mrf.mxu2  ;;  %v1023_v50 = vadd.f32 %v999_v9, %v876_v14  ;;  %v724_v13 = vpop.f32.mrf.mxu1 }
 0x199   : > { %v725_v49 = vadd.f32 %v724_v13, %v2647_v27  ;;  %v1149_v53 = vpop.f32.mrf.mxu0 }
 0x19a   : > { %v2824_v36 = vadd.f32 %v1146_v12, %v1023_v50  ;;  %v3003_v12 = vld [vmem:[#allocation15_spill] sm:$0xff] }
 0x19b   : > { %2081 = vmatmul.msk.f32.gmra.mxu1 %vm447_vm0, %v2657_v19  ;;  %v877_v39 = vadd.f32 %v855_v43, %v725_v49  ;;  %v1629_v19 = vld [vmem:[#allocation2 + $0x92] sm:$0xff] }
 0x19c   : > { %2115 = vmatmul.msk.f32.gmra.mxu3 %vm447_vm0, %v3000_v17  ;;  %2132 = vmatmul.msk.f32.gmra.mxu0 %vm447_vm0, %v1628_v30 }
 0x19d   : > { %2099 = vmatmul.msk.f32.gmra.mxu2 %vm447_vm0, %v1335_v63  ;;  %v3004_v63 = vld [vmem:[#allocation17_spill] sm:$0xff] }
 0x19f   : > { %v1002_v37 = vpop.f32.mrf.mxu3 }
 0x1a0   : > { %v858_v41 = vpop.f32.mrf.mxu2  ;;  %v1024_v1 = vadd.f32 %v1002_v37, %v877_v39  ;;  %v727_v27 = vpop.f32.mrf.mxu1 }
 0x1a1   : > { %v728_v18 = vadd.f32 %v727_v27, %v3001_v55  ;;  %v1152_v21 = vpop.f32.mrf.mxu0 }
 0x1a2   : > { %v2833_v44 = vadd.f32 %v1149_v53, %v1024_v1 }
 0x1a3   : > { %2082 = vmatmul.msk.f32.gmra.mxu1 %vm447_vm0, %v1627_v24  ;;  %v878_v10 = vadd.f32 %v858_v41, %v728_v18 }
 0x1a4   : > { %2116 = vmatmul.msk.f32.gmra.mxu3 %vm447_vm0, %v1482_v52  ;;  %2133 = vmatmul.msk.f32.gmra.mxu0 %vm447_vm0, %v1629_v19 }
 0x1a5   : > { %2100 = vmatmul.msk.f32.gmra.mxu2 %vm447_vm0, %v1336_v38 }
 0x1a7   : > { %v1005_v54 = vpop.f32.mrf.mxu3 }
 0x1a8   : > { %v861_v59 = vpop.f32.mrf.mxu2  ;;  %v1025_v57 = vadd.f32 %v1005_v54, %v878_v10  ;;  %v730_v5 = vpop.f32.mrf.mxu1 }
 0x1a9   : > { %v731_v46 = vadd.f32 %v730_v5, %v3002_v32  ;;  %v1155_v56 = vpop.f32.mrf.mxu0 }
 0x1aa   : > { %v2840_v42 = vadd.f32 %v1152_v21, %v1025_v57 }
 0x1ab   : > { %2083 = vmatmul.msk.f32.gmra.mxu1 %vm447_vm0, %v1628_v30  ;;  %v879_v15 = vadd.f32 %v861_v59, %v731_v46  ;;  %v3005_v59 = vld [vmem:[#allocation8_spill] sm:$0xff] }
 0x1ac   : > { %2117 = vmatmul.msk.f32.gmra.mxu3 %vm447_vm0, %v1483_v47  ;;  %2134 = vmatmul.msk.f32.gmra.mxu0 %vm447_vm0, %v1630_v61 }
 0x1af   : > { %v1008_v48 = vpop.f32.mrf.mxu3 }
 0x1b0   : > { %v1026_v6 = vadd.f32 %v1008_v48, %v879_v15  ;;  %v1404_v3 = vpop.f32.mrf.mxu2  ;;  %v1257_v60 = vpop.f32.mrf.mxu1 }
 0x1b1   : > { %v1305_v8 = vadd.f32 %v1257_v60, %v2695_v4  ;;  %v1698_v7 = vpop.f32.mrf.mxu0 }
 0x1b2   : > { %v2846_v28 = vadd.f32 %v1155_v56, %v1026_v6 }
 0x1b3   : > { %v1452_v40 = vadd.f32 %v1404_v3, %v1305_v8 }
 0x1b7   : > { %v1551_v29 = vpop.f32.mrf.mxu3 }
 0x1b8   : > { %v1407_v11 = vpop.f32.mrf.mxu2  ;;  %v1599_v62 = vadd.f32 %v1551_v29, %v1452_v40  ;;  %v1260_v26 = vpop.f32.mrf.mxu1 }
 0x1b9   : > { %v1306_v25 = vadd.f32 %v1260_v26, %v2705_v2  ;;  %v1701_v0 = vpop.f32.mrf.mxu0 }
 0x1ba   : > { %v1746_v51 = vadd.f32 %v1698_v7, %v1599_v62  ;;  %v3006_v7 = vld [vmem:[#allocation4_spill] sm:$0xff] }
 0x1bb   : > { %v1453_v24 = vadd.f32 %v1407_v11, %v1306_v25 }
 0x1bc   : > { %v1762_v4 = vmul.f32 %v1746_v51, %v3003_v12 }
 0x1be   : > { %1778 = vst.msk [vmem:[%s2854_s16] sm:$0xff] %vm447_vm0, %v1762_v4  ;;  %v1833_v53 = vmul.f32 %v1762_v4, %v1762_v4  ;;  %v1794_v30 = vsel %vm447_vm0, %v1762_v4, 0.0 }
 0x1bf   : > { %v1554_v14 = vpop.f32.mrf.mxu3 }
 0x1c0   : > { %v1410_v9 = vpop.f32.mrf.mxu2  ;;  %v1600_v43 = vadd.f32 %v1554_v14, %v1453_v24  ;;  %v1263_v50 = vpop.f32.mrf.mxu1  ;;  %v1849_v52 = vsel %vm447_vm0, %v1833_v53, 0.0 }
 0x1c1   : > { %v1307_v2 = vadd.f32 %v1263_v50, %v2715_v31  ;;  %v1704_v49 = vpop.f32.mrf.mxu0 }
 0x1c2   : > { %v1747_v13 = vadd.f32 %v1701_v0, %v1600_v43  ;;  %v3007_v43 = vld [vmem:[#allocation5_spill] sm:$0xff] }
 0x1c3   : > { %v1454_v41 = vadd.f32 %v1410_v9, %v1307_v2 }
 0x1c4   : > { %v1763_v17 = vmul.f32 %v1747_v13, %v3004_v63 }
 0x1c6   : > { %1779 = vst.msk [vmem:[%s2854_s16 + $0x8] sm:$0xff] %vm447_vm0, %v1763_v17  ;;  %v1795_v39 = vsel %vm447_vm0, %v1763_v17, 0.0  ;;  %v1834_v37 = vmul.f32 %v1763_v17, %v1763_v17 }
 0x1c7   : > { %v1796_v1 = vadd.f32 %v1795_v39, %v1794_v30  ;;  %v1557_v27 = vpop.f32.mrf.mxu3 }
 0x1c8   : > { %v1850_v55 = vsel %vm447_vm0, %v1834_v37, 0.0  ;;  %v1413_v31 = vpop.f32.mrf.mxu2  ;;  %v1601_v18 = vadd.f32 %v1557_v27, %v1454_v41  ;;  %v1266_v38 = vpop.f32.mrf.mxu1 }
 0x1c9   : > { %v1851_v21 = vadd.f32 %v1850_v55, %v1849_v52  ;;  %v1308_v10 = vadd.f32 %v1266_v38, %v2726_v33  ;;  %v1707_v54 = vpop.f32.mrf.mxu0  ;;  %v3008_v52 = vld [vmem:[#allocation16_spill] sm:$0xff] }
 0x1ca   : > { %v1748_v19 = vadd.f32 %v1704_v49, %v1601_v18 }
 0x1cb   : > { %v1455_v32 = vadd.f32 %v1413_v31, %v1308_v10 }
 0x1cc   : > { %v1764_v57 = vmul.f32 %v1748_v19, %v3005_v59 }
 0x1ce   : > { %1780 = vst.msk [vmem:[%s2854_s16 + $0x10] sm:$0xff] %vm447_vm0, %v1764_v57  ;;  %v1797_v5 = vsel %vm447_vm0, %v1764_v57, 0.0  ;;  %v1835_v47 = vmul.f32 %v1764_v57, %v1764_v57 }
 0x1cf   : > { %v1798_v46 = vadd.f32 %v1797_v5, %v1796_v1  ;;  %v1560_v56 = vpop.f32.mrf.mxu3 }
 0x1d0   : > { %v1852_v61 = vsel %vm447_vm0, %v1835_v47, 0.0  ;;  %v1416_v15 = vpop.f32.mrf.mxu2  ;;  %v1602_v48 = vadd.f32 %v1560_v56, %v1455_v32  ;;  %v1269_v3 = vpop.f32.mrf.mxu1 }
 0x1d1   : > { %v1853_v6 = vadd.f32 %v1852_v61, %v1851_v21  ;;  %v1309_v33 = vadd.f32 %v1269_v3, %v2737_v34  ;;  %v1710_v8 = vpop.f32.mrf.mxu0 }
 0x1d2   : > { %v1749_v60 = vadd.f32 %v1707_v54, %v1602_v48 }
 0x1d3   : > { %v1456_v62 = vadd.f32 %v1416_v15, %v1309_v33 }
 0x1d4   : > { %v1765_v40 = vmul.f32 %v1749_v60, %v3006_v7 }
 0x1d6   : > { %1781 = vst.msk [vmem:[%s2854_s16 + $0x18] sm:$0xff] %vm447_vm0, %v1765_v40  ;;  %v1799_v29 = vsel %vm447_vm0, %v1765_v40, 0.0  ;;  %v1836_v11 = vmul.f32 %v1765_v40, %v1765_v40 }
 0x1d7   : > { %v1800_v26 = vadd.f32 %v1799_v29, %v1798_v46  ;;  %v1563_v51 = vpop.f32.mrf.mxu3  ;;  %v3009_v46 = vld [vmem:[#allocation7_spill] sm:$0xff] }
 0x1d8   : > { %v1854_v25 = vsel %vm447_vm0, %v1836_v11, 0.0  ;;  %v1419_v0 = vpop.f32.mrf.mxu2  ;;  %v1603_v12 = vadd.f32 %v1563_v51, %v1456_v62  ;;  %v1272_v24 = vpop.f32.mrf.mxu1  ;;  %v3010_v62 = vld [vmem:[#allocation11_spill] sm:$0xff] }
 0x1d9   : > { %v1855_v4 = vadd.f32 %v1854_v25, %v1853_v6  ;;  %v1310_v34 = vadd.f32 %v1272_v24, %v2748_v58  ;;  %v1713_v9 = vpop.f32.mrf.mxu0 }
 0x1da   : > { %v1750_v14 = vadd.f32 %v1710_v8, %v1603_v12 }
 0x1db   : > { %v1457_v49 = vadd.f32 %v1419_v0, %v1310_v34 }
 0x1dc   : > { %v1766_v50 = vmul.f32 %v1750_v14, %v3007_v43 }
 0x1de   : > { %1782 = vst.msk [vmem:[%s2854_s16 + $0x20] sm:$0xff] %vm447_vm0, %v1766_v50  ;;  %v1801_v13 = vsel %vm447_vm0, %v1766_v50, 0.0  ;;  %v1837_v2 = vmul.f32 %v1766_v50, %v1766_v50 }
 0x1df   : > { %v1802_v53 = vadd.f32 %v1801_v13, %v1800_v26  ;;  %v1566_v63 = vpop.f32.mrf.mxu3 }
 0x1e0   : > { %v1856_v17 = vsel %vm447_vm0, %v1837_v2, 0.0  ;;  %v1422_v30 = vpop.f32.mrf.mxu2  ;;  %v1604_v39 = vadd.f32 %v1566_v63, %v1457_v49  ;;  %v1275_v41 = vpop.f32.mrf.mxu1  ;;  %v3011_v2 = vld [vmem:[#allocation12_spill] sm:$0xff] }
 0x1e1   : > { %v1857_v37 = vadd.f32 %v1856_v17, %v1855_v4  ;;  %v1311_v58 = vadd.f32 %v1275_v41, %v2759_v16  ;;  %v1716_v27 = vpop.f32.mrf.mxu0 }
 0x1e2   : > { %v1751_v1 = vadd.f32 %v1713_v9, %v1604_v39 }
 0x1e3   : > { %v1458_v21 = vadd.f32 %v1422_v30, %v1311_v58 }
 0x1e4   : > { %v1767_v55 = vmul.f32 %v1751_v1, %v3008_v52 }
 0x1e6   : > { %1783 = vst.msk [vmem:[%s2854_s16 + $0x28] sm:$0xff] %vm447_vm0, %v1767_v55  ;;  %v1803_v31 = vsel %vm447_vm0, %v1767_v55, 0.0  ;;  %v1838_v18 = vmul.f32 %v1767_v55, %v1767_v55 }
 0x1e7   : > { %v1804_v38 = vadd.f32 %v1803_v31, %v1802_v53  ;;  %v1569_v19 = vpop.f32.mrf.mxu3  ;;  %v3012_v31 = vld [vmem:[#allocation14_spill] sm:$0xff] }
 0x1e8   : > { %v1858_v10 = vsel %vm447_vm0, %v1838_v18, 0.0  ;;  %v1425_v54 = vpop.f32.mrf.mxu2  ;;  %v1605_v59 = vadd.f32 %v1569_v19, %v1458_v21  ;;  %v1278_v5 = vpop.f32.mrf.mxu1 }
 0x1e9   : > { %v1859_v57 = vadd.f32 %v1858_v10, %v1857_v37  ;;  %v1312_v16 = vadd.f32 %v1278_v5, %v2770_v35  ;;  %v1719_v32 = vpop.f32.mrf.mxu0 }
 0x1ea   : > { %v1752_v47 = vadd.f32 %v1716_v27, %v1605_v59 }
 0x1eb   : > { %v1459_v48 = vadd.f32 %v1425_v54, %v1312_v16 }
 0x1ec   : > { %v1768_v56 = vmul.f32 %v1752_v47, %v3009_v46 }
 0x1ee   : > { %1784 = vst.msk [vmem:[%s2854_s16 + $0x30] sm:$0xff] %vm447_vm0, %v1768_v56  ;;  %v1805_v61 = vsel %vm447_vm0, %v1768_v56, 0.0  ;;  %v1839_v15 = vmul.f32 %v1768_v56, %v1768_v56  ;;  %v3013_v56 = vld [vmem:[#allocation10_spill] sm:$0xff] }
 0x1ef   : > { %v1806_v6 = vadd.f32 %v1805_v61, %v1804_v38  ;;  %v1572_v3 = vpop.f32.mrf.mxu3 }
 0x1f0   : > { %v1860_v60 = vsel %vm447_vm0, %v1839_v15, 0.0  ;;  %v1428_v33 = vpop.f32.mrf.mxu2  ;;  %v1606_v8 = vadd.f32 %v1572_v3, %v1459_v48  ;;  %v1281_v40 = vpop.f32.mrf.mxu1 }
 0x1f1   : > { %v1861_v7 = vadd.f32 %v1860_v60, %v1859_v57  ;;  %v1313_v35 = vadd.f32 %v1281_v40, %v2781_v22  ;;  %v1722_v11 = vpop.f32.mrf.mxu0 }
 0x1f2   : > { %v1753_v29 = vadd.f32 %v1719_v32, %v1606_v8 }
 0x1f3   : > { %v1460_v0 = vadd.f32 %v1428_v33, %v1313_v35 }
 0x1f4   : > { %v1769_v26 = vmul.f32 %v1753_v29, %v3010_v62  ;;  %v3014_v62 = vld [vmem:[#allocation3_spill] sm:$0xff] }
 0x1f6   : > { %1785 = vst.msk [vmem:[%s2854_s16 + $0x38] sm:$0xff] %vm447_vm0, %v1769_v26  ;;  %v1807_v51 = vsel %vm447_vm0, %v1769_v26, 0.0  ;;  %v1840_v25 = vmul.f32 %v1769_v26, %v1769_v26 }
 0x1f7   : > { %v1808_v12 = vadd.f32 %v1807_v51, %v1806_v6  ;;  %v1575_v4 = vpop.f32.mrf.mxu3 }
 0x1f8   : > { %v1862_v24 = vsel %vm447_vm0, %v1840_v25, 0.0  ;;  %v1431_v14 = vpop.f32.mrf.mxu2  ;;  %v1607_v34 = vadd.f32 %v1575_v4, %v1460_v0  ;;  %v1284_v43 = vpop.f32.mrf.mxu1 }
 0x1f9   : > { %v1863_v9 = vadd.f32 %v1862_v24, %v1861_v7  ;;  %v1314_v22 = vadd.f32 %v1284_v43, %v2792_v20  ;;  %v1725_v13 = vpop.f32.mrf.mxu0 }
 0x1fa   : > { %v1754_v50 = vadd.f32 %v1722_v11, %v1607_v34 }
 0x1fb   : > { %v1461_v17 = vadd.f32 %v1431_v14, %v1314_v22  ;;  %v3015_v22 = vld [vmem:[#allocation13_spill] sm:$0xff] }
 0x1fc   : > { %v1770_v49 = vmul.f32 %v1754_v50, %v3011_v2 }
 0x1fe   : > { %1786 = vst.msk [vmem:[%s2854_s16 + $0x40] sm:$0xff] %vm447_vm0, %v1770_v49  ;;  %v1809_v53 = vsel %vm447_vm0, %v1770_v49, 0.0  ;;  %v1841_v63 = vmul.f32 %v1770_v49, %v1770_v49 }
 0x1ff   : > { %v1810_v30 = vadd.f32 %v1809_v53, %v1808_v12  ;;  %v1578_v39 = vpop.f32.mrf.mxu3 }
 0x200   : > { %v1864_v37 = vsel %vm447_vm0, %v1841_v63, 0.0  ;;  %v1434_v41 = vpop.f32.mrf.mxu2  ;;  %v1608_v1 = vadd.f32 %v1578_v39, %v1461_v17  ;;  %v1287_v27 = vpop.f32.mrf.mxu1 }
 0x201   : > { %v1865_v58 = vadd.f32 %v1864_v37, %v1863_v9  ;;  %v1315_v20 = vadd.f32 %v1287_v27, %v2803_v45  ;;  %v1728_v55 = vpop.f32.mrf.mxu0 }
 0x202   : > { %v1755_v52 = vadd.f32 %v1725_v13, %v1608_v1 }
 0x203   : > { %v1462_v19 = vadd.f32 %v1434_v41, %v1315_v20 }
 0x204   : > { %v1771_v18 = vmul.f32 %v1755_v52, %v3012_v31  ;;  %v3016_v52 = vld [vmem:[#allocation6_spill] sm:$0xff] }
 0x206   : > { %1787 = vst.msk [vmem:[%s2854_s16 + $0x48] sm:$0xff] %vm447_vm0, %v1771_v18  ;;  %v1811_v21 = vsel %vm447_vm0, %v1771_v18, 0.0  ;;  %v1842_v38 = vmul.f32 %v1771_v18, %v1771_v18 }
 0x207   : > { %v1812_v10 = vadd.f32 %v1811_v21, %v1810_v30  ;;  %v1581_v54 = vpop.f32.mrf.mxu3 }
 0x208   : > { %v1866_v59 = vsel %vm447_vm0, %v1842_v38, 0.0  ;;  %v1437_v57 = vpop.f32.mrf.mxu2  ;;  %v1609_v5 = vadd.f32 %v1581_v54, %v1462_v19  ;;  %v1290_v16 = vpop.f32.mrf.mxu1 }
 0x209   : > { %v1867_v47 = vadd.f32 %v1866_v59, %v1865_v58  ;;  %v1316_v45 = vadd.f32 %v1290_v16, %v2814_v23  ;;  %v1731_v46 = vpop.f32.mrf.mxu0  ;;  %v3017_v16 = vld [vmem:[#allocation9_spill] sm:$0xff] }
 0x20a   : > { %v1756_v32 = vadd.f32 %v1728_v55, %v1609_v5 }
 0x20b   : > { %v1463_v6 = vadd.f32 %v1437_v57, %v1316_v45 }
 0x20c   : > { %v1772_v61 = vmul.f32 %v1756_v32, %v3013_v56 }
 0x20e   : > { %1788 = vst.msk [vmem:[%s2854_s16 + $0x50] sm:$0xff] %vm447_vm0, %v1772_v61  ;;  %v1813_v15 = vsel %vm447_vm0, %v1772_v61, 0.0  ;;  %v1843_v48 = vmul.f32 %v1772_v61, %v1772_v61 }
 0x20f   : > { %v1814_v3 = vadd.f32 %v1813_v15, %v1812_v10  ;;  %v1584_v60 = vpop.f32.mrf.mxu3 }
 0x210   : > { %v1868_v33 = vsel %vm447_vm0, %v1843_v48, 0.0  ;;  %v1440_v8 = vpop.f32.mrf.mxu2  ;;  %v1610_v7 = vadd.f32 %v1584_v60, %v1463_v6  ;;  %v1293_v29 = vpop.f32.mrf.mxu1 }
 0x211   : > { %v1869_v40 = vadd.f32 %v1868_v33, %v1867_v47  ;;  %v1317_v23 = vadd.f32 %v1293_v29, %v2824_v36  ;;  %v1734_v11 = vpop.f32.mrf.mxu0  ;;  %v3018_v33 = vld [vmem:[#allocation18_spill] sm:$0xff] }
 0x212   : > { %v1757_v35 = vadd.f32 %v1731_v46, %v1610_v7 }
 0x213   : > { %v1464_v0 = vadd.f32 %v1440_v8, %v1317_v23 }
 0x214   : > { %v1773_v26 = vmul.f32 %v1757_v35, %v3014_v62 }
 0x216   : > { %1789 = vst.msk [vmem:[%s2854_s16 + $0x58] sm:$0xff] %vm447_vm0, %v1773_v26  ;;  %v1815_v51 = vsel %vm447_vm0, %v1773_v26, 0.0  ;;  %v1844_v25 = vmul.f32 %v1773_v26, %v1773_v26 }
 0x217   : > { %v1816_v12 = vadd.f32 %v1815_v51, %v1814_v3  ;;  %v1587_v4 = vpop.f32.mrf.mxu3 }
 0x218   : > { %v1870_v24 = vsel %vm447_vm0, %v1844_v25, 0.0  ;;  %v1611_v14 = vadd.f32 %v1587_v4, %v1464_v0  ;;  %v1443_v9 = vpop.f32.mrf.mxu2  ;;  %v1296_v43 = vpop.f32.mrf.mxu1 }
 0x219   : > { %v1871_v34 = vadd.f32 %v1870_v24, %v1869_v40  ;;  %v1318_v36 = vadd.f32 %v1296_v43, %v2833_v44  ;;  %v1737_v2 = vpop.f32.mrf.mxu0 }
 0x21a   : > { %v1758_v50 = vadd.f32 %v1734_v11, %v1611_v14 }
 0x21b   : > { %v1465_v63 = vadd.f32 %v1443_v9, %v1318_v36 }
 0x21c   : > { %v1774_v13 = vmul.f32 %v1758_v50, %v3015_v22 }
 0x21e   : > { %1790 = vst.msk [vmem:[%s2854_s16 + $0x60] sm:$0xff] %vm447_vm0, %v1774_v13  ;;  %v1817_v49 = vsel %vm447_vm0, %v1774_v13, 0.0  ;;  %v1845_v53 = vmul.f32 %v1774_v13, %v1774_v13 }
 0x21f   : > { %v1818_v17 = vadd.f32 %v1817_v49, %v1816_v12  ;;  %v1590_v30 = vpop.f32.mrf.mxu3 }
 0x220   : > { %v1872_v39 = vsel %vm447_vm0, %v1845_v53, 0.0  ;;  %v1612_v37 = vadd.f32 %v1590_v30, %v1465_v63  ;;  %v1299_v1 = vpop.f32.mrf.mxu1  ;;  %v1446_v27 = vpop.f32.mrf.mxu2 }
 0x221   : > { %v1873_v41 = vadd.f32 %v1872_v39, %v1871_v34  ;;  %v1319_v44 = vadd.f32 %v1299_v1, %v2840_v42  ;;  %v1740_v55 = vpop.f32.mrf.mxu0 }
 0x222   : > { %v1759_v58 = vadd.f32 %v1737_v2, %v1612_v37 }
 0x223   : > { %v1466_v21 = vadd.f32 %v1446_v27, %v1319_v44 }
 0x224   : > { %v1775_v20 = vmul.f32 %v1759_v58, %v3016_v52 }
 0x226   : > { %1791 = vst.msk [vmem:[%s2854_s16 + $0x68] sm:$0xff] %vm447_vm0, %v1775_v20  ;;  %v1819_v31 = vsel %vm447_vm0, %v1775_v20, 0.0  ;;  %v1846_v18 = vmul.f32 %v1775_v20, %v1775_v20 }
 0x227   : > { %v1593_v38 = vpop.f32.mrf.mxu3  ;;  %v1820_v19 = vadd.f32 %v1819_v31, %v1818_v17 }
 0x228   : > { %v1874_v10 = vsel %vm447_vm0, %v1846_v18, 0.0  ;;  %v1613_v54 = vadd.f32 %v1593_v38, %v1466_v21  ;;  %v1302_v59 = vpop.f32.mrf.mxu1  ;;  %v1449_v47 = vpop.f32.mrf.mxu2 }
 0x229   : > { %v1875_v57 = vadd.f32 %v1874_v10, %v1873_v41  ;;  %v1320_v42 = vadd.f32 %v1302_v59, %v2846_v28  ;;  %v1743_v48 = vpop.f32.mrf.mxu0 }
 0x22a   : > { %v1760_v5 = vadd.f32 %v1740_v55, %v1613_v54 }
 0x22b   : > { %v1467_v56 = vadd.f32 %v1449_v47, %v1320_v42 }
 0x22c   : > { %v1776_v32 = vmul.f32 %v1760_v5, %v3017_v16 }
 0x22e   : > { %1792 = vst.msk [vmem:[%s2854_s16 + $0x70] sm:$0xff] %vm447_vm0, %v1776_v32  ;;  %v1821_v45 = vsel %vm447_vm0, %v1776_v32, 0.0  ;;  %v1847_v46 = vmul.f32 %v1776_v32, %v1776_v32 }
 0x22f   : > { %v1822_v61 = vadd.f32 %v1821_v45, %v1820_v19  ;;  %v1596_v15 = vpop.f32.mrf.mxu3 }
 0x230   : > { %v1876_v6 = vsel %vm447_vm0, %v1847_v46, 0.0  ;;  %v1614_v3 = vadd.f32 %v1596_v15, %v1467_v56 }
 0x231   : > { %v1877_v60 = vadd.f32 %v1876_v6, %v1875_v57 }
 0x232   : > { %v1761_v28 = vadd.f32 %v1743_v48, %v1614_v3 }
 0x234   : > { %v1777_v8 = vmul.f32 %v1761_v28, %v3018_v33 }
 0x236   : > { %1793 = vst.msk [vmem:[%s2854_s16 + $0x78] sm:$0xff] %vm447_vm0, %v1777_v8  ;;  %v1823_v7 = vsel %vm447_vm0, %v1777_v8, 0.0  ;;  %v1848_v40 = vmul.f32 %v1777_v8, %v1777_v8 }
 0x237   : > { %v1824_v29 = vadd.f32 %v1823_v7, %v1822_v61 }
 0x238   : > { %v1878_v35 = vsel %vm447_vm0, %v1848_v40, 0.0 }
 0x239   : > { %v1825_v23 = vrot.slane %v1824_v29, 4  ;;  %v1879_v11 = vadd.f32 %v1878_v35, %v1877_v60 }
 0x23b   : > { %v1826_v62 = vadd.f32 %v1825_v23, %v1824_v29  ;;  %v1880_v26 = vrot.slane %v1879_v11, 4 }
 0x23d   : > { %v1827_v51 = vrot.slane %v1826_v62, 2  ;;  %v1881_v25 = vadd.f32 %v1880_v26, %v1879_v11 }
 0x23f   : > { %v1828_v0 = vadd.f32 %v1827_v51, %v1826_v62  ;;  %v1882_v12 = vrot.slane %v1881_v25, 2 }
 0x241   : > { %v1829_v4 = vrot.slane %v1828_v0, 1  ;;  %v1883_v24 = vadd.f32 %v1882_v12, %v1881_v25 }
 0x243   : > { %v1830_v14 = vadd.f32 %v1829_v4, %v1828_v0  ;;  %v1884_v34 = vrot.slane %v1883_v24, 1 }
 0x245   : > { %1832 = vst.msk [vmem:[%s262_s19] sm:$0x1] %vm1831_vm1, %v1830_v14  ;;  %v1885_v9 = vadd.f32 %v1884_v34, %v1883_v24 }
 0x247   : > { %1886 = vst.msk [vmem:[%s262_s19 + $0x1] sm:$0x1] %vm1831_vm1, %v1885_v9 }
 0x248 PF: > { %s17_s21 = sadd.s32 1, %s2163_s21  }
 0x249   : > { %p14_p4 = scmp.ge.s32.totalorder %s17_s21, 4  }
 0x24b   :  { %16 = sbr.rel (!%p14_p4) target bundleno = 1 (0x1), region = 90 }

</bundles_post_ra>
